<compile_context>
chip_gen: v7x
topology: tpu7x:2x2x1
jax: 0.10.0
libtpu: 0.0.40
codegen_flags: <defaults>
</compile_context>

<pallas_src>
import functools
import math

import jax
import jax.numpy as jnp
from jax import lax
from jax.experimental import pallas as pl
from jax.experimental.pallas import tpu as pltpu


# ----------------------------- small helpers (traced inside kernels) ---------

def _layer_norm(x, w, b, eps):
    # x: (rows, D) f32; w, b: (1, D) f32
    mu = jnp.mean(x, axis=-1, keepdims=True)
    var = jnp.mean(jnp.square(x - mu), axis=-1, keepdims=True)
    return (x - mu) * lax.rsqrt(var + eps) * w + b


def _gelu_tanh(x):
    # nn.functional.gelu(..., approximate='tanh'), kept in f32
    c = 0.7978845608028654  # sqrt(2/pi)
    return 0.5 * x * (1.0 + jnp.tanh(c * (x + 0.044715 * x * x * x)))


def _full_spec(shape):
    # Grid-invariant block: whole array, same block every grid step (Pallas
    # does not re-fetch a revisited block).
    n = len(shape)
    return pl.BlockSpec(shape, lambda *_idx, _n=n: (0,) * _n)


def _nbytes(a):
    return math.prod(a.shape) * jnp.dtype(a.dtype).itemsize


def _vmem_capacity_bytes():
    # Generation-aware: v5e/v6e have 128 MiB VMEM, v7x 64 MiB.  Conservative
    # fallback keeps the request grantable everywhere if the query API is
    # unavailable in this jax version.
    try:
        return int(pltpu.get_tpu_info().vmem_capacity_bytes)
    except Exception:
        return 64 << 20


def _layer_vmem_bytes(S, D, I, tQ, weights):
    # Activation blocks (x_full, x_q tile, out tile) + weights, all
    # double-buffered by the pipeline, + bf16 K/V scratch, + the big in-kernel
    # intermediates (f32 kv projection, scores/probs, f32 q/attn/h1, fc1
    # activations) that the previous estimate omitted.
    act = (S * D + 2 * tQ * D) * 4
    wbytes = sum(_nbytes(w) for w in weights)
    scratch = 2 * S * D * 2
    inter = (S * D * 4            # LN1(x_full)
             + S * 2 * D * 4      # kv projection, f32
             + 2 * tQ * S * 4     # scores + probs (one head live)
             + 4 * tQ * D * 4     # q / attn / h1 / out, f32
             + 2 * tQ * I * 4)    # fc1 output + gelu, f32
    return 2 * (act + wbytes) + scratch + inter


def _pick_q_tile(S, B, fits):
    # Largest sublane-aligned query tile that fits the VMEM budget.  Only
    # force >=2 grid steps when B < 2 (so v7x's dual TCs / the pipeline still
    # have work); otherwise bigger tiles win (per-step overhead ~0.35us).
    best = None
    for t in (512, 256, 128, 64, 32, 16, 8):
        if t > S or S % t:
            continue
        if best is None:
            best = t
        if B < 2 and S // t < 2:
            continue
        if fits(t):
            return t
    return best if best is not None else S


# ----------------------------- fused encoder-layer kernel --------------------

def _layer_kernel(xf_ref, xq_ref,
                  ln1w_ref, ln1b_ref, qw_ref, qb_ref, kvw_ref, kvb_ref,
                  ow_ref, ob_ref, ln2w_ref, ln2b_ref,
                  f1w_ref, f1b_ref, f2w_ref, f2b_ref,
                  o_ref, k_scr, v_scr, *, num_heads, eps):
    D = o_ref.shape[-1]
    hd = D // num_heads

    # ---- K/V for the whole sequence: computed once per batch (qi == 0),
    #      kept resident in bf16 VMEM scratch across query tiles ----
    @pl.when(pl.program_id(1) == 0)
    def _():
        hf = _layer_norm(xf_ref[0], ln1w_ref[...], ln1b_ref[...], eps)   # (S, D) f32
        kv = jnp.dot(hf.astype(jnp.bfloat16), kvw_ref[...],
                     preferred_element_type=jnp.float32) + kvb_ref[...]  # (S, 2D) f32
        k_scr[...] = kv[:, :D].astype(jnp.bfloat16)
        v_scr[...] = kv[:, D:].astype(jnp.bfloat16)

    # ---- Q for this query tile (1/sqrt(hd) pre-folded into qw/qb) ----
    hq = _layer_norm(xq_ref[0], ln1w_ref[...], ln1b_ref[...], eps)       # (tQ, D) f32
    q = (jnp.dot(hq.astype(jnp.bfloat16), qw_ref[...],
                 preferred_element_type=jnp.float32)
         + qb_ref[...]).astype(jnp.bfloat16)                             # (tQ, D) bf16
    k = k_scr[...]                                                       # (S, D) bf16
    v = v_scr[...]                                                       # (S, D) bf16

    # ---- per-head softmax(QK^T)V; contexts gathered along lanes, then ONE
    #      (tQ, D) @ (D, D) output projection ----
    ctx = []
    for hi in range(num_heads):
        lo = hi * hd
        s = lax.dot_general(q[:, lo:lo + hd], k[:, lo:lo + hd],
                            (((1,), (1,)), ((), ())),
                            preferred_element_type=jnp.float32)          # (tQ, S)
        s = s - jnp.max(s, axis=-1, keepdims=True)
        p = jnp.exp(s)
        p = p * pl.reciprocal(jnp.sum(p, axis=-1, keepdims=True), approx=True)
        ctx.append(jnp.dot(p.astype(jnp.bfloat16), v[:, lo:lo + hd],
                           preferred_element_type=jnp.float32).astype(jnp.bfloat16))
    ctx = jnp.concatenate(ctx, axis=-1)                                  # (tQ, D) bf16

    attn = jnp.dot(ctx, ow_ref[...],
                   preferred_element_type=jnp.float32) + ob_ref[...]     # (tQ, D) f32
    h1 = xq_ref[0] + attn                                                # residual 1

    # ---- LN2 + MLP + residual 2 ----
    h = _layer_norm(h1, ln2w_ref[...], ln2b_ref[...], eps)
    h = jnp.dot(h.astype(jnp.bfloat16), f1w_ref[...],
                preferred_element_type=jnp.float32) + f1b_ref[...]       # (tQ, I) f32
    h = _gelu_tanh(h)
    h = jnp.dot(h.astype(jnp.bfloat16), f2w_ref[...],
                preferred_element_type=jnp.float32) + f2b_ref[...]       # (tQ, D) f32
    o_ref[0] = h1 + h


def encoder_layer(x, lp, *, num_heads, eps):
    B, S, D = x.shape
    assert D % num_heads == 0
    I = lp["fc1_w"].shape[1]
    weights = (lp["ln1_w"], lp["ln1_b"], lp["q_w"], lp["q_b"],
               lp["kv_w"], lp["kv_b"], lp["o_w"], lp["o_b"],
               lp["ln2_w"], lp["ln2_b"], lp["fc1_w"], lp["fc1_b"],
               lp["fc2_w"], lp["fc2_b"])

    budget_cap = int(0.875 * _vmem_capacity_bytes())   # headroom for Mosaic scratch
    tQ = _pick_q_tile(
        S, B,
        fits=lambda t: _layer_vmem_bytes(S, D, I, t, weights) + (8 << 20) <= budget_cap)
    need = _layer_vmem_bytes(S, D, I, tQ, weights)
    vmem_limit = int(min(max(need + (8 << 20), 32 << 20), budget_cap))

    kernel = functools.partial(_layer_kernel, num_heads=num_heads, eps=eps)
    return pl.pallas_call(
        kernel,
        out_shape=jax.ShapeDtypeStruct((B, S, D), jnp.float32),
        grid=(B, S // tQ),
        in_specs=[pl.BlockSpec((1, S, D), lambda b, q: (b, 0, 0)),    # full seq (K/V)
                  pl.BlockSpec((1, tQ, D), lambda b, q: (b, q, 0))]   # query tile
                + [_full_spec(w.shape) for w in weights],
        out_specs=pl.BlockSpec((1, tQ, D), lambda b, q: (b, q, 0)),
        scratch_shapes=[pltpu.VMEM((S, D), jnp.bfloat16),             # K
                        pltpu.VMEM((S, D), jnp.bfloat16)],            # V
        compiler_params=pltpu.CompilerParams(
            # batch axis may be split across cores; query axis carries the K/V
            # scratch within a batch, so it must stay "arbitrary".
            dimension_semantics=("parallel", "arbitrary"),
            vmem_limit_bytes=vmem_limit),
    )(x, x, *weights)


# ----------------------------- encoder wrapper --------------------------------

def siglip_vision_encoder(inputs_embeds, params, config):
    h = inputs_embeds
    nh = config["num_attention_heads"]
    eps = config["layer_norm_eps"]
    for lp in params["layers"]:
        h = encoder_layer(h, lp, num_heads=nh, eps=eps)
    return h
    # TODO(synk): cross-call prefetch of the next layer's weights (P10).


# ----------------------------- deterministic parameter init ------------------

def init_params(key, config):
    D = config["hidden_size"]
    I = config["intermediate_size"]
    L = config["num_hidden_layers"]
    nh = config["num_attention_heads"]
    scale = float(D // nh) ** -0.5
    std = 0.02
    keys = iter(jax.random.split(key, 6 * L))

    def nrm(shape):
        return std * jax.random.normal(next(keys), shape, jnp.float32)

    layers = []
    for _ in range(L):
        # nn.Linear does x @ W.T + b; weights stored pre-transposed (in, out).
        # The 1/sqrt(head_dim) attention scale is folded into q_w / q_b here.
        q_w, k_w, v_w = nrm((D, D)), nrm((D, D)), nrm((D, D))
        lp = {
            "ln1_w": jnp.ones((1, D), jnp.float32),
            "ln1_b": jnp.zeros((1, D), jnp.float32),
            "q_w": (q_w * scale).astype(jnp.bfloat16),
            "q_b": (jnp.zeros((1, D), jnp.float32) * scale),
            "kv_w": jnp.concatenate([k_w, v_w], axis=1).astype(jnp.bfloat16),
            "kv_b": jnp.zeros((1, 2 * D), jnp.float32),
            "o_w": nrm((D, D)).astype(jnp.bfloat16),
            "o_b": jnp.zeros((1, D), jnp.float32),
            "ln2_w": jnp.ones((1, D), jnp.float32),
            "ln2_b": jnp.zeros((1, D), jnp.float32),
            "fc1_w": nrm((D, I)).astype(jnp.bfloat16),
            "fc1_b": jnp.zeros((1, I), jnp.float32),
            "fc2_w": nrm((I, D)).astype(jnp.bfloat16),
            "fc2_b": jnp.zeros((1, D), jnp.float32),
        }
        layers.append(lp)
    return {"layers": layers}


# ----------------------------- pure-JAX reference (parity check) -------------

def _ref_encoder(x, params, config):
    nh = config["num_attention_heads"]
    eps = config["layer_norm_eps"]

    def ln(t, w, b):
        mu = t.mean(-1, keepdims=True)
        var = ((t - mu) ** 2).mean(-1, keepdims=True)
        return (t - mu) / jnp.sqrt(var + eps) * w + b

    for lp in params["layers"]:
        B, S, D = x.shape
        hd = D // nh
        h = ln(x, lp["ln1_w"], lp["ln1_b"])
        q = h @ lp["q_w"].astype(jnp.float32) + lp["q_b"]        # scale pre-folded
        kv = h @ lp["kv_w"].astype(jnp.float32) + lp["kv_b"]
        k, v = kv[..., :D], kv[..., D:]

        def split(t):
            return t.reshape(B, S, nh, hd).transpose(0, 2, 1, 3)

        s = jnp.einsum("bhqd,bhkd->bhqk", split(q), split(k))
        p = jax.nn.softmax(s, axis=-1)
        ctx = jnp.einsum("bhqk,bhkd->bhqd", p, split(v))
        ctx = ctx.transpose(0, 2, 1, 3).reshape(B, S, D)
        attn = ctx @ lp["o_w"].astype(jnp.float32) + lp["o_b"]
        x = x + attn

        h = ln(x, lp["ln2_w"], lp["ln2_b"])
        h = h @ lp["fc1_w"].astype(jnp.float32) + lp["fc1_b"]
        h = _gelu_tanh(h)
        h = h @ lp["fc2_w"].astype(jnp.float32) + lp["fc2_b"]
        x = x + h
    return x


# ----------------------------- main ------------------------------------------

if __name__ == "__main__":
    config = {
        "hidden_size": 128,          # multiple of 128 -> lane-dense stores
        "intermediate_size": 256,
        "num_attention_heads": 4,
        "num_hidden_layers": 2,
        "layer_norm_eps": 1e-6,
        "attention_dropout": 0.0,    # eval mode -> dropout is a no-op
    }

    key = jax.random.PRNGKey(0)
    k_params, k_x = jax.random.split(key)
    params = init_params(k_params, config)

    B, S = 2, 64                     # S multiple of 8 (sublane aligned)
    inputs_embeds = jax.random.normal(
        k_x, (B, S, config["hidden_size"]), jnp.float32)

    out = siglip_vision_encoder(inputs_embeds, params, config)
    out = jax.block_until_ready(out)

    assert out.shape == (B, S, config["hidden_size"]), out.shape
    assert bool(jnp.all(jnp.isfinite(out)))

    # Parity vs. a pure-JAX f32 reference using the same (bf16-stored) weights:
    # differences come only from bf16 matmul-input casts + approx reciprocal.
    ref = jax.block_until_ready(_ref_encoder(inputs_embeds, params, config))
    max_diff = float(jnp.max(jnp.abs(out - ref)))
    assert max_diff < 5e-2, max_diff

    print("KERNEL_OK")
</pallas_src>

<mosaic_0001>
module attributes {stable_mosaic.version = 11 : i64} {
  func.func @_layer_kernel(%arg0: i32, %arg1: i32, %arg2: memref<1x64x128xf32, #tpu.memory_space<vmem>>, %arg3: memref<1x64x128xf32, #tpu.memory_space<vmem>>, %arg4: memref<1x128xf32, #tpu.memory_space<vmem>>, %arg5: memref<1x128xf32, #tpu.memory_space<vmem>>, %arg6: memref<128x128xbf16, #tpu.memory_space<vmem>>, %arg7: memref<1x128xf32, #tpu.memory_space<vmem>>, %arg8: memref<128x256xbf16, #tpu.memory_space<vmem>>, %arg9: memref<1x256xf32, #tpu.memory_space<vmem>>, %arg10: memref<128x128xbf16, #tpu.memory_space<vmem>>, %arg11: memref<1x128xf32, #tpu.memory_space<vmem>>, %arg12: memref<1x128xf32, #tpu.memory_space<vmem>>, %arg13: memref<1x128xf32, #tpu.memory_space<vmem>>, %arg14: memref<128x256xbf16, #tpu.memory_space<vmem>>, %arg15: memref<1x256xf32, #tpu.memory_space<vmem>>, %arg16: memref<256x128xbf16, #tpu.memory_space<vmem>>, %arg17: memref<1x128xf32, #tpu.memory_space<vmem>>, %arg18: memref<1x64x128xf32, #tpu.memory_space<vmem>>, %arg19: memref<64x128xbf16, #tpu.memory_space<vmem>>, %arg20: memref<64x128xbf16, #tpu.memory_space<vmem>>) attributes {dimension_semantics = [#tpu.dimension_semantics<parallel>, #tpu.dimension_semantics<arbitrary>], iteration_bounds = array<i64: 2, 1>, scalar_prefetch = 0 : i64, scratch_operands = 2 : i64, tpu.core_type = #tpu.core_type<tc>, window_params = [{transform_indices = @transform_0, window_bounds = array<i64: 1, 64, 128>}, {transform_indices = @transform_1, window_bounds = array<i64: 1, 64, 128>}, {pipeline_mode = #tpu.pipeline_mode<synchronous>, transform_indices = @transform_2, window_bounds = array<i64: 1, 128>}, {pipeline_mode = #tpu.pipeline_mode<synchronous>, transform_indices = @transform_3, window_bounds = array<i64: 1, 128>}, {pipeline_mode = #tpu.pipeline_mode<synchronous>, transform_indices = @transform_4, window_bounds = array<i64: 128, 128>}, {pipeline_mode = #tpu.pipeline_mode<synchronous>, transform_indices = @transform_5, window_bounds = array<i64: 1, 128>}, {pipeline_mode = #tpu.pipeline_mode<synchronous>, transform_indices = @transform_6, window_bounds = array<i64: 128, 256>}, {pipeline_mode = #tpu.pipeline_mode<synchronous>, transform_indices = @transform_7, window_bounds = array<i64: 1, 256>}, {pipeline_mode = #tpu.pipeline_mode<synchronous>, transform_indices = @transform_8, window_bounds = array<i64: 128, 128>}, {pipeline_mode = #tpu.pipeline_mode<synchronous>, transform_indices = @transform_9, window_bounds = array<i64: 1, 128>}, {pipeline_mode = #tpu.pipeline_mode<synchronous>, transform_indices = @transform_10, window_bounds = array<i64: 1, 128>}, {pipeline_mode = #tpu.pipeline_mode<synchronous>, transform_indices = @transform_11, window_bounds = array<i64: 1, 128>}, {pipeline_mode = #tpu.pipeline_mode<synchronous>, transform_indices = @transform_12, window_bounds = array<i64: 128, 256>}, {pipeline_mode = #tpu.pipeline_mode<synchronous>, transform_indices = @transform_13, window_bounds = array<i64: 1, 256>}, {pipeline_mode = #tpu.pipeline_mode<synchronous>, transform_indices = @transform_14, window_bounds = array<i64: 256, 128>}, {pipeline_mode = #tpu.pipeline_mode<synchronous>, transform_indices = @transform_15, window_bounds = array<i64: 1, 128>}, {transform_indices = @transform_16, window_bounds = array<i64: 1, 64, 128>}]} {
    %c0_i32 = arith.constant 0 : i32
    %0 = arith.cmpi eq, %arg1, %c0_i32 : i32
    %1 = arith.extui %0 : i1 to i32
    %c0_i32_0 = arith.constant 0 : i32
    %2 = arith.cmpi ne, %1, %c0_i32_0 : i32
    scf.if %2 {
      %c0_70 = arith.constant 0 : index
      %c0_71 = arith.constant 0 : index
      %c0_72 = arith.constant 0 : index
      %168 = vector.load %arg2[%c0_70, %c0_71, %c0_72] : memref<1x64x128xf32, #tpu.memory_space<vmem>>, vector<1x64x128xf32>
      %169 = vector.shape_cast %168 : vector<1x64x128xf32> to vector<64x128xf32>
      %c0_73 = arith.constant 0 : index
      %c0_74 = arith.constant 0 : index
      %170 = vector.load %arg4[%c0_73, %c0_74] : memref<1x128xf32, #tpu.memory_space<vmem>>, vector<1x128xf32>
      %c0_75 = arith.constant 0 : index
      %c0_76 = arith.constant 0 : index
      %171 = vector.load %arg5[%c0_75, %c0_76] : memref<1x128xf32, #tpu.memory_space<vmem>>, vector<1x128xf32>
      %cst_77 = arith.constant dense<0.000000e+00> : vector<64xf32>
      %172 = vector.multi_reduction <add>, %169, %cst_77 [1] : vector<64x128xf32> to vector<64xf32>
      %173 = vector.shape_cast %172 : vector<64xf32> to vector<64x1xf32>
      %cst_78 = arith.constant 1.280000e+02 : f32
      %174 = vector.broadcast %cst_78 : f32 to vector<64x1xf32>
      %175 = arith.divf %173, %174 : vector<64x1xf32>
      %176 = vector.broadcast %175 : vector<64x1xf32> to vector<64x128xf32>
      %177 = arith.subf %169, %176 : vector<64x128xf32>
      %178 = arith.mulf %177, %177 : vector<64x128xf32>
      %cst_79 = arith.constant dense<0.000000e+00> : vector<64xf32>
      %179 = vector.multi_reduction <add>, %178, %cst_79 [1] : vector<64x128xf32> to vector<64xf32>
      %180 = vector.shape_cast %179 : vector<64xf32> to vector<64x1xf32>
      %cst_80 = arith.constant 1.280000e+02 : f32
      %181 = vector.broadcast %cst_80 : f32 to vector<64x1xf32>
      %182 = arith.divf %180, %181 : vector<64x1xf32>
      %183 = vector.broadcast %175 : vector<64x1xf32> to vector<64x128xf32>
      %184 = arith.subf %169, %183 : vector<64x128xf32>
      %cst_81 = arith.constant 9.99999997E-7 : f32
      %185 = vector.broadcast %cst_81 : f32 to vector<64x1xf32>
      %186 = arith.addf %182, %185 : vector<64x1xf32>
      %187 = math.rsqrt %186 : vector<64x1xf32>
      %188 = vector.broadcast %187 : vector<64x1xf32> to vector<64x128xf32>
      %189 = arith.mulf %184, %188 : vector<64x128xf32>
      %190 = vector.broadcast %170 : vector<1x128xf32> to vector<64x128xf32>
      %191 = arith.mulf %189, %190 : vector<64x128xf32>
      %192 = vector.broadcast %171 : vector<1x128xf32> to vector<64x128xf32>
      %193 = arith.addf %191, %192 : vector<64x128xf32>
      %194 = arith.truncf %193 : vector<64x128xf32> to vector<64x128xbf16>
      %c0_82 = arith.constant 0 : index
      %c0_83 = arith.constant 0 : index
      %195 = vector.load %arg8[%c0_82, %c0_83] : memref<128x256xbf16, #tpu.memory_space<vmem>>, vector<128x256xbf16>
      %cst_84 = arith.constant dense<0.000000e+00> : vector<64x256xf32>
      %196 = tpu.matmul %194, %195, %cst_84 {dimension_numbers = #tpu.dot_dimension_numbers<[1], [0], [0], [1], [0, 0, 1, 1], [], []>} : vector<64x128xbf16>, vector<128x256xbf16>, vector<64x256xf32> -> vector<64x256xf32>
      %c0_85 = arith.constant 0 : index
      %c0_86 = arith.constant 0 : index
      %197 = vector.load %arg9[%c0_85, %c0_86] : memref<1x256xf32, #tpu.memory_space<vmem>>, vector<1x256xf32>
      %198 = vector.broadcast %197 : vector<1x256xf32> to vector<64x256xf32>
      %199 = arith.addf %196, %198 : vector<64x256xf32>
      %200 = vector.extract_strided_slice %199 {offsets = [0, 0], sizes = [64, 128], strides = [1, 1]} : vector<64x256xf32> to vector<64x128xf32>
      %201 = arith.truncf %200 : vector<64x128xf32> to vector<64x128xbf16>
      %c0_87 = arith.constant 0 : index
      %c0_88 = arith.constant 0 : index
      %202 = vector.load %arg19[%c0_87, %c0_88] : memref<64x128xbf16, #tpu.memory_space<vmem>>, vector<64x128xbf16>
      tpu.vector_store %arg19[%c0_87, %c0_88], %201 {strides = array<i32>} : memref<64x128xbf16, #tpu.memory_space<vmem>>, vector<64x128xbf16>,
      %203 = vector.extract_strided_slice %199 {offsets = [0, 128], sizes = [64, 128], strides = [1, 1]} : vector<64x256xf32> to vector<64x128xf32>
      %204 = arith.truncf %203 : vector<64x128xf32> to vector<64x128xbf16>
      %c0_89 = arith.constant 0 : index
      %c0_90 = arith.constant 0 : index
      %205 = vector.load %arg20[%c0_89, %c0_90] : memref<64x128xbf16, #tpu.memory_space<vmem>>, vector<64x128xbf16>
      tpu.vector_store %arg20[%c0_89, %c0_90], %204 {strides = array<i32>} : memref<64x128xbf16, #tpu.memory_space<vmem>>, vector<64x128xbf16>,
    } else {
    }
    %c0 = arith.constant 0 : index
    %c0_1 = arith.constant 0 : index
    %c0_2 = arith.constant 0 : index
    %3 = vector.load %arg3[%c0, %c0_1, %c0_2] : memref<1x64x128xf32, #tpu.memory_space<vmem>>, vector<1x64x128xf32>
    %4 = vector.shape_cast %3 : vector<1x64x128xf32> to vector<64x128xf32>
    %c0_3 = arith.constant 0 : index
    %c0_4 = arith.constant 0 : index
    %5 = vector.load %arg4[%c0_3, %c0_4] : memref<1x128xf32, #tpu.memory_space<vmem>>, vector<1x128xf32>
    %c0_5 = arith.constant 0 : index
    %c0_6 = arith.constant 0 : index
    %6 = vector.load %arg5[%c0_5, %c0_6] : memref<1x128xf32, #tpu.memory_space<vmem>>, vector<1x128xf32>
    %cst = arith.constant dense<0.000000e+00> : vector<64xf32>
    %7 = vector.multi_reduction <add>, %4, %cst [1] : vector<64x128xf32> to vector<64xf32>
    %8 = vector.shape_cast %7 : vector<64xf32> to vector<64x1xf32>
    %cst_7 = arith.constant 1.280000e+02 : f32
    %9 = vector.broadcast %cst_7 : f32 to vector<64x1xf32>
    %10 = arith.divf %8, %9 : vector<64x1xf32>
    %11 = vector.broadcast %10 : vector<64x1xf32> to vector<64x128xf32>
    %12 = arith.subf %4, %11 : vector<64x128xf32>
    %13 = arith.mulf %12, %12 : vector<64x128xf32>
    %cst_8 = arith.constant dense<0.000000e+00> : vector<64xf32>
    %14 = vector.multi_reduction <add>, %13, %cst_8 [1] : vector<64x128xf32> to vector<64xf32>
    %15 = vector.shape_cast %14 : vector<64xf32> to vector<64x1xf32>
    %cst_9 = arith.constant 1.280000e+02 : f32
    %16 = vector.broadcast %cst_9 : f32 to vector<64x1xf32>
    %17 = arith.divf %15, %16 : vector<64x1xf32>
    %18 = vector.broadcast %10 : vector<64x1xf32> to vector<64x128xf32>
    %19 = arith.subf %4, %18 : vector<64x128xf32>
    %cst_10 = arith.constant 9.99999997E-7 : f32
    %20 = vector.broadcast %cst_10 : f32 to vector<64x1xf32>
    %21 = arith.addf %17, %20 : vector<64x1xf32>
    %22 = math.rsqrt %21 : vector<64x1xf32>
    %23 = vector.broadcast %22 : vector<64x1xf32> to vector<64x128xf32>
    %24 = arith.mulf %19, %23 : vector<64x128xf32>
    %25 = vector.broadcast %5 : vector<1x128xf32> to vector<64x128xf32>
    %26 = arith.mulf %24, %25 : vector<64x128xf32>
    %27 = vector.broadcast %6 : vector<1x128xf32> to vector<64x128xf32>
    %28 = arith.addf %26, %27 : vector<64x128xf32>
    %29 = arith.truncf %28 : vector<64x128xf32> to vector<64x128xbf16>
    %c0_11 = arith.constant 0 : index
    %c0_12 = arith.constant 0 : index
    %30 = vector.load %arg6[%c0_11, %c0_12] : memref<128x128xbf16, #tpu.memory_space<vmem>>, vector<128x128xbf16>
    %cst_13 = arith.constant dense<0.000000e+00> : vector<64x128xf32>
    %31 = tpu.matmul %29, %30, %cst_13 {dimension_numbers = #tpu.dot_dimension_numbers<[1], [0], [0], [1], [0, 0, 1, 1], [], []>} : vector<64x128xbf16>, vector<128x128xbf16>, vector<64x128xf32> -> vector<64x128xf32>
    %c0_14 = arith.constant 0 : index
    %c0_15 = arith.constant 0 : index
    %32 = vector.load %arg7[%c0_14, %c0_15] : memref<1x128xf32, #tpu.memory_space<vmem>>, vector<1x128xf32>
    %33 = vector.broadcast %32 : vector<1x128xf32> to vector<64x128xf32>
    %34 = arith.addf %31, %33 : vector<64x128xf32>
    %35 = arith.truncf %34 : vector<64x128xf32> to vector<64x128xbf16>
    %c0_16 = arith.constant 0 : index
    %c0_17 = arith.constant 0 : index
    %36 = vector.load %arg19[%c0_16, %c0_17] : memref<64x128xbf16, #tpu.memory_space<vmem>>, vector<64x128xbf16>
    %c0_18 = arith.constant 0 : index
    %c0_19 = arith.constant 0 : index
    %37 = vector.load %arg20[%c0_18, %c0_19] : memref<64x128xbf16, #tpu.memory_space<vmem>>, vector<64x128xbf16>
    %38 = vector.extract_strided_slice %35 {offsets = [0, 0], sizes = [64, 32], strides = [1, 1]} : vector<64x128xbf16> to vector<64x32xbf16>
    %39 = vector.extract_strided_slice %36 {offsets = [0, 0], sizes = [64, 32], strides = [1, 1]} : vector<64x128xbf16> to vector<64x32xbf16>
    %cst_20 = arith.constant dense<0.000000e+00> : vector<64x64xf32>
    %40 = tpu.matmul %38, %39, %cst_20 {dimension_numbers = #tpu.dot_dimension_numbers<[1], [1], [0], [0], [0, 0, 1, 0], [], []>} : vector<64x32xbf16>, vector<64x32xbf16>, vector<64x64xf32> -> vector<64x64xf32>
    %cst_21 = arith.constant dense<0xFF800000> : vector<64xf32>
    %41 = vector.multi_reduction <maximumf>, %40, %cst_21 [1] : vector<64x64xf32> to vector<64xf32>
    %42 = vector.shape_cast %41 : vector<64xf32> to vector<64x1xf32>
    %43 = vector.broadcast %42 : vector<64x1xf32> to vector<64x64xf32>
    %44 = arith.subf %40, %43 : vector<64x64xf32>
    %45 = math.exp %44 : vector<64x64xf32>
    %cst_22 = arith.constant dense<0.000000e+00> : vector<64xf32>
    %46 = vector.multi_reduction <add>, %45, %cst_22 [1] : vector<64x64xf32> to vector<64xf32>
    %47 = vector.shape_cast %46 : vector<64xf32> to vector<64x1xf32>
    %48 = tpu.reciprocal %47 {approx = true} : vector<64x1xf32> -> vector<64x1xf32>
    %49 = vector.broadcast %48 : vector<64x1xf32> to vector<64x64xf32>
    %50 = arith.mulf %45, %49 : vector<64x64xf32>
    %51 = arith.truncf %50 : vector<64x64xf32> to vector<64x64xbf16>
    %52 = vector.extract_strided_slice %37 {offsets = [0, 0], sizes = [64, 32], strides = [1, 1]} : vector<64x128xbf16> to vector<64x32xbf16>
    %cst_23 = arith.constant dense<0.000000e+00> : vector<64x32xf32>
    %53 = tpu.matmul %51, %52, %cst_23 {dimension_numbers = #tpu.dot_dimension_numbers<[1], [0], [0], [1], [0, 0, 1, 1], [], []>} : vector<64x64xbf16>, vector<64x32xbf16>, vector<64x32xf32> -> vector<64x32xf32>
    %54 = arith.truncf %53 : vector<64x32xf32> to vector<64x32xbf16>
    %55 = vector.extract_strided_slice %35 {offsets = [0, 32], sizes = [64, 32], strides = [1, 1]} : vector<64x128xbf16> to vector<64x32xbf16>
    %56 = vector.extract_strided_slice %36 {offsets = [0, 32], sizes = [64, 32], strides = [1, 1]} : vector<64x128xbf16> to vector<64x32xbf16>
    %cst_24 = arith.constant dense<0.000000e+00> : vector<64x64xf32>
    %57 = tpu.matmul %55, %56, %cst_24 {dimension_numbers = #tpu.dot_dimension_numbers<[1], [1], [0], [0], [0, 0, 1, 0], [], []>} : vector<64x32xbf16>, vector<64x32xbf16>, vector<64x64xf32> -> vector<64x64xf32>
    %cst_25 = arith.constant dense<0xFF800000> : vector<64xf32>
    %58 = vector.multi_reduction <maximumf>, %57, %cst_25 [1] : vector<64x64xf32> to vector<64xf32>
    %59 = vector.shape_cast %58 : vector<64xf32> to vector<64x1xf32>
    %60 = vector.broadcast %59 : vector<64x1xf32> to vector<64x64xf32>
    %61 = arith.subf %57, %60 : vector<64x64xf32>
    %62 = math.exp %61 : vector<64x64xf32>
    %cst_26 = arith.constant dense<0.000000e+00> : vector<64xf32>
    %63 = vector.multi_reduction <add>, %62, %cst_26 [1] : vector<64x64xf32> to vector<64xf32>
    %64 = vector.shape_cast %63 : vector<64xf32> to vector<64x1xf32>
    %65 = tpu.reciprocal %64 {approx = true} : vector<64x1xf32> -> vector<64x1xf32>
    %66 = vector.broadcast %65 : vector<64x1xf32> to vector<64x64xf32>
    %67 = arith.mulf %62, %66 : vector<64x64xf32>
    %68 = arith.truncf %67 : vector<64x64xf32> to vector<64x64xbf16>
    %69 = vector.extract_strided_slice %37 {offsets = [0, 32], sizes = [64, 32], strides = [1, 1]} : vector<64x128xbf16> to vector<64x32xbf16>
    %cst_27 = arith.constant dense<0.000000e+00> : vector<64x32xf32>
    %70 = tpu.matmul %68, %69, %cst_27 {dimension_numbers = #tpu.dot_dimension_numbers<[1], [0], [0], [1], [0, 0, 1, 1], [], []>} : vector<64x64xbf16>, vector<64x32xbf16>, vector<64x32xf32> -> vector<64x32xf32>
    %71 = arith.truncf %70 : vector<64x32xf32> to vector<64x32xbf16>
    %72 = vector.extract_strided_slice %35 {offsets = [0, 64], sizes = [64, 32], strides = [1, 1]} : vector<64x128xbf16> to vector<64x32xbf16>
    %73 = vector.extract_strided_slice %36 {offsets = [0, 64], sizes = [64, 32], strides = [1, 1]} : vector<64x128xbf16> to vector<64x32xbf16>
    %cst_28 = arith.constant dense<0.000000e+00> : vector<64x64xf32>
    %74 = tpu.matmul %72, %73, %cst_28 {dimension_numbers = #tpu.dot_dimension_numbers<[1], [1], [0], [0], [0, 0, 1, 0], [], []>} : vector<64x32xbf16>, vector<64x32xbf16>, vector<64x64xf32> -> vector<64x64xf32>
    %cst_29 = arith.constant dense<0xFF800000> : vector<64xf32>
    %75 = vector.multi_reduction <maximumf>, %74, %cst_29 [1] : vector<64x64xf32> to vector<64xf32>
    %76 = vector.shape_cast %75 : vector<64xf32> to vector<64x1xf32>
    %77 = vector.broadcast %76 : vector<64x1xf32> to vector<64x64xf32>
    %78 = arith.subf %74, %77 : vector<64x64xf32>
    %79 = math.exp %78 : vector<64x64xf32>
    %cst_30 = arith.constant dense<0.000000e+00> : vector<64xf32>
    %80 = vector.multi_reduction <add>, %79, %cst_30 [1] : vector<64x64xf32> to vector<64xf32>
    %81 = vector.shape_cast %80 : vector<64xf32> to vector<64x1xf32>
    %82 = tpu.reciprocal %81 {approx = true} : vector<64x1xf32> -> vector<64x1xf32>
    %83 = vector.broadcast %82 : vector<64x1xf32> to vector<64x64xf32>
    %84 = arith.mulf %79, %83 : vector<64x64xf32>
    %85 = arith.truncf %84 : vector<64x64xf32> to vector<64x64xbf16>
    %86 = vector.extract_strided_slice %37 {offsets = [0, 64], sizes = [64, 32], strides = [1, 1]} : vector<64x128xbf16> to vector<64x32xbf16>
    %cst_31 = arith.constant dense<0.000000e+00> : vector<64x32xf32>
    %87 = tpu.matmul %85, %86, %cst_31 {dimension_numbers = #tpu.dot_dimension_numbers<[1], [0], [0], [1], [0, 0, 1, 1], [], []>} : vector<64x64xbf16>, vector<64x32xbf16>, vector<64x32xf32> -> vector<64x32xf32>
    %88 = arith.truncf %87 : vector<64x32xf32> to vector<64x32xbf16>
    %89 = vector.extract_strided_slice %35 {offsets = [0, 96], sizes = [64, 32], strides = [1, 1]} : vector<64x128xbf16> to vector<64x32xbf16>
    %90 = vector.extract_strided_slice %36 {offsets = [0, 96], sizes = [64, 32], strides = [1, 1]} : vector<64x128xbf16> to vector<64x32xbf16>
    %cst_32 = arith.constant dense<0.000000e+00> : vector<64x64xf32>
    %91 = tpu.matmul %89, %90, %cst_32 {dimension_numbers = #tpu.dot_dimension_numbers<[1], [1], [0], [0], [0, 0, 1, 0], [], []>} : vector<64x32xbf16>, vector<64x32xbf16>, vector<64x64xf32> -> vector<64x64xf32>
    %cst_33 = arith.constant dense<0xFF800000> : vector<64xf32>
    %92 = vector.multi_reduction <maximumf>, %91, %cst_33 [1] : vector<64x64xf32> to vector<64xf32>
    %93 = vector.shape_cast %92 : vector<64xf32> to vector<64x1xf32>
    %94 = vector.broadcast %93 : vector<64x1xf32> to vector<64x64xf32>
    %95 = arith.subf %91, %94 : vector<64x64xf32>
    %96 = math.exp %95 : vector<64x64xf32>
    %cst_34 = arith.constant dense<0.000000e+00> : vector<64xf32>
    %97 = vector.multi_reduction <add>, %96, %cst_34 [1] : vector<64x64xf32> to vector<64xf32>
    %98 = vector.shape_cast %97 : vector<64xf32> to vector<64x1xf32>
    %99 = tpu.reciprocal %98 {approx = true} : vector<64x1xf32> -> vector<64x1xf32>
    %100 = vector.broadcast %99 : vector<64x1xf32> to vector<64x64xf32>
    %101 = arith.mulf %96, %100 : vector<64x64xf32>
    %102 = arith.truncf %101 : vector<64x64xf32> to vector<64x64xbf16>
    %103 = vector.extract_strided_slice %37 {offsets = [0, 96], sizes = [64, 32], strides = [1, 1]} : vector<64x128xbf16> to vector<64x32xbf16>
    %cst_35 = arith.constant dense<0.000000e+00> : vector<64x32xf32>
    %104 = tpu.matmul %102, %103, %cst_35 {dimension_numbers = #tpu.dot_dimension_numbers<[1], [0], [0], [1], [0, 0, 1, 1], [], []>} : vector<64x64xbf16>, vector<64x32xbf16>, vector<64x32xf32> -> vector<64x32xf32>
    %105 = arith.truncf %104 : vector<64x32xf32> to vector<64x32xbf16>
    %106 = tpu.concatenate %54, %71, %88, %105 in 1 : vector<64x32xbf16>, vector<64x32xbf16>, vector<64x32xbf16>, vector<64x32xbf16> -> vector<64x128xbf16>
    %c0_36 = arith.constant 0 : index
    %c0_37 = arith.constant 0 : index
    %107 = vector.load %arg10[%c0_36, %c0_37] : memref<128x128xbf16, #tpu.memory_space<vmem>>, vector<128x128xbf16>
    %cst_38 = arith.constant dense<0.000000e+00> : vector<64x128xf32>
    %108 = tpu.matmul %106, %107, %cst_38 {dimension_numbers = #tpu.dot_dimension_numbers<[1], [0], [0], [1], [0, 0, 1, 1], [], []>} : vector<64x128xbf16>, vector<128x128xbf16>, vector<64x128xf32> -> vector<64x128xf32>
    %c0_39 = arith.constant 0 : index
    %c0_40 = arith.constant 0 : index
    %109 = vector.load %arg11[%c0_39, %c0_40] : memref<1x128xf32, #tpu.memory_space<vmem>>, vector<1x128xf32>
    %110 = vector.broadcast %109 : vector<1x128xf32> to vector<64x128xf32>
    %111 = arith.addf %108, %110 : vector<64x128xf32>
    %c0_41 = arith.constant 0 : index
    %c0_42 = arith.constant 0 : index
    %c0_43 = arith.constant 0 : index
    %112 = vector.load %arg3[%c0_41, %c0_42, %c0_43] : memref<1x64x128xf32, #tpu.memory_space<vmem>>, vector<1x64x128xf32>
    %113 = vector.shape_cast %112 : vector<1x64x128xf32> to vector<64x128xf32>
    %114 = arith.addf %113, %111 : vector<64x128xf32>
    %c0_44 = arith.constant 0 : index
    %c0_45 = arith.constant 0 : index
    %115 = vector.load %arg12[%c0_44, %c0_45] : memref<1x128xf32, #tpu.memory_space<vmem>>, vector<1x128xf32>
    %c0_46 = arith.constant 0 : index
    %c0_47 = arith.constant 0 : index
    %116 = vector.load %arg13[%c0_46, %c0_47] : memref<1x128xf32, #tpu.memory_space<vmem>>, vector<1x128xf32>
    %cst_48 = arith.constant dense<0.000000e+00> : vector<64xf32>
    %117 = vector.multi_reduction <add>, %114, %cst_48 [1] : vector<64x128xf32> to vector<64xf32>
    %118 = vector.shape_cast %117 : vector<64xf32> to vector<64x1xf32>
    %cst_49 = arith.constant 1.280000e+02 : f32
    %119 = vector.broadcast %cst_49 : f32 to vector<64x1xf32>
    %120 = arith.divf %118, %119 : vector<64x1xf32>
    %121 = vector.broadcast %120 : vector<64x1xf32> to vector<64x128xf32>
    %122 = arith.subf %114, %121 : vector<64x128xf32>
    %123 = arith.mulf %122, %122 : vector<64x128xf32>
    %cst_50 = arith.constant dense<0.000000e+00> : vector<64xf32>
    %124 = vector.multi_reduction <add>, %123, %cst_50 [1] : vector<64x128xf32> to vector<64xf32>
    %125 = vector.shape_cast %124 : vector<64xf32> to vector<64x1xf32>
    %cst_51 = arith.constant 1.280000e+02 : f32
    %126 = vector.broadcast %cst_51 : f32 to vector<64x1xf32>
    %127 = arith.divf %125, %126 : vector<64x1xf32>
    %128 = vector.broadcast %120 : vector<64x1xf32> to vector<64x128xf32>
    %129 = arith.subf %114, %128 : vector<64x128xf32>
    %cst_52 = arith.constant 9.99999997E-7 : f32
    %130 = vector.broadcast %cst_52 : f32 to vector<64x1xf32>
    %131 = arith.addf %127, %130 : vector<64x1xf32>
    %132 = math.rsqrt %131 : vector<64x1xf32>
    %133 = vector.broadcast %132 : vector<64x1xf32> to vector<64x128xf32>
    %134 = arith.mulf %129, %133 : vector<64x128xf32>
    %135 = vector.broadcast %115 : vector<1x128xf32> to vector<64x128xf32>
    %136 = arith.mulf %134, %135 : vector<64x128xf32>
    %137 = vector.broadcast %116 : vector<1x128xf32> to vector<64x128xf32>
    %138 = arith.addf %136, %137 : vector<64x128xf32>
    %139 = arith.truncf %138 : vector<64x128xf32> to vector<64x128xbf16>
    %c0_53 = arith.constant 0 : index
    %c0_54 = arith.constant 0 : index
    %140 = vector.load %arg14[%c0_53, %c0_54] : memref<128x256xbf16, #tpu.memory_space<vmem>>, vector<128x256xbf16>
    %cst_55 = arith.constant dense<0.000000e+00> : vector<64x256xf32>
    %141 = tpu.matmul %139, %140, %cst_55 {dimension_numbers = #tpu.dot_dimension_numbers<[1], [0], [0], [1], [0, 0, 1, 1], [], []>} : vector<64x128xbf16>, vector<128x256xbf16>, vector<64x256xf32> -> vector<64x256xf32>
    %c0_56 = arith.constant 0 : index
    %c0_57 = arith.constant 0 : index
    %142 = vector.load %arg15[%c0_56, %c0_57] : memref<1x256xf32, #tpu.memory_space<vmem>>, vector<1x256xf32>
    %143 = vector.broadcast %142 : vector<1x256xf32> to vector<64x256xf32>
    %144 = arith.addf %141, %143 : vector<64x256xf32>
    %cst_58 = arith.constant 5.000000e-01 : f32
    %145 = vector.broadcast %cst_58 : f32 to vector<64x256xf32>
    %146 = arith.mulf %145, %144 : vector<64x256xf32>
    %cst_59 = arith.constant 4.471500e-02 : f32
    %147 = vector.broadcast %cst_59 : f32 to vector<64x256xf32>
    %148 = arith.mulf %147, %144 : vector<64x256xf32>
    %149 = arith.mulf %148, %144 : vector<64x256xf32>
    %150 = arith.mulf %149, %144 : vector<64x256xf32>
    %151 = arith.addf %144, %150 : vector<64x256xf32>
    %cst_60 = arith.constant 0.797884583 : f32
    %152 = vector.broadcast %cst_60 : f32 to vector<64x256xf32>
    %153 = arith.mulf %152, %151 : vector<64x256xf32>
    %154 = math.tanh %153 : vector<64x256xf32>
    %cst_61 = arith.constant 1.000000e+00 : f32
    %155 = vector.broadcast %cst_61 : f32 to vector<64x256xf32>
    %156 = arith.addf %155, %154 : vector<64x256xf32>
    %157 = arith.mulf %146, %156 : vector<64x256xf32>
    %158 = arith.truncf %157 : vector<64x256xf32> to vector<64x256xbf16>
    %c0_62 = arith.constant 0 : index
    %c0_63 = arith.constant 0 : index
    %159 = vector.load %arg16[%c0_62, %c0_63] : memref<256x128xbf16, #tpu.memory_space<vmem>>, vector<256x128xbf16>
    %cst_64 = arith.constant dense<0.000000e+00> : vector<64x128xf32>
    %160 = tpu.matmul %158, %159, %cst_64 {dimension_numbers = #tpu.dot_dimension_numbers<[1], [0], [0], [1], [0, 0, 1, 1], [], []>} : vector<64x256xbf16>, vector<256x128xbf16>, vector<64x128xf32> -> vector<64x128xf32>
    %c0_65 = arith.constant 0 : index
    %c0_66 = arith.constant 0 : index
    %161 = vector.load %arg17[%c0_65, %c0_66] : memref<1x128xf32, #tpu.memory_space<vmem>>, vector<1x128xf32>
    %162 = vector.broadcast %161 : vector<1x128xf32> to vector<64x128xf32>
    %163 = arith.addf %160, %162 : vector<64x128xf32>
    %164 = arith.addf %114, %163 : vector<64x128xf32>
    %c0_67 = arith.constant 0 : index
    %c0_68 = arith.constant 0 : index
    %c0_69 = arith.constant 0 : index
    %165 = vector.load %arg18[%c0_67, %c0_68, %c0_69] : memref<1x64x128xf32, #tpu.memory_space<vmem>>, vector<1x64x128xf32>
    %166 = vector.shape_cast %165 : vector<1x64x128xf32> to vector<64x128xf32>
    %167 = vector.shape_cast %164 : vector<64x128xf32> to vector<1x64x128xf32>
    tpu.vector_store %arg18[%c0_67, %c0_68, %c0_69], %167 {strides = array<i32>} : memref<1x64x128xf32, #tpu.memory_space<vmem>>, vector<1x64x128xf32>,
    return
  }
  func.func @transform_0(%arg0: i32, %arg1: i32) -> (i32, i32, i32) {
    %c0_i32 = arith.constant 0 : i32
    %c0_i32_0 = arith.constant 0 : i32
    %c0_i32_1 = arith.constant 0 : i32
    return %arg0, %c0_i32, %c0_i32_0 : i32, i32, i32
  }
  func.func @transform_1(%arg0: i32, %arg1: i32) -> (i32, i32, i32) {
    %c0_i32 = arith.constant 0 : i32
    %c0_i32_0 = arith.constant 0 : i32
    return %arg0, %arg1, %c0_i32 : i32, i32, i32
  }
  func.func @transform_2(%arg0: i32, %arg1: i32) -> (i32, i32) {
    %c0_i32 = arith.constant 0 : i32
    %c0_i32_0 = arith.constant 0 : i32
    %c0_i32_1 = arith.constant 0 : i32
    return %c0_i32, %c0_i32_0 : i32, i32
  }
  func.func @transform_3(%arg0: i32, %arg1: i32) -> (i32, i32) {
    %c0_i32 = arith.constant 0 : i32
    %c0_i32_0 = arith.constant 0 : i32
    %c0_i32_1 = arith.constant 0 : i32
    return %c0_i32, %c0_i32_0 : i32, i32
  }
  func.func @transform_4(%arg0: i32, %arg1: i32) -> (i32, i32) {
    %c0_i32 = arith.constant 0 : i32
    %c0_i32_0 = arith.constant 0 : i32
    %c0_i32_1 = arith.constant 0 : i32
    return %c0_i32, %c0_i32_0 : i32, i32
  }
  func.func @transform_5(%arg0: i32, %arg1: i32) -> (i32, i32) {
    %c0_i32 = arith.constant 0 : i32
    %c0_i32_0 = arith.constant 0 : i32
    %c0_i32_1 = arith.constant 0 : i32
    return %c0_i32, %c0_i32_0 : i32, i32
  }
  func.func @transform_6(%arg0: i32, %arg1: i32) -> (i32, i32) {
    %c0_i32 = arith.constant 0 : i32
    %c0_i32_0 = arith.constant 0 : i32
    %c0_i32_1 = arith.constant 0 : i32
    return %c0_i32, %c0_i32_0 : i32, i32
  }
  func.func @transform_7(%arg0: i32, %arg1: i32) -> (i32, i32) {
    %c0_i32 = arith.constant 0 : i32
    %c0_i32_0 = arith.constant 0 : i32
    %c0_i32_1 = arith.constant 0 : i32
    return %c0_i32, %c0_i32_0 : i32, i32
  }
  func.func @transform_8(%arg0: i32, %arg1: i32) -> (i32, i32) {
    %c0_i32 = arith.constant 0 : i32
    %c0_i32_0 = arith.constant 0 : i32
    %c0_i32_1 = arith.constant 0 : i32
    return %c0_i32, %c0_i32_0 : i32, i32
  }
  func.func @transform_9(%arg0: i32, %arg1: i32) -> (i32, i32) {
    %c0_i32 = arith.constant 0 : i32
    %c0_i32_0 = arith.constant 0 : i32
    %c0_i32_1 = arith.constant 0 : i32
    return %c0_i32, %c0_i32_0 : i32, i32
  }
  func.func @transform_10(%arg0: i32, %arg1: i32) -> (i32, i32) {
    %c0_i32 = arith.constant 0 : i32
    %c0_i32_0 = arith.constant 0 : i32
    %c0_i32_1 = arith.constant 0 : i32
    return %c0_i32, %c0_i32_0 : i32, i32
  }
  func.func @transform_11(%arg0: i32, %arg1: i32) -> (i32, i32) {
    %c0_i32 = arith.constant 0 : i32
    %c0_i32_0 = arith.constant 0 : i32
    %c0_i32_1 = arith.constant 0 : i32
    return %c0_i32, %c0_i32_0 : i32, i32
  }
  func.func @transform_12(%arg0: i32, %arg1: i32) -> (i32, i32) {
    %c0_i32 = arith.constant 0 : i32
    %c0_i32_0 = arith.constant 0 : i32
    %c0_i32_1 = arith.constant 0 : i32
    return %c0_i32, %c0_i32_0 : i32, i32
  }
  func.func @transform_13(%arg0: i32, %arg1: i32) -> (i32, i32) {
    %c0_i32 = arith.constant 0 : i32
    %c0_i32_0 = arith.constant 0 : i32
    %c0_i32_1 = arith.constant 0 : i32
    return %c0_i32, %c0_i32_0 : i32, i32
  }
  func.func @transform_14(%arg0: i32, %arg1: i32) -> (i32, i32) {
    %c0_i32 = arith.constant 0 : i32
    %c0_i32_0 = arith.constant 0 : i32
    %c0_i32_1 = arith.constant 0 : i32
    return %c0_i32, %c0_i32_0 : i32, i32
  }
  func.func @transform_15(%arg0: i32, %arg1: i32) -> (i32, i32) {
    %c0_i32 = arith.constant 0 : i32
    %c0_i32_0 = arith.constant 0 : i32
    %c0_i32_1 = arith.constant 0 : i32
    return %c0_i32, %c0_i32_0 : i32, i32
  }
  func.func @transform_16(%arg0: i32, %arg1: i32) -> (i32, i32, i32) {
    %c0_i32 = arith.constant 0 : i32
    %c0_i32_0 = arith.constant 0 : i32
    return %arg0, %arg1, %c0_i32 : i32, i32, i32
  }
}

</mosaic_0001>

<bundles_post_ra>
// kernel: tpu_custom_call.1
= control target key start
LH: loop header
LB: loop body
LE: loop exit
PB: predicated region body
PF: predicated region fallthrough
CT: control target
= control target key end

     0   :  { %s6170_s0 = inlined_call_operand.hbm [shape: f32[2,64,128], index: 0, kind: input, shape index: {}]   ;;  %s6171_s1 = inlined_call_operand.hbm [shape: f32[2,64,128], index: 1, kind: input, shape index: {}]   ;;  %s6172_s2 = inlined_call_operand.vmem [shape: f32[1,128], index: 2, kind: input, shape index: {}]   ;;  %s6173_s3 = inlined_call_operand.vmem [shape: f32[1,128], index: 3, kind: input, shape index: {}]   ;;  %s6174_s4 = inlined_call_operand.hbm [shape: bf16[128,128], index: 4, kind: input, shape index: {}]   ;;  %s6175_s5 = inlined_call_operand.vmem [shape: f32[1,128], index: 5, kind: input, shape index: {}]   ;;  %s6176_s6 = inlined_call_operand.hbm [shape: bf16[128,256], index: 6, kind: input, shape index: {}]   ;;  %s6177_s7 = inlined_call_operand.vmem [shape: f32[1,256], index: 7, kind: input, shape index: {}]   ;;  %s6178_s8 = inlined_call_operand.hbm [shape: bf16[128,128], index: 8, kind: input, shape index: {}]   ;;  %s6179_s9 = inlined_call_operand.vmem [shape: f32[1,128], index: 9, kind: input, shape index: {}]   ;;  %s6180_s10 = inlined_call_operand.vmem [shape: f32[1,128], index: 10, kind: input, shape index: {}]   ;;  %s6181_s11 = inlined_call_operand.vmem [shape: f32[1,128], index: 11, kind: input, shape index: {}]   ;;  %s6182_s12 = inlined_call_operand.hbm [shape: bf16[128,256], index: 12, kind: input, shape index: {}]   ;;  %s6183_s13 = inlined_call_operand.vmem [shape: f32[1,256], index: 13, kind: input, shape index: {}]   ;;  %s6184_s14 = inlined_call_operand.hbm [shape: bf16[256,128], index: 14, kind: input, shape index: {}]   ;;  %s6185_s15 = inlined_call_operand.vmem [shape: f32[1,128], index: 15, kind: input, shape index: {}]   ;;  %s6186_s16 = inlined_call_operand.hbm [shape: f32[2,64,128], index: 16, kind: output, shape index: {}]  }
   0x1   :  { %6206 = sst [smem:[#allocation25_spill]] %s6170_s0 }
   0x2   :  { %6207 = sst [smem:[#allocation26_spill]] %s6174_s4 }
   0x3   :  { %6208 = sst [smem:[#allocation27_spill]] %s6175_s5 }
   0x4   :  { %6209 = sst [smem:[#allocation28_spill]] %s6176_s6 }
   0x5   :  { %6210 = sst [smem:[#allocation29_spill]] %s6178_s8 }
   0x6   :  { %6211 = sst [smem:[#allocation30_spill]] %s6179_s9 }
   0x7   :  { %6212 = sst [smem:[#allocation31_spill]] %s6180_s10 }
   0x8   :  { %6213 = sst [smem:[#allocation32_spill]] %s6181_s11 }
   0x9   :  { %6214 = sst [smem:[#allocation33_spill]] %s6182_s12 }
   0xa   :  { %6215 = sst [smem:[#allocation34_spill]] %s6183_s13 }
   0xb   :  { %6216 = sst [smem:[#allocation35_spill]] %s6184_s14 }
   0xc   :  { %6217 = sst [smem:[#allocation36_spill]] %s6185_s15 }
   0xd   :  { %6218 = sst [smem:[#allocation37_spill]] %s6186_s16 }
   0xe   :  { %21 = vsyncpa [#allocation5], 0 }
   0xf   :  { %23 = vsyncpa [#allocation5 + $0x1], 0 }
  0x10   :  { %24 = vsyncpa [#allocation8], 0 }
  0x11   :  { %26 = vsyncpa [#allocation8 + $0x1], 0 }
  0x12   :  { %27 = vsyncpa [#allocation11], 0 }
  0x13   :  { %28 = vsyncpa [#allocation14], 0 }
  0x14   :  { %29 = vsyncpa [#allocation6], 0 }
  0x15   :  { %31 = vsyncpa [#allocation6 + $0x1], 0  ;;  %s4771_s21 = smov 0   ;;  %s4773_s22 = smov 0  }
  0x16   :  { %s4775_s23 = smov 0   ;;  %s4777_s24 = smov 0  }
  0x17   :  { %s4779_s25 = smov 0   ;;  %s4781_s26 = smov 0  }
  0x18 LB: > { %6219 = sst [smem:[#allocation23_spill]] %s4658_s24  ;;  %s4802_s27 = sadd.s32 4294967295, %s4666_s26   ;;  %s4666_s26 = sphi %s4781_s26, %s37_s26   ;;  %s4662_s25 = sphi %s4779_s25, %s6267_s25   ;;  %s4658_s24 = sphi %s4777_s24, %s6266_s24   ;;  %s4654_s23 = sphi %s4775_s23, %s6265_s23   ;;  %s4650_s22 = sphi %s4773_s22, %s6264_s22   ;;  %s4646_s21 = sphi %s4771_s21, %s6263_s21  }
  0x19   : > { %p3489_p0 = scmp.ge.s32.totalorder %s4666_s26, 1  ;;  %p6193_p1 = scmp.eq.s32.totalorder %s4802_s27, 0 }
  0x1a   : > { %p430_p2 = scmp.lt.s32.totalorder %s4666_s26, 3  ;;  %s4668_s29 = smov [#allocation9]  }
  0x1b   : > { %s448_s30 = sshll.u32 %s4668_s29, 4  ;;  %s4669_s17 = smov [#allocation10]   ;;  %s4811_s30 = int_to_ptr.vmem [resolvable:$true] %s448_s30 }
  0x1c   : > { %p4807_p3 = pnand %p3489_p0, %p430_p2  ;;  %s464_s18 = sshll.u32 %s4669_s17, 4  ;;  %s4822_s18 = int_to_ptr.vmem [resolvable:$true] %s464_s18 }
  0x1d   : > { %s6222_s4 = sld [smem:[#allocation26_spill]] }
  0x1e   : > { %s6220_s28 = scalar_select %p4807_p3, 1, 0 }
  0x1f   : > { %p3970_p4 = pneg %p4807_p3 }
  0x21   : > { %p4818_p6 = pnand %p3970_p4, %p6193_p1 }
  0x23   : > { %s4368_s16 = scalar_lea.hbm %s6222_s4, 1024  ;;  %p4832_p8 = pneg %p4818_p6 }
  0x24   : > { %p4369_p7 = scmp.ne.s32.totalorder %s6222_s4, %s4368_s16  ;;  %p4375_p11 = scmp.lt.u32.totalorder %s4368_s16, %s6222_s4 }
  0x26   : > { %p4371_p9 = pnand %p4832_p8, %p4369_p7 }
  0x28   : > { %p4372_p10 = pneg %p4371_p9 }
  0x2a   : > { %p4377_p12 = pnand %p4375_p11, %p4372_p10 }
  0x2c   : > { %4380 = shalt.err (!%p4377_p12)
}
  0x2d   : > { %s4381_s24 = scalar_lea.vmem %s4811_s30, 1024  ;;  %p4389_p4 = scmp.lt.s32.totalorder %s4811_s30, %s4811_s30 }
  0x2e   : > { %p4382_p13 = scmp.ne.s32.totalorder %s4811_s30, %s4381_s24  ;;  %p4390_p5 = scmp.lt.s32.totalorder %s4381_s24, %s4381_s24 }
  0x30   : > { %p4384_p0 = pnand %p4382_p13, %p4832_p8  ;;  %p4391_p7 = por %p4390_p5, %p4389_p4 }
  0x32   : > { %p4385_p2 = pneg %p4384_p0 }
  0x34   : > { %p4392_p9 = pnand %p4391_p7, %p4385_p2 }
  0x36   : > { %4395 = shalt.err (!%p4392_p9)
}
  0x37   : > { %s6189_s19 = smov 64   ;;  %s6191_s13 = smov 4  }
  0x38   : > { %3973 = dma.hbm_to_vmem [thread:$0]  (!%p4818_p6), %s6222_s4, 1024, %s4811_s30, [#allocation8], %s6189_s19, %s6189_s19, %s6191_s13  }
  0x39   : > { %s6224_s6 = sld [smem:[#allocation28_spill]] }
  0x3f   : > { %s4396_s24 = scalar_lea.hbm %s6224_s6, 2048 }
  0x40   : > { %p4397_p5 = scmp.ne.s32.totalorder %s6224_s6, %s4396_s24  ;;  %p4403_p12 = scmp.lt.u32.totalorder %s4396_s24, %s6224_s6 }
  0x42   : > { %p4399_p10 = pnand %p4397_p5, %p4832_p8 }
  0x44   : > { %p4400_p11 = pneg %p4399_p10 }
  0x46   : > { %p4405_p13 = pnand %p4403_p12, %p4400_p11 }
  0x48   : > { %4408 = shalt.err (!%p4405_p13)
}
  0x49   : > { %s4409_s30 = scalar_lea.vmem %s4822_s18, 2048  ;;  %p4417_p7 = scmp.lt.s32.totalorder %s4822_s18, %s4822_s18 }
  0x4a   : > { %p4410_p0 = scmp.ne.s32.totalorder %s4822_s18, %s4409_s30  ;;  %p4418_p9 = scmp.lt.s32.totalorder %s4409_s30, %s4409_s30 }
  0x4c   : > { %p4412_p2 = pnand %p4410_p0, %p4832_p8  ;;  %p4419_p5 = por %p4418_p9, %p4417_p7 }
  0x4e   : > { %p4413_p4 = pneg %p4412_p2 }
  0x50   : > { %p4420_p10 = pnand %p4419_p5, %p4413_p4 }
  0x52   : > { %4423 = shalt.err (!%p4420_p10)
}
  0x53   : > { %s6195_s10 = smov 128   ;;  %s6197_s5 = smov 8  }
  0x54   : > { %3976 = dma.hbm_to_vmem [thread:$0]  (!%p4818_p6), %s6224_s6, 2048, %s4822_s18, [#allocation11], %s6195_s10, %s6195_s10, %s6197_s5  }
  0x55   : > { %s4674_s16 = smov [#allocation13]   ;;  %s4675_s29 = smov [#allocation12]  }
  0x56   : > { %s502_s20 = sshll.u32 %s4674_s16, 4  ;;  %s480_s17 = sshll.u32 %s4675_s29, 4  ;;  %s503_s20 = int_to_ptr.vmem [resolvable:$true] %s502_s20  ;;  %s4882_s17 = int_to_ptr.vmem [resolvable:$true] %s480_s17 }
  0x57   : > { %s6225_s12 = sld [smem:[#allocation33_spill]] }
  0x5d   : > { %s4424_s19 = scalar_lea.hbm %s6225_s12, 2048 }
  0x5e   : > { %p4425_p11 = scmp.ne.s32.totalorder %s6225_s12, %s4424_s19  ;;  %p4431_p0 = scmp.lt.u32.totalorder %s4424_s19, %s6225_s12 }
  0x60   : > { %p4427_p12 = pnand %p4425_p11, %p4832_p8 }
  0x62   : > { %p4428_p13 = pneg %p4427_p12 }
  0x64   : > { %p4433_p2 = pnand %p4431_p0, %p4428_p13 }
  0x66   : > { %4436 = shalt.err (!%p4433_p2)
}
  0x67   : > { %s4437_s11 = scalar_lea.vmem %s503_s20, 2048  ;;  %p4445_p5 = scmp.lt.s32.totalorder %s503_s20, %s503_s20 }
  0x68   : > { %p4438_p4 = scmp.ne.s32.totalorder %s503_s20, %s4437_s11  ;;  %p4446_p10 = scmp.lt.s32.totalorder %s4437_s11, %s4437_s11 }
  0x6a   : > { %p4440_p7 = pnand %p4438_p4, %p4832_p8  ;;  %p4447_p1 = por %p4446_p10, %p4445_p5 }
  0x6c   : > { %p4441_p9 = pneg %p4440_p7 }
  0x6e   : > { %p4448_p3 = pnand %p4447_p1, %p4441_p9 }
  0x70   : > { %4451 = shalt.err (!%p4448_p3)
}
  0x71   : > { %3982 = dma.hbm_to_vmem [thread:$0]  (!%p4818_p6), %s6225_s12, 2048, %s503_s20, [#allocation14], %s6195_s10, %s6195_s10, %s6197_s5  }
  0x72   : > { %s6226_s8 = sld [smem:[#allocation29_spill]] }
  0x78   : > { %s4452_s29 = scalar_lea.hbm %s6226_s8, 1024 }
  0x79   : > { %p4453_p11 = scmp.ne.s32.totalorder %s6226_s8, %s4452_s29  ;;  %p4459_p12 = scmp.lt.u32.totalorder %s4452_s29, %s6226_s8 }
  0x7b   : > { %p4455_p1 = pnand %p4453_p11, %p4832_p8 }
  0x7d   : > { %p4456_p3 = pneg %p4455_p1 }
  0x7f   : > { %p4461_p13 = pnand %p4459_p12, %p4456_p3 }
  0x81   : > { %4464 = shalt.err (!%p4461_p13)
}
  0x82   : > { %s4465_s20 = scalar_lea.vmem %s4882_s17, 1024  ;;  %p4473_p7 = scmp.lt.s32.totalorder %s4882_s17, %s4882_s17 }
  0x83   : > { %p4466_p0 = scmp.ne.s32.totalorder %s4882_s17, %s4465_s20  ;;  %p4474_p9 = scmp.lt.s32.totalorder %s4465_s20, %s4465_s20 }
  0x85   : > { %p4468_p2 = pnand %p4466_p0, %p4832_p8  ;;  %p4475_p5 = por %p4474_p9, %p4473_p7 }
  0x87   : > { %p4469_p4 = pneg %p4468_p2 }
  0x89   : > { %p4476_p10 = pnand %p4475_p5, %p4469_p4 }
  0x8b   : > { %4479 = shalt.err (!%p4476_p10)
}
  0x8c   : > { %s6227_s11 = smov 4   ;;  %s6228_s4 = smov 64  }
  0x8d   : > { %3979 = dma.hbm_to_vmem [thread:$0]  (!%p4818_p6), %s6226_s8, 1024, %s4882_s17, [#allocation11], %s6228_s4, %s6228_s4, %s6227_s11  }
  0x8e   : > { %s4676_s16 = smov [#allocation15]   ;;  %s6229_s14 = sld [smem:[#allocation35_spill]] }
  0x8f   : > { %s518_s29 = sshll.u32 %s4676_s16, 4  ;;  %s519_s29 = int_to_ptr.vmem [resolvable:$true] %s518_s29 }
  0x94   : > { %s4480_s9 = scalar_lea.hbm %s6229_s14, 2048 }
  0x95   : > { %p4481_p11 = scmp.ne.s32.totalorder %s6229_s14, %s4480_s9  ;;  %p4487_p12 = scmp.lt.u32.totalorder %s4480_s9, %s6229_s14 }
  0x97   : > { %p4483_p1 = pnand %p4481_p11, %p4832_p8 }
  0x99   : > { %p4484_p3 = pneg %p4483_p1 }
  0x9b   : > { %p4489_p13 = pnand %p4487_p12, %p4484_p3 }
  0x9d   : > { %4492 = shalt.err (!%p4489_p13)
}
  0x9e   : > { %s4493_s17 = scalar_lea.vmem %s519_s29, 2048  ;;  %p4501_p7 = scmp.lt.s32.totalorder %s519_s29, %s519_s29 }
  0x9f   : > { %p4494_p0 = scmp.ne.s32.totalorder %s519_s29, %s4493_s17  ;;  %p4502_p9 = scmp.lt.s32.totalorder %s4493_s17, %s4493_s17 }
  0xa1   : > { %p4496_p2 = pnand %p4494_p0, %p4832_p8  ;;  %p4503_p5 = por %p4502_p9, %p4501_p7 }
  0xa3   : > { %p4497_p4 = pneg %p4496_p2 }
  0xa5   : > { %p4504_p10 = pnand %p4503_p5, %p4497_p4 }
  0xa7   : > { %4507 = shalt.err (!%p4504_p10)
}
  0xa8   : > { %3985 = dma.hbm_to_vmem [thread:$0]  (!%p4818_p6), %s6229_s14, 2048, %s519_s29, [#allocation14], %s6228_s4, %s6228_s4, %s6227_s11  }
  0xa9   : > { %s3488_s15 = sadd.s32 4294967294, %s4666_s26   ;;  %s49_s0 = sadd.s32 1, %s4662_s25 }
  0xaa   : > { %s56_s19 = sadd.s32 1, %s4654_s23  ;;  %p51_p8 = scmp.ge.s32.totalorder %s49_s0, 2 }
  0xab   : > { %p63_p11 = scmp.ne.s32.totalorder %s4654_s23, %s4650_s22  ;;  %p64_p1 = scmp.eq.s32.totalorder %s4666_s26, 0 }
  0xac   : > { %p69_p3 = scmp.ne.s32.totalorder %s4650_s22, %s4646_s21  ;;  %s6269_s0 = smov (%p51_p8, %s49_s0), 0 }
  0xad   : > { %6230 = sst [smem:[#allocation24_spill]] %s6269_s0  ;;  %p4962_p12 = por %p64_p1, %p63_p11 }
  0xae   : > { %p6232_p13 = scmp.eq.s32.totalorder %s4802_s27, 0  ;;  %s53_s4 = ssub.s32 %s4662_s25, %s6269_s0 }
  0xaf   : > { %p417_p0 = scmp.eq.s32.totalorder %s4802_s27, 1  ;;  %p54_p2 = scmp.eq.s32.totalorder %s53_s4, 0 }
  0xb0   : > { %p4968_p6 = por %p6232_p13, %p69_p3  ;;  %p423_p4 = scmp.eq.s32.totalorder %s3488_s15, 1 }
  0xb1   : > { %p4975_p7 = por %p417_p0, %p63_p11  ;;  %p4002_p9 = scmp.lt.s32.totalorder %s4666_s26, 2 }
  0xb2   : > { %s4981_s29 = scalar_select %p54_p2, %s4654_s23, %s56_s19  }
  0xb3   : > { %s6234_s16 = scalar_select %p4975_p7, 1, 0 }
  0xb4   : > { %p4983_p5 = por %p423_p4, %p69_p3  ;;  %s535_s30 = sand.u32 1, %s4654_s23  }
  0xb5   : > { %s3496_s9 = sshll.u32 %s535_s30, 6  ;;  %s3621_s18 = sshll.u32 %s4662_s25, 10 }
  0xb6   : > { %s6235_s24 = scalar_select %p4983_p5, 1, 0 }
  0xb7   : > { %s6236_s10 = sld [smem:[#allocation25_spill]]  ;;  %s539_s15 = scalar_lea.vmem [#allocation4], %s3496_s9 }
  0xb8   : > { %s546_s4 = sshll.u32 %s539_s15, 4  ;;  %p4998_p10 = pnand %p4002_p9, %p4962_p12  ;;  %s4994_s4 = int_to_ptr.vmem [resolvable:$true] %s546_s4 }
  0xb9   : > { %s5005_s20 = scalar_lea.hbm %s6171_s1, %s3621_s18  ;;  %s560_s17 = scalar_lea.vmem [#allocation7], %s3496_s9 }
  0xba   : > { %s5007_s12 = sshll.u32 %s560_s17, 4  ;;  %s5009_s14 = scalar_lea.sflag [#allocation5], %s535_s30  ;;  %s5041_s12 = int_to_ptr.vmem [resolvable:$true] %s5007_s12 }
  0xbb   : > { %p4510_p11 = pneg %p4998_p10 }
  0xbd   : > { %s4992_s5 = scalar_lea.hbm %s6236_s10, %s3621_s18  ;;  %s4513_s6 = scalar_lea.hbm %s6236_s10, 2048 }
  0xbe   : > { %s4508_s15 = scalar_lea.hbm %s4992_s5, 1024  ;;  %p4514_p12 = scmp.lt.u32.totalorder %s4992_s5, %s6236_s10 }
  0xbf   : > { %p4509_p8 = scmp.ne.s32.totalorder %s4992_s5, %s4508_s15  ;;  %p4515_p13 = scmp.lt.u32.totalorder %s4513_s6, %s4508_s15 }
  0xc0   : > { %p4517_p2 = scmp.lt.u32.totalorder %s4508_s15, %s4992_s5 }
  0xc1   : > { %p4511_p1 = pnand %p4510_p11, %p4509_p8  ;;  %p4516_p0 = por %p4515_p13, %p4514_p12 }
  0xc3   : > { %p4512_p3 = pneg %p4511_p1  ;;  %p4518_p4 = por %p4517_p2, %p4516_p0 }
  0xc5   : > { %p4519_p9 = pnand %p4518_p4, %p4512_p3 }
  0xc7   : > { %4522 = shalt.err (!%p4519_p9)
}
  0xc8   : > { %s4523_s30 = scalar_lea.vmem %s4994_s4, 1024  ;;  %s4677_s0 = smov [#allocation4]  }
  0xc9   : > { %p4524_p8 = scmp.ne.s32.totalorder %s4994_s4, %s4523_s30  ;;  %s4528_s9 = sshll.u32 %s4677_s0, 4  ;;  %s4529_s9 = int_to_ptr.vmem [resolvable:$false] %s4528_s9 }
  0xca   : > { %s4530_s17 = scalar_lea.vmem %s4529_s9, 2048  ;;  %p4531_p7 = scmp.lt.s32.totalorder %s4994_s4, %s4529_s9 }
  0xcb   : > { %p4526_p1 = pnand %p4524_p8, %p4510_p11  ;;  %p4532_p12 = scmp.lt.s32.totalorder %s4530_s17, %s4523_s30 }
  0xcd   : > { %p4527_p5 = pneg %p4526_p1  ;;  %p4533_p13 = por %p4532_p12, %p4531_p7 }
  0xcf   : > { %p4534_p0 = pnand %p4533_p13, %p4527_p5 }
  0xd1   : > { %4537 = shalt.err (!%p4534_p0)
}
  0xd2   : > { %s6238_s15 = smov 8   ;;  %s6239_s13 = smov 128  }
  0xd3   : > { %3989 = dma.hbm_to_vmem [thread:$0]  (!%p4998_p10), %s4992_s5, 1024, %s4994_s4, %s5009_s14, %s6239_s13, %s6239_s13, %s6238_s15  }
  0xd4   : > { %s556_s6 = sand.u32 1, %s4666_s26   ;;  %s4538_s18 = scalar_lea.hbm %s5005_s20, 1024 }
  0xd5   : > { %s5044_s8 = scalar_lea.sflag [#allocation8], %s556_s6  ;;  %p4539_p7 = scmp.ne.s32.totalorder %s5005_s20, %s4538_s18 }
  0xd6   : > { %s4543_s9 = scalar_lea.hbm %s6171_s1, 2048  ;;  %p4544_p2 = scmp.lt.u32.totalorder %s5005_s20, %s6171_s1 }
  0xd7   : > { %p4541_p5 = pnand %p4539_p7, %p4510_p11  ;;  %p4545_p4 = scmp.lt.u32.totalorder %s4543_s9, %s4538_s18 }
  0xd8   : > { %p4547_p8 = scmp.lt.u32.totalorder %s4538_s18, %s5005_s20 }
  0xd9   : > { %p4542_p3 = pneg %p4541_p5  ;;  %p4546_p9 = por %p4545_p4, %p4544_p2 }
  0xdb   : > { %p4548_p1 = por %p4547_p8, %p4546_p9 }
  0xdd   : > { %p4549_p12 = pnand %p4548_p1, %p4542_p3 }
  0xdf   : > { %4552 = shalt.err (!%p4549_p12)
}
  0xe0   : > { %s4553_s14 = scalar_lea.vmem %s5041_s12, 1024  ;;  %s4678_s5 = smov [#allocation7]  }
  0xe1   : > { %p4554_p13 = scmp.ne.s32.totalorder %s5041_s12, %s4553_s14  ;;  %s4558_s4 = sshll.u32 %s4678_s5, 4  ;;  %s4559_s4 = int_to_ptr.vmem [resolvable:$false] %s4558_s4 }
  0xe2   : > { %s4560_s10 = scalar_lea.vmem %s4559_s4, 2048  ;;  %p4561_p5 = scmp.lt.s32.totalorder %s5041_s12, %s4559_s4 }
  0xe3   : > { %p4556_p0 = pnand %p4554_p13, %p4510_p11  ;;  %p4562_p2 = scmp.lt.s32.totalorder %s4560_s10, %s4553_s14 }
  0xe5   : > { %p4557_p7 = pneg %p4556_p0  ;;  %p4563_p4 = por %p4562_p2, %p4561_p5 }
  0xe7   : > { %p4564_p9 = pnand %p4563_p4, %p4557_p7 }
  0xe9   : > { %4567 = shalt.err (!%p4564_p9)
}
  0xea   : > { %3992 = dma.hbm_to_vmem [thread:$0]  (!%p4998_p10), %s5005_s20, 1024, %s5041_s12, %s5044_s8, %s6239_s13, %s6239_s13, %s6238_s15  }
  0xeb   : > { %p6240_p11 = scmp.ne.s32.totalorder %s6220_s28, 0 }
  0xec   : > { %s5076_s6 = sand.u32 (!%p6240_p11), 1, %s4650_s22  }
  0xed   : > { %581 = sbr.rel (%p6240_p11) target bundleno = 4176 (0x1050), region = 84  ;;  %s5079_s18 = sshll.u32 (!%p6240_p11), %s5076_s6, 6 }
  0xee   : > { %s584_s19 = scalar_lea.sflag (!%p6240_p11), [#allocation5], %s5076_s6  ;;  %s587_s30 = scalar_lea.vmem (!%p6240_p11), [#allocation4], %s5079_s18 }
  0xf4   : > { %4621 = dma.done.wait (%p4968_p6), %s584_s19, 1024  }
  0xf5   : > { %4623 = vsyncadd (%p4968_p6), %s584_s19, 4294966272  ;;  %s592_s12 = sand.u32 1, %s4802_s27   ;;  %s5089_s20 = scalar_lea.vmem [#allocation7], %s5079_s18 }
  0xf6   : > { %s593_s28 = scalar_lea.sflag [#allocation8], %s592_s12 }
  0xf7   : > { %4625 = dma.done.wait (%p4968_p6), %s593_s28, 1024  }
  0xf8   : > { %4627 = vsyncadd (%p4968_p6), %s593_s28, 4294966272  ;;  %p6241_p10 = scmp.eq.s32.totalorder %s4802_s27, 0 }
  0xfa   : > { %4629 = dma.done.wait (%p6241_p10), [#allocation8], 1024   ;;  %p6242_p3 = pmov %p6241_p10 }
  0xfc   : > { %4631 = vsyncadd (%p6242_p3), [#allocation8], 4294966272  ;;  %p6243_p8 = pmov %p6242_p3 }
  0xfd   : > { %p6244_p1 = pmov %p6242_p3 }
  0xfe   : > { %4633 = dma.done.wait (%p6243_p8), [#allocation11], 3072  }
  0xff   : > { %4635 = vsyncadd (%p6244_p1), [#allocation11], 4294964224  ;;  %p6245_p12 = pmov %p6244_p1 }
 0x100   : > { %p6246_p13 = pmov %p6244_p1 }
 0x101   : > { %4637 = dma.done.wait (%p6245_p12), [#allocation14], 4096  }
 0x102   : > { %4639 = vsyncadd (%p6246_p13), [#allocation14], 4294963200  ;;  %v677_v0 = vld [vmem:[%s587_s30] sm:$0xff]  ;;  %v679_v1 = vld [vmem:[%s587_s30 + $0x10] sm:$0xff]  ;;  %vm1284_vm0 = vcmask 261120   ;;  %s6247_s14 = sld [smem:[#allocation27_spill]] }
 0x103   : > { %687 = vadd.xlane.f32.xlu0 %v677_v0  ;;  %691 = vadd.xlane.f32.xlu1 %v679_v1  ;;  %v678_v2 = vld [vmem:[%s587_s30 + $0x8] sm:$0xff]  ;;  %v680_v3 = vld [vmem:[%s587_s30 + $0x18] sm:$0xff]  ;;  %v681_v4 = vld [vmem:[%s587_s30 + $0x20] sm:$0xff]  ;;  %vm1374_vm1 = vcmask 523264   ;;  %s4680_s5 = smov 96   ;;  %s4681_s4 = smov 64  }
 0x104   : > { %v682_v5 = vld [vmem:[%s587_s30 + $0x28] sm:$0xff]  ;;  %v683_v6 = vld [vmem:[%s587_s30 + $0x30] sm:$0xff]  ;;  %v684_v7 = vld [vmem:[%s587_s30 + $0x38] sm:$0xff]  ;;  %s4682_s10 = smov 32   ;;  %vm2486_vm2 = vcmask 785408   ;;  %s6249_s12 = sld [smem:[#allocation30_spill]] }
 0x105   : > { %v5108_v8 = vld [vmem:[%s5089_s20] sm:$0xff]  ;;  %v5111_v9 = vld [vmem:[%s5089_s20 + $0x8] sm:$0xff]  ;;  %v5114_v10 = vld [vmem:[%s5089_s20 + $0x10] sm:$0xff]  ;;  %s6250_s27 = sld [smem:[#allocation31_spill]]  ;;  %s6251_s13 = sld [smem:[#allocation32_spill]] }
 0x106   : > { %v5117_v11 = vld [vmem:[%s5089_s20 + $0x18] sm:$0xff]  ;;  %v5122_v12 = vld [vmem:[%s5089_s20 + $0x20] sm:$0xff]  ;;  %v5125_v13 = vld [vmem:[%s5089_s20 + $0x28] sm:$0xff]  ;;  %s6253_s9 = sld [smem:[#allocation34_spill]]  ;;  %s6258_s28 = sld [smem:[#allocation37_spill]] }
 0x107   : > { %689 = vadd.xlane.f32.xlu0 %v678_v2  ;;  %693 = vadd.xlane.f32.xlu1 %v680_v3  ;;  %v5130_v14 = vld [vmem:[%s5089_s20 + $0x30] sm:$0xff]  ;;  %v5133_v15 = vld [vmem:[%s5089_s20 + $0x38] sm:$0xff]  ;;  %v4072_v16 = vld [vmem:[#allocation10 + $0x4] ss:$8 sps:$4 sm:$0xff]   ;;  %p6259_p0 = scmp.ne.s32.totalorder %s6234_s16, 0  ;;  %s4683_s15 = smov [#allocation16]  }
 0x108   : > { %v4074_v17 = vld [vmem:[#allocation10] ss:$8 sps:$4 sm:$0xff]   ;;  %v4075_v18 = vld [vmem:[#allocation10 + $0x14] ss:$8 sps:$4 sm:$0xff]   ;;  %916 = vmatprep.subr.bf16.mxu0 %v4072_v16  ;;  %v4077_v57 = vld [vmem:[#allocation10 + $0x10] ss:$8 sps:$4 sm:$0xff]  }
 0x109   : > { %917 = vmatpush1.bf16.msra.mxu0 %v4074_v17  ;;  %v4078_v63 = vld [vmem:[#allocation10 + $0x24] ss:$8 sps:$4 sm:$0xff]   ;;  %v4081_v16 = vld [vmem:[#allocation10 + $0x34] ss:$8 sps:$4 sm:$0xff]  }
 0x10a   : > { %918 = vmatprep.subr.bf16.mxu0 %v4075_v18 }
 0x10b   : > { %695 = vadd.xlane.f32.xlu0 %v681_v4  ;;  %697 = vadd.xlane.f32.xlu1 %v682_v5 }
 0x10d   : > { %919 = vmatpush1.bf16.msra.mxu0 %v4077_v57 }
 0x10e   : > { %920 = vmatprep.subr.bf16.mxu0 %v4078_v63 }
 0x10f   : > { %699 = vadd.xlane.f32.xlu0 %v683_v6  ;;  %701 = vadd.xlane.f32.xlu1 %v684_v7 }
 0x113   : > { %1015 = vadd.xlane.f32.xlu0 %v5108_v8  ;;  %1017 = vadd.xlane.f32.xlu1 %v5111_v9 }
 0x117   : > { %1019 = vadd.xlane.f32.xlu0 %v5114_v10  ;;  %1021 = vadd.xlane.f32.xlu1 %v5117_v11 }
 0x11b   : > { %1023 = vadd.xlane.f32.xlu0 %v5122_v12  ;;  %1025 = vadd.xlane.f32.xlu1 %v5125_v13 }
 0x11f   : > { %1027 = vadd.xlane.f32.xlu0 %v5130_v14  ;;  %1029 = vadd.xlane.f32.xlu1 %v5133_v15 }
 0x190   : > { %v688_v19 = vpop.xlane.xlu0 %687  ;;  %v692_v20 = vpop.xlane.xlu1 %691 }
 0x191   : > { %v704_v21 = vmul.f32 0.0078125, %v688_v19  ;;  %v706_v22 = vmul.f32 0.0078125, %v692_v20  ;;  %v4083_v19 = vld [vmem:[#allocation10 + $0x30] ss:$8 sps:$4 sm:$0xff]  }
 0x193   : > { %v5139_v23 = vsub.f32 %v677_v0, %v704_v21  ;;  %v5141_v24 = vsub.f32 %v679_v1, %v706_v22 }
 0x194   : > { %v690_v25 = vpop.xlane.xlu0 %689  ;;  %v694_v26 = vpop.xlane.xlu1 %693 }
 0x195   : > { %v705_v27 = vmul.f32 0.0078125, %v690_v25  ;;  %v720_v28 = vmul.f32 %v5139_v23, %v5139_v23  ;;  %v707_v29 = vmul.f32 0.0078125, %v694_v26  ;;  %v722_v30 = vmul.f32 %v5141_v24, %v5141_v24  ;;  %v4084_v26 = vld [vmem:[#allocation10 + $0x44] ss:$8 sps:$4 sm:$0xff]  }
 0x197   : > { %728 = vadd.xlane.f32.xlu0 %v720_v28  ;;  %v5147_v31 = vsub.f32 %v678_v2, %v705_v27  ;;  %v5149_v32 = vsub.f32 %v680_v3, %v707_v29  ;;  %v4086_v27 = vld [vmem:[#allocation10 + $0x40] ss:$8 sps:$4 sm:$0xff]  }
 0x198   : > { %v696_v33 = vpop.xlane.xlu0 %695  ;;  %v698_v34 = vpop.xlane.xlu1 %697 }
 0x199   : > { %v708_v35 = vmul.f32 0.0078125, %v696_v33  ;;  %v721_v36 = vmul.f32 %v5147_v31, %v5147_v31  ;;  %v709_v37 = vmul.f32 0.0078125, %v698_v34  ;;  %v723_v38 = vmul.f32 %v5149_v32, %v5149_v32  ;;  %v4089_v33 = vld [vmem:[#allocation9] sm:$0xff]   ;;  %v4090_v34 = vld [vmem:[#allocation10 + $0x50] ss:$8 sps:$4 sm:$0xff]  }
 0x19a   : > { %3752 = vmatprep.subr.bf16.mxu1 %v4089_v33 }
 0x19b   : > { %732 = vadd.xlane.f32.xlu0 %v722_v30  ;;  %730 = vadd.xlane.f32.xlu1 %v721_v36  ;;  %v5155_v39 = vsub.f32 %v681_v4, %v708_v35  ;;  %v5157_v40 = vsub.f32 %v682_v5, %v709_v37  ;;  %v4080_v5 = vld [vmem:[#allocation10 + $0x20] ss:$8 sps:$4 sm:$0xff]   ;;  %v4087_v30 = vld [vmem:[#allocation10 + $0x54] ss:$8 sps:$4 sm:$0xff]  }
 0x19c   : > { %v700_v41 = vpop.xlane.xlu0 %699  ;;  %v702_v42 = vpop.xlane.xlu1 %701  ;;  %921 = vmatpush1.bf16.msra.mxu0 %v4080_v5  ;;  %3753 = vmatpush3.bf16.msra.mxu1 %v4089_v33  ;;  %v4094_v35 = vld [vmem:[#allocation10 + $0x60] ss:$8 sps:$4 sm:$0xff]   ;;  %v4095_v36 = vld [vmem:[#allocation10 + $0x74] ss:$8 sps:$4 sm:$0xff]  }
 0x19d   : > { %v710_v43 = vmul.f32 0.0078125, %v700_v41  ;;  %v724_v44 = vmul.f32 %v5155_v39, %v5155_v39  ;;  %v711_v45 = vmul.f32 0.0078125, %v702_v42  ;;  %v725_v46 = vmul.f32 %v5157_v40, %v5157_v40  ;;  %922 = vmatprep.subr.bf16.mxu0 %v4081_v16  ;;  %v4097_v37 = vld [vmem:[#allocation9 + $0x10] sm:$0xff]   ;;  %v4099_v41 = vld [vmem:[#allocation9 + $0x18] sm:$0xff]   ;;  %v5222_v33 = vld [vmem:[%s6173_s3] ss:$0 sm:$0xff] }
 0x19e   : > { %v6204_v42 = vmov 0  }
 0x19f   : > { %734 = vadd.xlane.f32.xlu1 %v723_v38  ;;  %736 = vadd.xlane.f32.xlu0 %v724_v44  ;;  %v5163_v47 = vsub.f32 %v683_v6, %v710_v43  ;;  %v5165_v48 = vsub.f32 %v684_v7, %v711_v45  ;;  %v4098_v38 = vld [vmem:[#allocation10 + $0x70] ss:$8 sps:$4 sm:$0xff]   ;;  %v4100_v43 = vld [vmem:[#allocation9 + $0x20] sm:$0xff]   ;;  %v4101_v44 = vld [vmem:[#allocation9 + $0x28] sm:$0xff]  }
 0x1a0   : > { %v1016_v49 = vpop.xlane.xlu0 %1015  ;;  %v1018_v50 = vpop.xlane.xlu1 %1017  ;;  %923 = vmatpush1.bf16.msra.mxu0 %v4083_v19  ;;  %948 = vmatprep.mubr.bf16.mxu0 %v6204_v42  ;;  %v4102_v45 = vld [vmem:[#allocation9 + $0x30] sm:$0xff]  }
 0x1a1   : > { %v1032_v51 = vmul.f32 0.0078125, %v1016_v49  ;;  %v726_v52 = vmul.f32 %v5163_v47, %v5163_v47  ;;  %v1033_v53 = vmul.f32 0.0078125, %v1018_v50  ;;  %v727_v54 = vmul.f32 %v5165_v48, %v5165_v48  ;;  %924 = vmatprep.subr.bf16.mxu0 %v4084_v26 }
 0x1a3   : > { %738 = vadd.xlane.f32.xlu1 %v725_v46  ;;  %740 = vadd.xlane.f32.xlu0 %v726_v52  ;;  %v5172_v55 = vsub.f32 %v5108_v8, %v1032_v51  ;;  %v5175_v56 = vsub.f32 %v5111_v9, %v1033_v53  ;;  %v4103_v46 = vld [vmem:[#allocation9 + $0x38] sm:$0xff]  }
 0x1a4   : > { %v1020_v58 = vpop.xlane.xlu0 %1019  ;;  %v1022_v59 = vpop.xlane.xlu1 %1021  ;;  %925 = vmatpush1.bf16.msra.mxu0 %v4086_v27 }
 0x1a5   : > { %v1034_v60 = vmul.f32 0.0078125, %v1020_v58  ;;  %v1048_v61 = vmul.f32 %v5172_v55, %v5172_v55  ;;  %v1035_v62 = vmul.f32 0.0078125, %v1022_v59  ;;  %v1049_v0 = vmul.f32 %v5175_v56, %v5175_v56  ;;  %926 = vmatprep.subr.bf16.mxu0 %v4087_v30 }
 0x1a7   : > { %742 = vadd.xlane.f32.xlu1 %v727_v54  ;;  %1056 = vadd.xlane.f32.xlu0 %v1048_v61  ;;  %v5182_v1 = vsub.f32 %v5114_v10, %v1034_v60  ;;  %v5185_v2 = vsub.f32 %v5117_v11, %v1035_v62 }
 0x1a8   : > { %v1024_v3 = vpop.xlane.xlu0 %1023  ;;  %v1026_v4 = vpop.xlane.xlu1 %1025  ;;  %927 = vmatpush1.bf16.msra.mxu0 %v4090_v34 }
 0x1a9   : > { %v1036_v6 = vmul.f32 0.0078125, %v1024_v3  ;;  %v1050_v7 = vmul.f32 %v5182_v1, %v5182_v1  ;;  %v1037_v8 = vmul.f32 0.0078125, %v1026_v4  ;;  %v1051_v9 = vmul.f32 %v5185_v2, %v5185_v2 }
 0x1ab   : > { %1058 = vadd.xlane.f32.xlu1 %v1049_v0  ;;  %1060 = vadd.xlane.f32.xlu0 %v1050_v7  ;;  %v5192_v10 = vsub.f32 %v5122_v12, %v1036_v6  ;;  %v5195_v11 = vsub.f32 %v5125_v13, %v1037_v8 }
 0x1ac   : > { %v1028_v17 = vpop.xlane.xlu0 %1027  ;;  %v1030_v18 = vpop.xlane.xlu1 %1029 }
 0x1ad   : > { %v1038_v20 = vmul.f32 0.0078125, %v1028_v17  ;;  %v1052_v21 = vmul.f32 %v5192_v10, %v5192_v10  ;;  %v1039_v22 = vmul.f32 0.0078125, %v1030_v18  ;;  %v1053_v12 = vmul.f32 %v5195_v11, %v5195_v11  ;;  %v5215_v18 = vld [vmem:[%s6172_s2] ss:$0 sm:$0xff] }
 0x1af   : > { %1062 = vadd.xlane.f32.xlu1 %v1051_v9  ;;  %1064 = vadd.xlane.f32.xlu0 %v1052_v21  ;;  %v5202_v25 = vsub.f32 %v5130_v14, %v1038_v20  ;;  %v5205_v13 = vsub.f32 %v5133_v15, %v1039_v22  ;;  %v4091_v14 = vld [vmem:[#allocation10 + $0x64] ss:$8 sps:$4 sm:$0xff]  }
 0x1b0   : > { %v4093_v15 = vld [vmem:[#allocation9 + $0x8] sm:$0xff]   ;;  %928 = vmatprep.subr.bf16.mxu0 %v4091_v14 }
 0x1b1   : > { %v1054_v28 = vmul.f32 %v5202_v25, %v5202_v25  ;;  %v1055_v29 = vmul.f32 %v5205_v13, %v5205_v13  ;;  %3754 = vmatprep.subr.bf16.mxu1 %v4093_v15  ;;  %929 = vmatpush1.bf16.msra.mxu0 %v4094_v35 }
 0x1b2   : > { %3755 = vmatpush3.bf16.msra.mxu1 %v4093_v15  ;;  %930 = vmatprep.subr.bf16.mxu0 %v4095_v36 }
 0x1b3   : > { %1066 = vadd.xlane.f32.xlu1 %v1053_v12  ;;  %1068 = vadd.xlane.f32.xlu0 %v1054_v28 }
 0x1b4   : > { %3756 = vmatprep.subr.bf16.mxu1 %v4097_v37 }
 0x1b5   : > { %931 = vmatpush1.bf16.msra.mxu0 %v4098_v38 }
 0x1b6   : > { %3757 = vmatpush3.bf16.msra.mxu1 %v4097_v37 }
 0x1b7   : > { %1070 = vadd.xlane.f32.xlu1 %v1055_v29  ;;  %3758 = vmatprep.subr.bf16.mxu1 %v4099_v41 }
 0x1ba   : > { %3759 = vmatpush3.bf16.msra.mxu1 %v4099_v41 }
 0x1bb   : > { %3760 = vmatprep.subr.bf16.mxu1 %v4100_v43 }
 0x1be   : > { %3761 = vmatpush3.bf16.msra.mxu1 %v4100_v43 }
 0x1bf   : > { %3762 = vmatprep.subr.bf16.mxu1 %v4101_v44 }
 0x1c2   : > { %3763 = vmatpush3.bf16.msra.mxu1 %v4101_v44 }
 0x1c3   : > { %3764 = vmatprep.subr.bf16.mxu1 %v4102_v45 }
 0x1c6   : > { %3765 = vmatpush3.bf16.msra.mxu1 %v4102_v45 }
 0x1c7   : > { %3766 = vmatprep.subr.bf16.mxu1 %v4103_v46 }
 0x1ca   : > { %3767 = vmatpush3.bf16.msra.mxu1 %v4103_v46 }
 0x224   : > { %v729_v49 = vpop.xlane.xlu0 %728 }
 0x225   : > { %v744_v50 = vmul.f32 0.0078125, %v729_v49 }
 0x227   : > { %v752_v51 = vadd.f32 1e-06, %v744_v50 }
 0x228   : > { %v731_v52 = vpop.xlane.xlu1 %730  ;;  %v733_v53 = vpop.xlane.xlu0 %732 }
 0x229   : > { %4152 = vrsqrt.f32 %v752_v51  ;;  %v745_v54 = vmul.f32 0.0078125, %v731_v52  ;;  %v746_v57 = vmul.f32 0.0078125, %v733_v53 }
 0x22b   : > { %v753_v58 = vadd.f32 1e-06, %v745_v54  ;;  %v754_v59 = vadd.f32 1e-06, %v746_v57 }
 0x22c   : > { %v735_v60 = vpop.xlane.xlu1 %734  ;;  %v737_v61 = vpop.xlane.xlu0 %736 }
 0x22d   : > { %4154 = vrsqrt.f32 %v753_v58  ;;  %v747_v62 = vmul.f32 0.0078125, %v735_v60  ;;  %v748_v0 = vmul.f32 0.0078125, %v737_v61 }
 0x22e   : > { %4156 = vrsqrt.f32 %v754_v59 }
 0x22f   : > { %v755_v63 = vadd.f32 1e-06, %v747_v62  ;;  %v756_v7 = vadd.f32 1e-06, %v748_v0 }
 0x230   : > { %v739_v3 = vpop.xlane.xlu1 %738  ;;  %v741_v4 = vpop.xlane.xlu0 %740 }
 0x231   : > { %4158 = vrsqrt.f32 %v755_v63  ;;  %v749_v5 = vmul.f32 0.0078125, %v739_v3  ;;  %v750_v9 = vmul.f32 0.0078125, %v741_v4 }
 0x233   : > { %v4153_v6 = vpop.eup %4152  ;;  %v757_v8 = vadd.f32 1e-06, %v749_v5  ;;  %v758_v12 = vadd.f32 1e-06, %v750_v9 }
 0x234   : > { %v743_v16 = vpop.xlane.xlu1 %742  ;;  %v1057_v17 = vpop.xlane.xlu0 %1056  ;;  %v768_v19 = vmul.f32 %v4153_v6, %v5139_v23 }
 0x235   : > { %4160 = vrsqrt.f32 %v757_v8  ;;  %v751_v20 = vmul.f32 0.0078125, %v743_v16  ;;  %v1072_v21 = vmul.f32 0.0078125, %v1057_v17 }
 0x236   : > { %4162 = vrsqrt.f32 %v756_v7  ;;  %v782_v27 = vmul.f32 %v5215_v18, %v768_v19 }
 0x237   : > { %v4155_v22 = vpop.eup %4154  ;;  %v1080_v26 = vadd.f32 1e-06, %v1072_v21  ;;  %v759_v28 = vadd.f32 1e-06, %v751_v20 }
 0x238   : > { %v1059_v29 = vpop.xlane.xlu1 %1058  ;;  %v1061_v30 = vpop.xlane.xlu0 %1060  ;;  %v769_v34 = vmul.f32 %v4155_v22, %v5147_v31  ;;  %v796_v41 = vadd.f32 %v5222_v33, %v782_v27 }
 0x239   : > { %v4157_v23 = vpop.eup %4156  ;;  %v1073_v14 = vmul.f32 0.0078125, %v1059_v29  ;;  %v1074_v15 = vmul.f32 0.0078125, %v1061_v30  ;;  %4164 = vrsqrt.f32 %v1080_v26 }
 0x23a   : > { %v783_v35 = vmul.f32 %v5215_v18, %v769_v34  ;;  %4166 = vrsqrt.f32 %v758_v12  ;;  %v770_v46 = vmul.f32 %v4157_v23, %v5141_v24 }
 0x23b   : > { %v4159_v36 = vpop.eup %4158  ;;  %v1081_v37 = vadd.f32 1e-06, %v1073_v14  ;;  %v1082_v38 = vadd.f32 1e-06, %v1074_v15  ;;  %4168 = vrsqrt.f32 %v759_v28 }
 0x23c   : > { %v1063_v43 = vpop.xlane.xlu1 %1062  ;;  %v1065_v44 = vpop.xlane.xlu0 %1064  ;;  %v797_v45 = vadd.f32 %v5222_v33, %v783_v35  ;;  %v771_v31 = vmul.f32 %v4159_v36, %v5149_v32  ;;  %v784_v60 = vmul.f32 %v5215_v18, %v770_v46 }
 0x23d   : > { %4170 = vrsqrt.f32 %v1081_v37  ;;  %v1075_v49 = vmul.f32 0.0078125, %v1063_v43  ;;  %v1076_v50 = vmul.f32 0.0078125, %v1065_v44 }
 0x23e   : > { %4172 = vrsqrt.f32 %v1082_v38  ;;  %v804_v51 = vpack.c.bf16 %v797_v45, %v796_v41  ;;  %v785_v52 = vmul.f32 %v5215_v18, %v771_v31  ;;  %v798_v6 = vadd.f32 %v5222_v33, %v784_v60 }
 0x23f   : > { %v4161_v53 = vpop.eup %4160  ;;  %v1083_v54 = vadd.f32 1e-06, %v1075_v49  ;;  %v1084_v57 = vadd.f32 1e-06, %v1076_v50 }
 0x240   : > { %v1067_v58 = vpop.xlane.xlu1 %1066  ;;  %949 = vmatmul.mubr.bf16.vlgmr.msra.gmra.mrb[0].mxu0 %v804_v51  ;;  %v1069_v59 = vpop.xlane.xlu0 %1068  ;;  %v799_v32 = vadd.f32 %v5222_v33, %v785_v52  ;;  %v773_v63 = vmul.f32 %v4161_v53, %v5157_v40 }
 0x241   : > { %v4163_v61 = vpop.eup %4162  ;;  %4174 = vrsqrt.f32 %v1083_v54  ;;  %v1077_v24 = vmul.f32 0.0078125, %v1067_v58  ;;  %v1078_v62 = vmul.f32 0.0078125, %v1069_v59  ;;  %958 = vmatprep.mubr.bf16.mxu0 %v6204_v42 }
 0x242   : > { %4176 = vrsqrt.f32 %v1084_v57  ;;  %v772_v7 = vmul.f32 %v4163_v61, %v5155_v39  ;;  %v805_v19 = vpack.c.bf16 %v799_v32, %v798_v6  ;;  %v787_v20 = vmul.f32 %v5215_v18, %v773_v63 }
 0x243   : > { %v1085_v0 = vadd.f32 1e-06, %v1077_v24  ;;  %v1086_v3 = vadd.f32 1e-06, %v1078_v62  ;;  %v4165_v4 = vpop.eup %4164  ;;  %v826_v32 = vlaneseq }
 0x244   : > { %v1071_v5 = vpop.xlane.xlu1 %1070  ;;  %v4167_v8 = vpop.eup %4166  ;;  %v1096_v16 = vmul.f32 %v4165_v4, %v5172_v55  ;;  %v786_v12 = vmul.f32 %v5215_v18, %v772_v7  ;;  %v801_v27 = vadd.f32 %v5222_v33, %v787_v20 }
 0x245   : > { %4178 = vrsqrt.f32 %v1085_v0  ;;  %v1079_v9 = vmul.f32 0.0078125, %v1071_v5  ;;  %v4169_v17 = vpop.eup %4168  ;;  %v774_v23 = vmul.f32 %v4167_v8, %v5163_v47  ;;  %v5273_v63 = vshrl.u32 %v826_v32, 7 }
 0x246   : > { %4180 = vrsqrt.f32 %v1086_v3  ;;  %v1110_v39 = vmul.f32 %v5215_v18, %v1096_v16  ;;  %v775_v29 = vmul.f32 %v4169_v17, %v5165_v48 }
 0x247   : > { %v4171_v21 = vpop.eup %4170  ;;  %v1087_v40 = vadd.f32 1e-06, %v1079_v9  ;;  %v788_v44 = vmul.f32 %v5215_v18, %v774_v23  ;;  %v6203_v0 = vsub.s32 0, %v5273_v63  ;;  %v6202_v3 = vsub.s32 1, %v5273_v63 }
 0x248   : > { %v4173_v22 = vpop.eup %4172  ;;  %959 = vmatmul.mubr.bf16.gmra.mrb[4].mxu0 %v805_v19  ;;  %v1097_v26 = vmul.f32 %v4171_v21, %v5175_v56  ;;  %v800_v56 = vadd.f32 %v5222_v33, %v786_v12  ;;  %v1124_v15 = vadd.f32 %v5222_v33, %v1110_v39  ;;  %v789_v41 = vmul.f32 %v5215_v18, %v775_v29 }
 0x249   : > { %4182 = vrsqrt.f32 %v1087_v40  ;;  %968 = vmatprep.mubr.bf16.mxu0 %v6204_v42  ;;  %v1098_v55 = vmul.f32 %v4173_v22, %v5182_v1  ;;  %v802_v53 = vadd.f32 %v5222_v33, %v788_v44 }
 0x24a   : > { %v1111_v28 = vmul.f32 %v5215_v18, %v1097_v26  ;;  %v806_v37 = vpack.c.bf16 %v801_v27, %v800_v56  ;;  %v803_v50 = vadd.f32 %v5222_v33, %v789_v41 }
 0x24b   : > { %v4175_v30 = vpop.eup %4174  ;;  %v1112_v34 = vmul.f32 %v5215_v18, %v1098_v55 }
 0x24c   : > { %v4177_v14 = vpop.eup %4176  ;;  %v1125_v35 = vadd.f32 %v5222_v33, %v1111_v28  ;;  %v1099_v1 = vmul.f32 %v4175_v30, %v5185_v2  ;;  %v807_v59 = vpack.c.bf16 %v803_v50, %v802_v53 }
 0x24d   : > { %v1100_v36 = vmul.f32 %v4177_v14, %v5192_v10  ;;  %v1126_v47 = vadd.f32 %v5222_v33, %v1112_v34 }
 0x24e   : > { %v1132_v38 = vpack.c.bf16 %v1125_v35, %v1124_v15  ;;  %v1113_v48 = vmul.f32 %v5215_v18, %v1099_v1 }
 0x24f   : > { %v4179_v43 = vpop.eup %4178  ;;  %v1114_v10 = vmul.f32 %v5215_v18, %v1100_v36 }
 0x250   : > { %v4181_v45 = vpop.eup %4180  ;;  %969 = vmatmul.mubr.bf16.gmra.mrb[8].mxu0 %v806_v37  ;;  %3768 = vmatprep.mubr.bf16.mxu1 %v1132_v38  ;;  %v1127_v46 = vadd.f32 %v5222_v33, %v1113_v48  ;;  %v1101_v2 = vmul.f32 %v4179_v43, %v5195_v11  ;;  %v3531_v48 = vld [vmem:[%s6247_s14] ss:$0 sm:$0xff] }
 0x251   : > { %978 = vmatprep.mubr.bf16.mxu0 %v6204_v42  ;;  %v1102_v31 = vmul.f32 %v4181_v45, %v5202_v25  ;;  %v1128_v54 = vadd.f32 %v5222_v33, %v1114_v10 }
 0x252   : > { %v1133_v49 = vpack.c.bf16 %v1127_v46, %v1126_v47  ;;  %v1115_v51 = vmul.f32 %v5215_v18, %v1101_v2 }
 0x253   : > { %v4183_v52 = vpop.eup %4182  ;;  %v1116_v58 = vmul.f32 %v5215_v18, %v1102_v31 }
 0x254   : > { %3769 = vmatmul.mubr.bf16.vlgmr.msra.gmra.mrb[0].mxu1 %v1133_v49  ;;  %v1129_v57 = vadd.f32 %v5222_v33, %v1115_v51  ;;  %v1103_v11 = vmul.f32 %v4183_v52, %v5205_v13  ;;  %v824_v13 = vld [vmem:[%s6177_s7] sm:$0x3] }
 0x255   : > { %v1130_v61 = vadd.f32 %v5222_v33, %v1116_v58 }
 0x256   : > { %v1134_v60 = vpack.c.bf16 %v1129_v57, %v1128_v54  ;;  %v1117_v25 = vmul.f32 %v5215_v18, %v1103_v11  ;;  %v5282_v18 = vrot.slane %v824_v13, %v6203_v0 }
 0x258   : > { %979 = vmatmul.mubr.bf16.gmra.mrb[12].mxu0 %v807_v59  ;;  %3772 = vmatprep.mubr.bf16.mxu1 %v1134_v60  ;;  %v1131_v24 = vadd.f32 %v5222_v33, %v1117_v25  ;;  %v5286_v33 = vrot.slane %v824_v13, %v6202_v3 }
 0x25a   : > { %v1135_v62 = vpack.c.bf16 %v1131_v24, %v1130_v61 }
 0x25c   : > { %3773 = vmatmul.mubr.bf16.gmra.mrb[4].mxu1 %v1135_v62 }
 0x313   : > { %v950_v4 = vpop.f32.mrb[0].mxu0 }
 0x314   : > { %v952_v5 = vpop.f32.mrb[1].mxu0  ;;  %v951_v7 = vadd.f32 %v950_v4, %v5282_v18 }
 0x315   : > { %v954_v6 = vpop.f32.mrb[2].mxu0  ;;  %v953_v16 = vadd.f32 %v952_v5, %v5286_v33 }
 0x316   : > { %v955_v8 = vadd.f32 %v954_v6, %v5282_v18  ;;  %v956_v9 = vpop.f32.mrb[3].mxu0 }
 0x317   : > { %v957_v17 = vadd.f32 %v956_v9, %v5286_v33 }
 0x318   : > { %v5292_v19 = vpack.c.bf16 %v955_v8, %v951_v7 }
 0x319   : > { %v5294_v20 = vpack.c.bf16 %v957_v17, %v953_v16 }
 0x31a   : > { %3928 = vmatprep.subr.msk.bf16.mxu0 %vm1284_vm0, %v5292_v19  ;;  %v1298_v21 = vsel %vm1284_vm0, %v5292_v19, 0 }
 0x31b   : > { %v960_v40 = vpop.f32.mrb[4].mxu0  ;;  %3777 = vmatpush3.bf16.xpose.msra.mxu0 %v1298_v21  ;;  %3792 = vmatprep.subr.bf16.mxu1 %v5294_v20 }
 0x31c   : > { %v962_v22 = vpop.f32.mrb[5].mxu0  ;;  %3793 = vmatpush3.bf16.msra.mxu1 %v5294_v20  ;;  %v961_v26 = vadd.f32 %v960_v40, %v5282_v18 }
 0x31d   : > { %v964_v12 = vpop.f32.mrb[6].mxu0  ;;  %v963_v27 = vadd.f32 %v962_v22, %v5286_v33 }
 0x31e   : > { %v965_v39 = vadd.f32 %v964_v12, %v5282_v18  ;;  %v966_v55 = vpop.f32.mrb[7].mxu0 }
 0x31f   : > { %v967_v28 = vadd.f32 %v966_v55, %v5286_v33 }
 0x320   : > { %v5306_v29 = vpack.c.bf16 %v965_v39, %v961_v26 }
 0x321   : > { %v5308_v30 = vpack.c.bf16 %v967_v28, %v963_v27 }
 0x322   : > { %3929 = vmatprep.subr.msk.bf16.mxu0 %vm1284_vm0, %v5306_v29  ;;  %v1301_v34 = vsel %vm1284_vm0, %v5306_v29, 0 }
 0x323   : > { %v970_v23 = vpop.f32.mrb[8].mxu0  ;;  %3779 = vmatpush3.bf16.xpose.msra.mxu0 %v1301_v34  ;;  %3794 = vmatprep.subr.bf16.mxu1 %v5308_v30 }
 0x324   : > { %v972_v14 = vpop.f32.mrb[9].mxu0  ;;  %3795 = vmatpush3.bf16.msra.mxu1 %v5308_v30  ;;  %v971_v15 = vadd.f32 %v970_v23, %v5282_v18 }
 0x325   : > { %v974_v56 = vpop.f32.mrb[10].mxu0  ;;  %v973_v36 = vadd.f32 %v972_v14, %v5286_v33 }
 0x326   : > { %v975_v35 = vadd.f32 %v974_v56, %v5282_v18  ;;  %v976_v1 = vpop.f32.mrb[11].mxu0 }
 0x327   : > { %v977_v37 = vadd.f32 %v976_v1, %v5286_v33  ;;  %v3770_v38 = vpop.f32.mrb[0].mxu1 }
 0x328   : > { %v5323_v41 = vpack.c.bf16 %v975_v35, %v971_v15  ;;  %v1241_v43 = vpop.f32.mrb[1].mxu1  ;;  %v1250_v45 = vadd.f32 %v3770_v38, %v3531_v48 }
 0x329   : > { %v5325_v47 = vpack.c.bf16 %v977_v37, %v973_v36  ;;  %v3771_v44 = vpop.f32.mrb[2].mxu1  ;;  %v1242_v31 = vadd.f32 %v3531_v48, %v1241_v43 }
 0x32a   : > { %v1253_v46 = vadd.f32 %v3771_v44, %v3531_v48  ;;  %v1244_v2 = vpop.f32.mrb[3].mxu1  ;;  %3930 = vmatprep.subr.msk.bf16.mxu0 %vm1284_vm0, %v5323_v41  ;;  %v1304_v10 = vsel %vm1284_vm0, %v5323_v41, 0 }
 0x32b   : > { %v1245_v49 = vadd.f32 %v3531_v48, %v1244_v2  ;;  %v980_v50 = vpop.f32.mrb[12].mxu0  ;;  %3781 = vmatpush3.bf16.xpose.msra.mxu0 %v1304_v10  ;;  %3796 = vmatprep.subr.bf16.mxu1 %v5325_v47 }
 0x32c   : > { %v5332_v51 = vpack.c.bf16 %v1253_v46, %v1250_v45  ;;  %v982_v52 = vpop.f32.mrb[13].mxu0  ;;  %3797 = vmatpush3.bf16.msra.mxu1 %v5325_v47  ;;  %v981_v57 = vadd.f32 %v980_v50, %v5282_v18 }
 0x32d   : > { %v5335_v53 = vpack.c.bf16 %v1245_v49, %v1242_v31  ;;  %v984_v54 = vpop.f32.mrb[14].mxu0  ;;  %v983_v59 = vadd.f32 %v982_v52, %v5286_v33 }
 0x32e   : > { %v985_v11 = vadd.f32 %v984_v54, %v5282_v18  ;;  %v986_v58 = vpop.f32.mrb[15].mxu0 }
 0x32f   : > { %v987_v60 = vadd.f32 %v986_v58, %v5286_v33  ;;  %v3774_v25 = vpop.f32.mrb[4].mxu1  ;;  %3784 = vmatprep.mubr.msk.bf16.mxu0 %vm1284_vm0, %v5335_v53 }
 0x330   : > { %v5343_v61 = vpack.c.bf16 %v985_v11, %v981_v57  ;;  %v1257_v24 = vpop.f32.mrb[5].mxu1  ;;  %v1266_v13 = vadd.f32 %v3774_v25, %v3531_v48 }
 0x331   : > { %v5345_v62 = vpack.c.bf16 %v987_v60, %v983_v59  ;;  %v3775_v32 = vpop.f32.mrb[6].mxu1  ;;  %v1258_v33 = vadd.f32 %v3531_v48, %v1257_v24 }
 0x332   : > { %v1269_v4 = vadd.f32 %v3775_v32, %v3531_v48  ;;  %v1260_v5 = vpop.f32.mrb[7].mxu1  ;;  %3931 = vmatprep.subr.msk.bf16.mxu0 %vm1284_vm0, %v5343_v61  ;;  %v1307_v18 = vsel %vm1284_vm0, %v5343_v61, 0 }
 0x333   : > { %v1261_v6 = vadd.f32 %v3531_v48, %v1260_v5  ;;  %3783 = vmatpush3.bf16.xpose.msra.mxu0 %v1307_v18  ;;  %3798 = vmatprep.subr.bf16.mxu1 %v5345_v62 }
 0x334   : > { %v5352_v7 = vpack.c.bf16 %v1269_v4, %v1266_v13  ;;  %3799 = vmatpush3.bf16.msra.mxu1 %v5345_v62 }
 0x335   : > { %v5355_v8 = vpack.c.bf16 %v1261_v6, %v1258_v33 }
 0x33a   : > { %3785 = vmatmul.mubr.msk.bf16.vlgmr.msra.gmra.mrb[16].mxu0 %vm1284_vm0, %v5332_v51 }
 0x33b   : > { %3788 = vmatprep.mubr.msk.bf16.mxu0 %vm1284_vm0, %v5355_v8 }
 0x342   : > { %3789 = vmatmul.mubr.msk.bf16.gmra.mrb[20].mxu0 %vm1284_vm0, %v5352_v7 }
 0x40d   : > { %v3786_v9 = vpop.f32.mrb[16].mxu0 }
 0x40e   : > { %v1343_v16 = vpop.f32.mrb[17].mxu0  ;;  %v1381_v12 = vsel %vm1374_vm1, %v3786_v9, -inf }
 0x40f   : > { %v3787_v17 = vpop.f32.mrb[18].mxu0  ;;  %v1375_v21 = vsel %vm1374_vm1, %v1343_v16, -inf }
 0x410   : > { %1376 = vmax.xlane.f32.xlu0 %v1375_v21  ;;  %v1346_v40 = vpop.f32.mrb[19].mxu0  ;;  %v1384_v22 = vsel %vm1374_vm1, %v3787_v17, -inf }
 0x411   : > { %1385 = vmax.xlane.f32.xlu1 %v1384_v22  ;;  %v1378_v26 = vsel %vm1374_vm1, %v1346_v40, -inf }
 0x414   : > { %1382 = vmax.xlane.f32.xlu0 %v1381_v12 }
 0x415   : > { %1379 = vmax.xlane.f32.xlu1 %v1378_v26  ;;  %v3790_v39 = vpop.f32.mrb[20].mxu0 }
 0x416   : > { %v1359_v55 = vpop.f32.mrb[21].mxu0  ;;  %v1393_v14 = vsel %vm1374_vm1, %v3790_v39, -inf }
 0x417   : > { %v3791_v27 = vpop.f32.mrb[22].mxu0  ;;  %v1387_v28 = vsel %vm1374_vm1, %v1359_v55, -inf }
 0x418   : > { %1388 = vmax.xlane.f32.xlu0 %v1387_v28  ;;  %v1362_v34 = vpop.f32.mrb[23].mxu0  ;;  %v1396_v23 = vsel %vm1374_vm1, %v3791_v27, -inf }
 0x419   : > { %1397 = vmax.xlane.f32.xlu1 %v1396_v23  ;;  %v1390_v56 = vsel %vm1374_vm1, %v1362_v34, -inf }
 0x41c   : > { %1394 = vmax.xlane.f32.xlu0 %v1393_v14 }
 0x41d   : > { %1391 = vmax.xlane.f32.xlu1 %v1390_v56 }
 0x42e   : > { %1566 = vrot.lane.b32.xlu1 %v5306_v29, %s4680_s5 }
 0x432   : > { %1568 = vrot.lane.b32.xlu1 %v5323_v41, %s4680_s5 }
 0x49d   : > { %v1377_v15 = vpop.xlane.xlu0 %1376 }
 0x49e   : > { %v1386_v35 = vpop.xlane.xlu1 %1385  ;;  %v1399_v36 = vsub.f32 %v1343_v16, %v1377_v15 }
 0x49f   : > { %v1402_v1 = vsub.f32 %v3787_v17, %v1386_v35 }
 0x4a0   : > { %v1407_v45 = vmul.f32 1.442695, %v1399_v36 }
 0x4a1   : > { %v1413_v37 = vmul.f32 1.442695, %v1402_v1  ;;  %v1383_v38 = vpop.xlane.xlu0 %1382 }
 0x4a2   : > { %v1401_v48 = vsub.f32 %v3786_v9, %v1383_v38  ;;  %v1380_v43 = vpop.xlane.xlu1 %1379 }
 0x4a3   : > { %4184 = vpow2.f32 %v1413_v37  ;;  %v1400_v44 = vsub.f32 %v1346_v40, %v1380_v43 }
 0x4a4   : > { %v1411_v46 = vmul.f32 1.442695, %v1401_v48 }
 0x4a5   : > { %v1409_v2 = vmul.f32 1.442695, %v1400_v44  ;;  %v1389_v58 = vpop.xlane.xlu0 %1388 }
 0x4a6   : > { %4186 = vpow2.f32 %v1411_v46  ;;  %v1398_v59 = vpop.xlane.xlu1 %1397  ;;  %v1403_v5 = vsub.f32 %v1359_v55, %v1389_v58 }
 0x4a7   : > { %4188 = vpow2.f32 %v1409_v2  ;;  %v1406_v60 = vsub.f32 %v3791_v27, %v1398_v59 }
 0x4a8   : > { %4190 = vpow2.f32 %v1407_v45  ;;  %v1415_v6 = vmul.f32 1.442695, %v1403_v5 }
 0x4a9   : > { %v1395_v25 = vpop.xlane.xlu0 %1394  ;;  %v1421_v13 = vmul.f32 1.442695, %v1406_v60 }
 0x4aa   : > { %v1392_v24 = vpop.xlane.xlu1 %1391  ;;  %v1405_v32 = vsub.f32 %v3790_v39, %v1395_v25 }
 0x4ab   : > { %v1404_v4 = vsub.f32 %v1362_v34, %v1392_v24  ;;  %4192 = vpow2.f32 %v1421_v13 }
 0x4ac   : > { %v1419_v18 = vmul.f32 1.442695, %v1405_v32 }
 0x4ad   : > { %v5375_v10 = vpop.eup %4184  ;;  %v1417_v33 = vmul.f32 1.442695, %v1404_v4 }
 0x4ae   : > { %v1432_v31 = vsel %vm1374_vm1, %v5375_v10, 0.0  ;;  %4194 = vpow2.f32 %v1419_v18  ;;  %v1567_v39 = vpop.permute.xlu1 %1566 }
 0x4af   : > { %1433 = vadd.xlane.f32.xlu1 %v1432_v31  ;;  %4196 = vpow2.f32 %v1417_v33  ;;  %v1588_v31 = vsel %vm1284_vm0, %v1567_v39, 0 }
 0x4b0   : > { %v5379_v49 = vpop.eup %4186  ;;  %4198 = vpow2.f32 %v1415_v6 }
 0x4b1   : > { %v5381_v50 = vpop.eup %4188  ;;  %v1429_v52 = vsel %vm1374_vm1, %v5379_v49, 0.0 }
 0x4b2   : > { %v5385_v54 = vpop.eup %4190  ;;  %1430 = vadd.xlane.f32.xlu0 %v1429_v52  ;;  %v1426_v57 = vsel %vm1374_vm1, %v5381_v50, 0.0  ;;  %v1569_v55 = vpop.permute.xlu1 %1568 }
 0x4b3   : > { %1427 = vadd.xlane.f32.xlu1 %v1426_v57  ;;  %v1423_v11 = vsel %vm1374_vm1, %v5385_v54, 0.0 }
 0x4b5   : > { %v5395_v9 = vpop.eup %4192 }
 0x4b6   : > { %1424 = vadd.xlane.f32.xlu0 %v1423_v11  ;;  %v1444_v17 = vsel %vm1374_vm1, %v5395_v9, 0.0 }
 0x4b8   : > { %v5397_v16 = vpop.eup %4194 }
 0x4b9   : > { %v5401_v21 = vpop.eup %4196  ;;  %v1441_v40 = vsel %vm1374_vm1, %v5397_v16, 0.0 }
 0x4ba   : > { %v5405_v22 = vpop.eup %4198  ;;  %v1438_v12 = vsel %vm1374_vm1, %v5401_v21, 0.0 }
 0x4bb   : > { %v1435_v26 = vsel %vm1374_vm1, %v5405_v22, 0.0 }
 0x4c4   : > { %1858 = vrot.lane.b32.xlu1 %v5292_v19, %s4681_s4 }
 0x4cc   : > { %1564 = vrot.lane.b32.xlu0 %v5292_v19, %s4680_s5 }
 0x4e8   : > { %1445 = vadd.xlane.f32.xlu1 %v1444_v17 }
 0x4eb   : > { %1442 = vadd.xlane.f32.xlu0 %v1441_v40 }
 0x4ec   : > { %1439 = vadd.xlane.f32.xlu1 %v1438_v12 }
 0x4ef   : > { %1436 = vadd.xlane.f32.xlu0 %v1435_v26 }
 0x4fd   : > { %1860 = vrot.lane.b32.xlu1 %v5306_v29, %s4681_s4 }
 0x501   : > { %1554 = vrot.lane.b32.xlu1 %v5332_v51, %s4680_s5 }
 0x505   : > { %1556 = vrot.lane.b32.xlu1 %v5355_v8, %s4680_s5  ;;  %1570 = vrot.lane.b32.xlu0 %v5343_v61, %s4680_s5 }
 0x509   : > { %1864 = vrot.lane.b32.xlu1 %v5343_v61, %s4681_s4  ;;  %1552 = vrot.lane.b32.xlu0 %v5335_v53, %s4680_s5 }
 0x50d   : > { %1852 = vrot.lane.b32.xlu1 %v5332_v51, %s4681_s4  ;;  %1862 = vrot.lane.b32.xlu0 %v5323_v41, %s4681_s4 }
 0x511   : > { %1856 = vrot.lane.b32.xlu1 %v5352_v7, %s4681_s4  ;;  %1558 = vrot.lane.b32.xlu0 %v5352_v7, %s4680_s5 }
 0x515   : > { %1850 = vrot.lane.b32.xlu0 %v5335_v53, %s4681_s4 }
 0x519   : > { %1854 = vrot.lane.b32.xlu0 %v5355_v8, %s4681_s4 }
 0x53c   : > { %v1434_v27 = vpop.xlane.xlu1 %1433 }
 0x53f   : > { %v1431_v28 = vpop.xlane.xlu0 %1430 }
 0x540   : > { %v1428_v34 = vpop.xlane.xlu1 %1427  ;;  %4200 = vrcp.f32 %v1431_v28 }
 0x541   : > { %4202 = vrcp.f32 %v1428_v34 }
 0x542   : > { %4204 = vrcp.f32 %v1434_v27 }
 0x543   : > { %v1425_v23 = vpop.xlane.xlu0 %1424 }
 0x544   : > { %4206 = vrcp.f32 %v1425_v23  ;;  %v1859_v14 = vpop.permute.xlu1 %1858 }
 0x545   : > { %3936 = vmatprep.subr.msk.bf16.mxu0 %vm1284_vm0, %v1859_v14  ;;  %v1879_v56 = vsel %vm1284_vm0, %v1859_v14, 0 }
 0x546   : > { %3841 = vmatpush3.bf16.xpose.msra.mxu0 %v1879_v56 }
 0x547   : > { %v1565_v15 = vpop.permute.xlu0 %1564 }
 0x548   : > { %3932 = vmatprep.subr.msk.bf16.mxu1 %vm1284_vm0, %v1565_v15  ;;  %v1585_v2 = vsel %vm1284_vm0, %v1565_v15, 0 }
 0x54a   : > { %v4201_v35 = vpop.eup %4200 }
 0x54b   : > { %v4203_v1 = vpop.eup %4202  ;;  %v1457_v38 = vmul.f32 %v4201_v35, %v5379_v49  ;;  %v1591_v49 = vsel %vm1284_vm0, %v1569_v55, 0 }
 0x54c   : > { %v4205_v36 = vpop.eup %4204  ;;  %v1456_v43 = vmul.f32 %v4203_v1, %v5381_v50 }
 0x54d   : > { %v1458_v44 = vmul.f32 %v4205_v36, %v5375_v10 }
 0x54e   : > { %v4207_v37 = vpop.eup %4206 }
 0x54f   : > { %v1455_v48 = vmul.f32 %v4207_v37, %v5385_v54  ;;  %v1464_v46 = vpack.c.bf16 %v1458_v44, %v1457_v38 }
 0x551   : > { %v1463_v45 = vpack.c.bf16 %v1456_v43, %v1455_v48 }
 0x553   : > { %3800 = vmatprep.mubr.msk.bf16.mxu1 %vm1374_vm1, %v1463_v45 }
 0x554   : > { %3801 = vmatmul.mubr.msk.bf16.vlgmr.msra.gmra.mrb[8].mxu1 %vm1374_vm1, %v1464_v46 }
 0x555   : > { %3809 = vmatpush3.bf16.xpose.msra.mxu1 %v1585_v2 }
 0x556   : > { %3933 = vmatprep.subr.msk.bf16.mxu1 %vm1284_vm0, %v1567_v39 }
 0x55d   : > { %3811 = vmatpush3.bf16.xpose.msra.mxu1 %v1588_v31 }
 0x55e   : > { %3934 = vmatprep.subr.msk.bf16.mxu1 %vm1284_vm0, %v1569_v55 }
 0x565   : > { %3813 = vmatpush3.bf16.xpose.msra.mxu1 %v1591_v49 }
 0x575   : > { %v1446_v10 = vpop.xlane.xlu1 %1445 }
 0x578   : > { %v1443_v50 = vpop.xlane.xlu0 %1442 }
 0x579   : > { %v1440_v52 = vpop.xlane.xlu1 %1439  ;;  %4208 = vrcp.f32 %v1443_v50 }
 0x57a   : > { %4210 = vrcp.f32 %v1440_v52 }
 0x57b   : > { %4212 = vrcp.f32 %v1446_v10 }
 0x57c   : > { %v1437_v54 = vpop.xlane.xlu0 %1436 }
 0x57d   : > { %4214 = vrcp.f32 %v1437_v54  ;;  %v1861_v57 = vpop.permute.xlu1 %1860 }
 0x57e   : > { %3937 = vmatprep.subr.msk.bf16.mxu0 %vm1284_vm0, %v1861_v57  ;;  %v1882_v11 = vsel %vm1284_vm0, %v1861_v57, 0 }
 0x57f   : > { %3843 = vmatpush3.bf16.xpose.msra.mxu0 %v1882_v11 }
 0x580   : > { %v1571_v58 = vpop.permute.xlu0 %1570 }
 0x581   : > { %v1555_v59 = vpop.permute.xlu1 %1554  ;;  %3935 = vmatprep.subr.msk.bf16.mxu1 %vm1284_vm0, %v1571_v58  ;;  %v1594_v60 = vsel %vm1284_vm0, %v1571_v58, 0 }
 0x582   : > { %3815 = vmatpush3.bf16.xpose.msra.mxu1 %v1594_v60 }
 0x583   : > { %v4209_v25 = vpop.eup %4208 }
 0x584   : > { %v1553_v24 = vpop.permute.xlu0 %1552  ;;  %v4211_v32 = vpop.eup %4210  ;;  %v1461_v18 = vmul.f32 %v4209_v25, %v5397_v16 }
 0x585   : > { %v1557_v13 = vpop.permute.xlu1 %1556  ;;  %v4213_v4 = vpop.eup %4212  ;;  %v1460_v17 = vmul.f32 %v4211_v32, %v5401_v21 }
 0x586   : > { %v1462_v26 = vmul.f32 %v4213_v4, %v5395_v9 }
 0x587   : > { %v4215_v5 = vpop.eup %4214 }
 0x588   : > { %v1863_v33 = vpop.permute.xlu0 %1862  ;;  %v1459_v6 = vmul.f32 %v4215_v5, %v5405_v22  ;;  %v1466_v55 = vpack.c.bf16 %v1462_v26, %v1461_v18 }
 0x589   : > { %v1865_v40 = vpop.permute.xlu1 %1864  ;;  %3938 = vmatprep.subr.msk.bf16.mxu0 %vm1284_vm0, %v1863_v33  ;;  %v1885_v12 = vsel %vm1284_vm0, %v1863_v33, 0 }
 0x58a   : > { %3845 = vmatpush3.bf16.xpose.msra.mxu0 %v1885_v12  ;;  %v1465_v39 = vpack.c.bf16 %v1460_v17, %v1459_v6  ;;  %v1888_v22 = vsel %vm1284_vm0, %v1865_v40, 0 }
 0x58b   : > { %3939 = vmatprep.subr.msk.bf16.mxu0 %vm1284_vm0, %v1865_v40 }
 0x58c   : > { %3804 = vmatprep.mubr.msk.bf16.mxu1 %vm1374_vm1, %v1465_v39  ;;  %v1559_v16 = vpop.permute.xlu0 %1558 }
 0x58d   : > { %3805 = vmatmul.mubr.msk.bf16.gmra.mrb[12].mxu1 %vm1374_vm1, %v1466_v55  ;;  %v1853_v9 = vpop.permute.xlu1 %1852 }
 0x58e   : > { %3816 = vmatprep.mubr.msk.bf16.mxu1 %vm1284_vm0, %v1553_v24 }
 0x590   : > { %v1851_v21 = vpop.permute.xlu0 %1850 }
 0x591   : > { %3848 = vmatprep.mubr.msk.bf16.mxu0 %vm1284_vm0, %v1851_v21  ;;  %v1857_v28 = vpop.permute.xlu1 %1856 }
 0x592   : > { %3847 = vmatpush3.bf16.xpose.msra.mxu0 %v1888_v22 }
 0x594   : > { %v1855_v27 = vpop.permute.xlu0 %1854 }
 0x595   : > { %3817 = vmatmul.mubr.msk.bf16.vlgmr.msra.gmra.mrb[16].mxu1 %vm1284_vm0, %v1555_v59 }
 0x596   : > { %3820 = vmatprep.mubr.msk.bf16.mxu1 %vm1284_vm0, %v1557_v13 }
 0x599   : > { %3849 = vmatmul.mubr.msk.bf16.vlgmr.msra.gmra.mrb[24].mxu0 %vm1284_vm0, %v1853_v9 }
 0x59a   : > { %3852 = vmatprep.mubr.msk.bf16.mxu0 %vm1284_vm0, %v1855_v27 }
 0x59d   : > { %3821 = vmatmul.mubr.msk.bf16.gmra.mrb[20].mxu1 %vm1284_vm0, %v1559_v16 }
 0x5a1   : > { %3853 = vmatmul.mubr.msk.bf16.gmra.mrb[28].mxu0 %vm1284_vm0, %v1857_v28 }
 0x627   : > { %v5471_v34 = vpop.f32.mrb[8].mxu1 }
 0x628   : > { %v5473_v23 = vpop.f32.mrb[9].mxu1 }
 0x629   : > { %v5475_v14 = vpop.f32.mrb[10].mxu1 }
 0x62a   : > { %v1545_v56 = vpack.c.bf16 %v5475_v14, %v5471_v34  ;;  %v5479_v15 = vpop.f32.mrb[11].mxu1 }
 0x62b   : > { %v1544_v35 = vpack.c.bf16 %v5479_v15, %v5473_v23 }
 0x660   : > { %v5483_v1 = vpop.f32.mrb[12].mxu1 }
 0x661   : > { %v5485_v36 = vpop.f32.mrb[13].mxu1 }
 0x662   : > { %v5487_v37 = vpop.f32.mrb[14].mxu1 }
 0x663   : > { %v5491_v48 = vpop.f32.mrb[15].mxu1 }
 0x664   : > { %v1546_v43 = vpack.c.bf16 %v5491_v48, %v5485_v36 }
 0x668   : > { %v5495_v44 = vpop.f32.mrb[16].mxu1 }
 0x669   : > { %v5497_v45 = vpop.f32.mrb[17].mxu1  ;;  %v1667_v17 = vsel %vm1374_vm1, %v5495_v44, -inf }
 0x66a   : > { %v5499_v46 = vpop.f32.mrb[18].mxu1  ;;  %v1661_v12 = vsel %vm1374_vm1, %v5497_v45, -inf }
 0x66b   : > { %v5501_v2 = vpop.f32.mrb[19].mxu1  ;;  %v1670_v26 = vsel %vm1374_vm1, %v5499_v46, -inf }
 0x66c   : > { %v3850_v31 = vpop.f32.mrb[24].mxu0  ;;  %v1664_v40 = vsel %vm1374_vm1, %v5501_v2, -inf }
 0x66d   : > { %v1924_v49 = vpop.f32.mrb[25].mxu0  ;;  %v1961_v59 = vsel %vm1374_vm1, %v3850_v31, -inf }
 0x66e   : > { %v3851_v10 = vpop.f32.mrb[26].mxu0  ;;  %v1955_v50 = vsel %vm1374_vm1, %v1924_v49, -inf }
 0x66f   : > { %1956 = vmax.xlane.f32.xlu0 %v1955_v50  ;;  %v1927_v52 = vpop.f32.mrb[27].mxu0  ;;  %v1964_v24 = vsel %vm1374_vm1, %v3851_v10, -inf }
 0x670   : > { %v5504_v54 = vpop.f32.mrb[20].mxu1  ;;  %v1958_v57 = vsel %vm1374_vm1, %v1927_v52, -inf }
 0x671   : > { %v5507_v11 = vpop.f32.mrb[21].mxu1  ;;  %1959 = vmax.xlane.f32.xlu1 %v1958_v57  ;;  %v1679_v39 = vsel %vm1374_vm1, %v5504_v54, -inf }
 0x672   : > { %v5509_v58 = vpop.f32.mrb[22].mxu1  ;;  %v1673_v55 = vsel %vm1374_vm1, %v5507_v11, -inf }
 0x673   : > { %v5512_v60 = vpop.f32.mrb[23].mxu1  ;;  %1962 = vmax.xlane.f32.xlu0 %v1961_v59 }
 0x674   : > { %v5514_v25 = vpop.f32.mrb[28].mxu0 }
 0x675   : > { %1965 = vmax.xlane.f32.xlu1 %v1964_v24  ;;  %v5517_v32 = vpop.f32.mrb[29].mxu0  ;;  %v1973_v33 = vsel %vm1374_vm1, %v5514_v25, -inf }
 0x676   : > { %v5519_v13 = vpop.f32.mrb[30].mxu0  ;;  %v1967_v4 = vsel %vm1374_vm1, %v5517_v32, -inf }
 0x677   : > { %1968 = vmax.xlane.f32.xlu0 %v1967_v4  ;;  %v5523_v5 = vpop.f32.mrb[31].mxu0  ;;  %v1976_v6 = vsel %vm1374_vm1, %v5519_v13, -inf }
 0x678   : > { %v1970_v18 = vsel %vm1374_vm1, %v5523_v5, -inf }
 0x679   : > { %1971 = vmax.xlane.f32.xlu1 %v1970_v18 }
 0x67b   : > { %1974 = vmax.xlane.f32.xlu0 %v1973_v33 }
 0x67d   : > { %1977 = vmax.xlane.f32.xlu1 %v1976_v6 }
 0x68e   : > { %1759 = vrot.lane.b32.xlu1 %v5308_v30, %s4680_s5 }
 0x691   : > { %1757 = vrot.lane.b32.xlu0 %v5294_v20, %s4680_s5 }
 0x6b0   : > { %1668 = vmax.xlane.f32.xlu0 %v1667_v17 }
 0x6b2   : > { %1665 = vmax.xlane.f32.xlu1 %v1664_v40 }
 0x6b4   : > { %1662 = vmax.xlane.f32.xlu0 %v1661_v12 }
 0x6b8   : > { %1671 = vmax.xlane.f32.xlu0 %v1670_v26 }
 0x6bc   : > { %1680 = vmax.xlane.f32.xlu0 %v1679_v39 }
 0x6c0   : > { %1674 = vmax.xlane.f32.xlu0 %v1673_v55 }
 0x6d6   : > { %1761 = vrot.lane.b32.xlu0 %v5325_v47, %s4680_s5 }
 0x6fc   : > { %v1957_v16 = vpop.xlane.xlu0 %1956 }
 0x6fd   : > { %v1979_v21 = vsub.f32 %v1924_v49, %v1957_v16 }
 0x6fe   : > { %v1960_v22 = vpop.xlane.xlu1 %1959 }
 0x6ff   : > { %v1987_v9 = vmul.f32 1.442695, %v1979_v21  ;;  %v1980_v27 = vsub.f32 %v1927_v52, %v1960_v22 }
 0x700   : > { %v1963_v28 = vpop.xlane.xlu0 %1962 }
 0x701   : > { %4216 = vpow2.f32 %v1987_v9  ;;  %v1989_v50 = vmul.f32 1.442695, %v1980_v27  ;;  %v1981_v57 = vsub.f32 %v3850_v31, %v1963_v28 }
 0x702   : > { %v1966_v59 = vpop.xlane.xlu1 %1965 }
 0x703   : > { %4218 = vpow2.f32 %v1989_v50  ;;  %v1991_v24 = vmul.f32 1.442695, %v1981_v57  ;;  %v1982_v4 = vsub.f32 %v3851_v10, %v1966_v59 }
 0x704   : > { %v5549_v18 = vpop.xlane.xlu0 %1968 }
 0x705   : > { %4220 = vpow2.f32 %v1991_v24  ;;  %v1993_v33 = vmul.f32 1.442695, %v1982_v4  ;;  %v1983_v6 = vsub.f32 %v5517_v32, %v5549_v18  ;;  %v1682_v4 = vsel %vm1374_vm1, %v5509_v58, -inf }
 0x706   : > { %v5553_v17 = vpop.xlane.xlu1 %1971 }
 0x707   : > { %v1984_v49 = vsub.f32 %v5523_v5, %v5553_v17  ;;  %4222 = vpow2.f32 %v1993_v33  ;;  %v1995_v3 = vmul.f32 1.442695, %v1983_v6 }
 0x708   : > { %v5557_v52 = vpop.xlane.xlu0 %1974 }
 0x709   : > { %v1985_v31 = vsub.f32 %v5514_v25, %v5557_v52 }
 0x70a   : > { %v5561_v40 = vpop.xlane.xlu1 %1977 }
 0x70b   : > { %v5563_v10 = vpop.eup %4216  ;;  %v1986_v12 = vsub.f32 %v5519_v13, %v5561_v40 }
 0x70c   : > { %v1758_v26 = vpop.permute.xlu0 %1757  ;;  %v2003_v39 = vsel %vm1374_vm1, %v5563_v10, 0.0 }
 0x70d   : > { %v5569_v55 = vpop.eup %4218  ;;  %2004 = vadd.xlane.f32.xlu1 %v2003_v39  ;;  %3824 = vmatprep.subr.bf16.mxu1 %v1758_v26  ;;  %v2001_v32 = vmul.f32 1.442695, %v1986_v12 }
 0x70e   : > { %v1760_v16 = vpop.permute.xlu1 %1759  ;;  %3825 = vmatpush3.bf16.msra.mxu1 %v1758_v26  ;;  %v2006_v21 = vsel %vm1374_vm1, %v5569_v55, 0.0 }
 0x70f   : > { %v5573_v22 = vpop.eup %4220  ;;  %2007 = vadd.xlane.f32.xlu0 %v2006_v21  ;;  %3826 = vmatprep.subr.bf16.mxu1 %v1760_v16 }
 0x710   : > { %v2009_v9 = vsel %vm1374_vm1, %v5573_v22, 0.0 }
 0x711   : > { %v5577_v27 = vpop.eup %4222 }
 0x712   : > { %3827 = vmatpush3.bf16.msra.mxu1 %v1760_v16  ;;  %v2012_v28 = vsel %vm1374_vm1, %v5577_v27, 0.0  ;;  %v1676_v16 = vsel %vm1374_vm1, %v5512_v60, -inf }
 0x713   : > { %2010 = vadd.xlane.f32.xlu0 %v2009_v9 }
 0x717   : > { %2013 = vadd.xlane.f32.xlu0 %v2012_v28 }
 0x71e   : > { %1763 = vrot.lane.b32.xlu1 %v5345_v62, %s4680_s5 }
 0x73d   : > { %v1669_v50 = vpop.xlane.xlu0 %1668 }
 0x73e   : > { %v1687_v57 = vsub.f32 %v5495_v44, %v1669_v50 }
 0x740   : > { %v1697_v59 = vmul.f32 1.442695, %v1687_v57 }
 0x741   : > { %v1663_v24 = vpop.xlane.xlu0 %1662 }
 0x742   : > { %4224 = vpow2.f32 %v1697_v59  ;;  %v1685_v33 = vsub.f32 %v5497_v45, %v1663_v24  ;;  %1683 = vmax.xlane.f32.xlu1 %v1682_v4  ;;  %v1666_v24 = vpop.xlane.xlu1 %1665 }
 0x743   : > { %v1686_v4 = vsub.f32 %v5501_v2, %v1666_v24  ;;  %v1999_v2 = vmul.f32 1.442695, %v1985_v31 }
 0x744   : > { %v1693_v26 = vmul.f32 1.442695, %v1685_v33 }
 0x745   : > { %v1672_v39 = vpop.xlane.xlu0 %1671 }
 0x746   : > { %4226 = vpow2.f32 %v1693_v26  ;;  %1677 = vmax.xlane.f32.xlu1 %v1676_v16  ;;  %v1688_v59 = vsub.f32 %v5499_v46, %v1672_v39  ;;  %v1695_v16 = vmul.f32 1.442695, %v1686_v4 }
 0x748   : > { %v1699_v33 = vmul.f32 1.442695, %v1688_v59 }
 0x749   : > { %v1681_v21 = vpop.xlane.xlu0 %1680 }
 0x74a   : > { %v1691_v26 = vsub.f32 %v5504_v54, %v1681_v21  ;;  %4228 = vpow2.f32 %v1699_v33 }
 0x74b   : > { %4230 = vpow2.f32 %v1695_v16 }
 0x74c   : > { %v5589_v9 = vpop.eup %4224 }
 0x74d   : > { %v1675_v44 = vpop.xlane.xlu0 %1674  ;;  %v1715_v28 = vsel %vm1374_vm1, %v5589_v9, 0.0 }
 0x74e   : > { %1716 = vadd.xlane.f32.xlu0 %v1715_v28  ;;  %v1689_v28 = vsub.f32 %v5507_v11, %v1675_v44 }
 0x750   : > { %v5593_v50 = vpop.eup %4226 }
 0x751   : > { %v1762_v57 = vpop.permute.xlu0 %1761  ;;  %v1709_v45 = vsel %vm1374_vm1, %v5593_v50, 0.0 }
 0x752   : > { %1710 = vadd.xlane.f32.xlu0 %v1709_v45  ;;  %3828 = vmatprep.subr.bf16.mxu1 %v1762_v57  ;;  %v1701_v45 = vmul.f32 1.442695, %v1689_v28 }
 0x753   : > { %3829 = vmatpush3.bf16.msra.mxu1 %v1762_v57  ;;  %v1705_v57 = vmul.f32 1.442695, %v1691_v26 }
 0x754   : > { %v5610_v46 = vpop.eup %4228 }
 0x755   : > { %4232 = vpow2.f32 %v1705_v57  ;;  %v1718_v54 = vsel %vm1374_vm1, %v5610_v46, 0.0  ;;  %v5617_v11 = vpop.eup %4230 }
 0x756   : > { %4234 = vpow2.f32 %v1701_v45 }
 0x757   : > { %2049 = vrot.lane.b32.xlu1 %v5308_v30, %s4681_s4  ;;  %4236 = vpow2.f32 %v1995_v3  ;;  %v1712_v3 = vsel %vm1374_vm1, %v5617_v11, 0.0 }
 0x758   : > { %4238 = vpow2.f32 %v1999_v2 }
 0x759   : > { %4240 = vpow2.f32 %v2001_v32 }
 0x75b   : > { %2051 = vrot.lane.b32.xlu1 %v5325_v47, %s4681_s4 }
 0x75f   : > { %v5622_v18 = vpop.eup %4232 }
 0x760   : > { %v5626_v6 = vpop.eup %4234  ;;  %v1727_v25 = vsel %vm1374_vm1, %v5622_v18, 0.0 }
 0x761   : > { %v1721_v52 = vsel %vm1374_vm1, %v5626_v6, 0.0  ;;  %v5632_v31 = vpop.eup %4236 }
 0x762   : > { %v2015_v13 = vsel %vm1374_vm1, %v5632_v31, 0.0  ;;  %v5636_v40 = vpop.eup %4238 }
 0x763   : > { %v2021_v12 = vsel %vm1374_vm1, %v5636_v40, 0.0  ;;  %v5640_v39 = vpop.eup %4240 }
 0x764   : > { %v2024_v21 = vsel %vm1374_vm1, %v5640_v39, 0.0 }
 0x768   : > { %2047 = vrot.lane.b32.xlu0 %v5294_v20, %s4681_s4 }
 0x77f   : > { %1719 = vadd.xlane.f32.xlu1 %v1718_v54 }
 0x783   : > { %1713 = vadd.xlane.f32.xlu1 %v1712_v3 }
 0x787   : > { %1728 = vadd.xlane.f32.xlu1 %v1727_v25  ;;  %1722 = vadd.xlane.f32.xlu0 %v1721_v52 }
 0x78b   : > { %2016 = vadd.xlane.f32.xlu0 %v2015_v13 }
 0x78f   : > { %2022 = vadd.xlane.f32.xlu0 %v2021_v12 }
 0x793   : > { %2025 = vadd.xlane.f32.xlu0 %v2024_v21 }
 0x79a   : > { %v2005_v44 = vpop.xlane.xlu1 %2004 }
 0x79b   : > { %4242 = vrcp.f32 %v2005_v44 }
 0x79c   : > { %v2008_v59 = vpop.xlane.xlu0 %2007 }
 0x79d   : > { %4244 = vrcp.f32 %v2008_v59  ;;  %v1997_v59 = vmul.f32 1.442695, %v1984_v49 }
 0x79e   : > { %v1764_v24 = vpop.permute.xlu1 %1763 }
 0x79f   : > { %3830 = vmatprep.subr.bf16.mxu1 %v1764_v24 }
 0x7a0   : > { %3831 = vmatpush3.bf16.msra.mxu1 %v1764_v24  ;;  %v2011_v4 = vpop.xlane.xlu0 %2010 }
 0x7a1   : > { %4246 = vrcp.f32 %v2011_v4 }
 0x7a4   : > { %v2014_v33 = vpop.xlane.xlu0 %2013 }
 0x7a5   : > { %v4243_v26 = vpop.eup %4242  ;;  %4248 = vrcp.f32 %v2014_v33 }
 0x7a6   : > { %v5645_v28 = vmul.f32 %v4243_v26, %v5563_v10 }
 0x7a7   : > { %v4245_v16 = vpop.eup %4244 }
 0x7a8   : > { %v5648_v57 = vmul.f32 %v4245_v16, %v5569_v55 }
 0x7a9   : > { %2148 = vrot.lane.b32.xlu0 %v5292_v19, %s4682_s10 }
 0x7aa   : > { %v2043_v45 = vpack.c.bf16 %v5648_v57, %v5645_v28 }
 0x7ab   : > { %v4247_v2 = vpop.eup %4246 }
 0x7ac   : > { %v5657_v32 = vmul.f32 %v4247_v2, %v5573_v22 }
 0x7ad   : > { %2140 = vrot.lane.b32.xlu0 %v5335_v53, %s4682_s10 }
 0x7af   : > { %v4249_v54 = vpop.eup %4248 }
 0x7b0   : > { %v5660_v10 = vmul.f32 %v4249_v54, %v5577_v27 }
 0x7b1   : > { %2144 = vrot.lane.b32.xlu0 %v5355_v8, %s4682_s10 }
 0x7b2   : > { %v2044_v19 = vpack.c.bf16 %v5660_v10, %v5657_v32 }
 0x7cf   : > { %v1684_v55 = vpop.xlane.xlu1 %1683 }
 0x7d0   : > { %v1692_v3 = vsub.f32 %v5509_v58, %v1684_v55 }
 0x7d2   : > { %v1707_v25 = vmul.f32 1.442695, %v1692_v3 }
 0x7d3   : > { %v1678_v52 = vpop.xlane.xlu1 %1677 }
 0x7d4   : > { %4250 = vpow2.f32 %v1707_v25  ;;  %v1690_v53 = vsub.f32 %v5512_v60, %v1678_v52 }
 0x7d6   : > { %v1703_v13 = vmul.f32 1.442695, %v1690_v53 }
 0x7d7   : > { %v2050_v60 = vpop.permute.xlu1 %2049 }
 0x7d8   : > { %4252 = vpow2.f32 %v1703_v13 }
 0x7d9   : > { %4254 = vpow2.f32 %v1997_v59 }
 0x7db   : > { %v1717_v22 = vpop.xlane.xlu0 %1716  ;;  %v2052_v24 = vpop.permute.xlu1 %2051 }
 0x7de   : > { %v5668_v12 = vpop.eup %4250 }
 0x7df   : > { %v1711_v27 = vpop.xlane.xlu0 %1710  ;;  %v1730_v8 = vsel %vm1374_vm1, %v5668_v12, 0.0 }
 0x7e0   : > { %1731 = vadd.xlane.f32.xlu1 %v1730_v8 }
 0x7e2   : > { %v5672_v21 = vpop.eup %4252 }
 0x7e3   : > { %v2048_v44 = vpop.permute.xlu0 %2047  ;;  %v1724_v58 = vsel %vm1374_vm1, %v5672_v21, 0.0  ;;  %v5681_v26 = vpop.eup %4254 }
 0x7e4   : > { %1725 = vadd.xlane.f32.xlu1 %v1724_v58  ;;  %3856 = vmatprep.subr.bf16.mxu1 %v2048_v44  ;;  %v2018_v2 = vsel %vm1374_vm1, %v5681_v26, 0.0 }
 0x7f5   : > { %2053 = vrot.lane.b32.xlu1 %v5345_v62, %s4681_s4 }
 0x80c   : > { %v1720_v4 = vpop.xlane.xlu1 %1719 }
 0x80d   : > { %4256 = vrcp.f32 %v1720_v4 }
 0x80e   : > { %4258 = vrcp.f32 %v1711_v27 }
 0x80f   : > { %4260 = vrcp.f32 %v1717_v22 }
 0x810   : > { %v1714_v33 = vpop.xlane.xlu1 %1713 }
 0x811   : > { %4262 = vrcp.f32 %v1714_v33 }
 0x817   : > { %v4257_v16 = vpop.eup %4256 }
 0x818   : > { %v4259_v54 = vpop.eup %4258  ;;  %v1744_v5 = vmul.f32 %v4257_v16, %v5610_v46  ;;  %v1729_v46 = vpop.xlane.xlu1 %1728 }
 0x819   : > { %2019 = vadd.xlane.f32.xlu1 %v2018_v2  ;;  %v4261_v55 = vpop.eup %4260  ;;  %v1741_v17 = vmul.f32 %v4259_v54, %v5593_v50 }
 0x81a   : > { %v1743_v25 = vmul.f32 %v4261_v55, %v5589_v9  ;;  %v1723_v9 = vpop.xlane.xlu0 %1722 }
 0x81b   : > { %v4263_v3 = vpop.eup %4262 }
 0x81c   : > { %v1742_v49 = vmul.f32 %v4263_v3, %v5617_v11  ;;  %v1750_v53 = vpack.c.bf16 %v1744_v5, %v1743_v25 }
 0x81e   : > { %v1749_v52 = vpack.c.bf16 %v1742_v49, %v1741_v17  ;;  %v2017_v50 = vpop.xlane.xlu0 %2016 }
 0x820   : > { %3832 = vmatprep.mubr.msk.bf16.mxu1 %vm1374_vm1, %v1749_v52 }
 0x821   : > { %3833 = vmatmul.mubr.msk.bf16.vlgmr.msra.gmra.mrb[24].mxu1 %vm1374_vm1, %v1750_v53 }
 0x822   : > { %3857 = vmatpush3.bf16.msra.mxu1 %v2048_v44  ;;  %v2023_v11 = vpop.xlane.xlu0 %2022 }
 0x823   : > { %3858 = vmatprep.subr.bf16.mxu1 %v2050_v60 }
 0x826   : > { %3859 = vmatpush3.bf16.msra.mxu1 %v2050_v60 }
 0x827   : > { %3860 = vmatprep.subr.bf16.mxu1 %v2052_v24 }
 0x82a   : > { %3861 = vmatpush3.bf16.msra.mxu1 %v2052_v24  ;;  %2150 = vrot.lane.b32.xlu1 %v5306_v29, %s4682_s10  ;;  %v2026_v29 = vpop.xlane.xlu0 %2025 }
 0x82e   : > { %2152 = vrot.lane.b32.xlu1 %v5323_v41, %s4682_s10 }
 0x832   : > { %2154 = vrot.lane.b32.xlu1 %v5343_v61, %s4682_s10  ;;  %v2149_v61 = vpop.permute.xlu0 %2148 }
 0x833   : > { %v2169_v33 = vsel %vm1284_vm0, %v2149_v61, 0 }
 0x836   : > { %2142 = vrot.lane.b32.xlu1 %v5332_v51, %s4682_s10  ;;  %v2141_v17 = vpop.permute.xlu0 %2140 }
 0x83a   : > { %2146 = vrot.lane.b32.xlu1 %v5352_v7, %s4682_s10 }
 0x86d   : > { %v1732_v13 = vpop.xlane.xlu1 %1731 }
 0x86e   : > { %4264 = vrcp.f32 %v1732_v13 }
 0x86f   : > { %4266 = vrcp.f32 %v1723_v9 }
 0x870   : > { %4268 = vrcp.f32 %v1729_v46 }
 0x871   : > { %v1726_v22 = vpop.xlane.xlu1 %1725 }
 0x872   : > { %4270 = vrcp.f32 %v1726_v22 }
 0x873   : > { %4272 = vrcp.f32 %v2026_v29 }
 0x874   : > { %4274 = vrcp.f32 %v2017_v50 }
 0x875   : > { %v2054_v41 = vpop.permute.xlu1 %2053  ;;  %4276 = vrcp.f32 %v2023_v11 }
 0x876   : > { %3862 = vmatprep.subr.bf16.mxu1 %v2054_v41 }
 0x877   : > { %3863 = vmatpush3.bf16.msra.mxu1 %v2054_v41 }
 0x878   : > { %3940 = vmatprep.subr.msk.bf16.mxu1 %vm1284_vm0, %v2149_v61  ;;  %v4265_v51 = vpop.eup %4264 }
 0x879   : > { %v4267_v27 = vpop.eup %4266  ;;  %v1748_v44 = vmul.f32 %v4265_v51, %v5668_v12 }
 0x87a   : > { %v4269_v7 = vpop.eup %4268  ;;  %v1745_v58 = vmul.f32 %v4267_v27, %v5626_v6 }
 0x87b   : > { %v1747_v59 = vmul.f32 %v4269_v7, %v5622_v18 }
 0x87c   : > { %v4271_v8 = vpop.eup %4270 }
 0x87d   : > { %v1746_v60 = vmul.f32 %v4271_v8, %v5672_v21  ;;  %v1752_v4 = vpack.c.bf16 %v1748_v44, %v1747_v59  ;;  %v4273_v28 = vpop.eup %4272 }
 0x87f   : > { %v1751_v24 = vpack.c.bf16 %v1746_v60, %v1745_v58 }
 0x881   : > { %3836 = vmatprep.mubr.msk.bf16.mxu1 %vm1374_vm1, %v1751_v24 }
 0x882   : > { %3837 = vmatmul.mubr.msk.bf16.gmra.mrb[28].mxu1 %vm1374_vm1, %v1752_v4 }
 0x883   : > { %3864 = vmatprep.mubr.msk.bf16.mxu1 %vm1374_vm1, %v2043_v45  ;;  %v4275_v45 = vpop.eup %4274 }
 0x884   : > { %v4277_v32 = vpop.eup %4276  ;;  %v2039_v21 = vmul.f32 %v4275_v45, %v5632_v31 }
 0x885   : > { %v2041_v54 = vmul.f32 %v4277_v32, %v5636_v40 }
 0x88a   : > { %3865 = vmatmul.mubr.msk.bf16.vlgmr.msra.gmra.mrb[32].mxu1 %vm1374_vm1, %v2044_v19  ;;  %v2042_v19 = vmul.f32 %v4273_v28, %v5640_v39 }
 0x88b   : > { %3873 = vmatpush3.bf16.xpose.msra.mxu1 %v2169_v33 }
 0x88c   : > { %v2046_v5 = vpack.c.bf16 %v2042_v19, %v2041_v54 }
 0x8a6   : > { %v2020_v18 = vpop.xlane.xlu1 %2019 }
 0x8a7   : > { %4278 = vrcp.f32 %v2020_v18 }
 0x8aa   : > { %v2151_v6 = vpop.permute.xlu1 %2150 }
 0x8ab   : > { %v2172_v12 = vsel %vm1284_vm0, %v2151_v6, 0  ;;  %3941 = vmatprep.subr.msk.bf16.mxu1 %vm1284_vm0, %v2151_v6 }
 0x8ac   : > { %3875 = vmatpush3.bf16.xpose.msra.mxu1 %v2172_v12 }
 0x8ae   : > { %v2153_v57 = vpop.permute.xlu1 %2152 }
 0x8af   : > { %3942 = vmatprep.subr.msk.bf16.mxu1 %vm1284_vm0, %v2153_v57  ;;  %v2175_v2 = vsel %vm1284_vm0, %v2153_v57, 0 }
 0x8b1   : > { %v4279_v10 = vpop.eup %4278 }
 0x8b2   : > { %v2040_v16 = vmul.f32 %v4279_v10, %v5681_v26  ;;  %v2155_v55 = vpop.permute.xlu1 %2154  ;;  %v2145_v26 = vpop.permute.xlu0 %2144 }
 0x8b3   : > { %v2178_v31 = vsel %vm1284_vm0, %v2155_v55, 0 }
 0x8b4   : > { %3877 = vmatpush3.bf16.xpose.msra.mxu1 %v2175_v2  ;;  %v2045_v3 = vpack.c.bf16 %v2040_v16, %v2039_v21 }
 0x8b5   : > { %3943 = vmatprep.subr.msk.bf16.mxu1 %vm1284_vm0, %v2155_v55 }
 0x8b6   : > { %3868 = vmatprep.mubr.msk.bf16.mxu1 %vm1374_vm1, %v2045_v3  ;;  %v2143_v39 = vpop.permute.xlu1 %2142 }
 0x8b7   : > { %3869 = vmatmul.mubr.msk.bf16.gmra.mrb[36].mxu1 %vm1374_vm1, %v2046_v5 }
 0x8b8   : > { %3880 = vmatprep.mubr.msk.bf16.mxu1 %vm1284_vm0, %v2141_v17 }
 0x8ba   : > { %v2147_v40 = vpop.permute.xlu1 %2146 }
 0x8bc   : > { %3879 = vmatpush3.bf16.xpose.msra.mxu1 %v2178_v31 }
 0x8c3   : > { %3881 = vmatmul.mubr.msk.bf16.vlgmr.msra.gmra.mrb[40].mxu1 %vm1284_vm0, %v2143_v39 }
 0x8c4   : > { %3884 = vmatprep.mubr.msk.bf16.mxu1 %vm1284_vm0, %v2145_v26 }
 0x8cb   : > { %3885 = vmatmul.mubr.msk.bf16.gmra.mrb[44].mxu1 %vm1284_vm0, %v2147_v40 }
 0x8cc   : > { %2905 = vmatprep.mubr.bf16.mxu1 %v6204_v42 }
 0x8f4   : > { %v5734_v49 = vpop.f32.mrb[24].mxu1 }
 0x8f5   : > { %v5736_v25 = vpop.f32.mrb[25].mxu1 }
 0x8f6   : > { %v5738_v52 = vpop.f32.mrb[26].mxu1 }
 0x8f7   : > { %v1847_v53 = vpack.c.bf16 %v5738_v52, %v5734_v49  ;;  %v5742_v9 = vpop.f32.mrb[27].mxu1 }
 0x8f8   : > { %v1846_v50 = vpack.c.bf16 %v5742_v9, %v5736_v25 }
 0x955   : > { %v5746_v46 = vpop.f32.mrb[28].mxu1 }
 0x956   : > { %v5748_v11 = vpop.f32.mrb[29].mxu1 }
 0x957   : > { %v5750_v13 = vpop.f32.mrb[30].mxu1 }
 0x958   : > { %v1849_v29 = vpack.c.bf16 %v5750_v13, %v5746_v46  ;;  %v5754_v22 = vpop.f32.mrb[31].mxu1 }
 0x959   : > { %v1848_v41 = vpack.c.bf16 %v5754_v22, %v5748_v11 }
 0x95d   : > { %v5758_v61 = vpop.f32.mrb[32].mxu1 }
 0x95e   : > { %v5760_v51 = vpop.f32.mrb[33].mxu1 }
 0x95f   : > { %v5762_v27 = vpop.f32.mrb[34].mxu1 }
 0x960   : > { %v2137_v7 = vpack.c.bf16 %v5762_v27, %v5758_v61  ;;  %v5766_v8 = vpop.f32.mrb[35].mxu1 }
 0x961   : > { %v2136_v44 = vpack.c.bf16 %v5766_v8, %v5760_v51 }
 0x98a   : > { %v5770_v58 = vpop.f32.mrb[36].mxu1 }
 0x98b   : > { %v5772_v60 = vpop.f32.mrb[37].mxu1 }
 0x98c   : > { %v5774_v59 = vpop.f32.mrb[38].mxu1 }
 0x98d   : > { %v2139_v24 = vpack.c.bf16 %v5774_v59, %v5770_v58  ;;  %v5778_v4 = vpop.f32.mrb[39].mxu1 }
 0x98e   : > { %v2138_v33 = vpack.c.bf16 %v5778_v4, %v5772_v60 }
 0x996   : > { %v3882_v18 = vpop.f32.mrb[40].mxu1 }
 0x997   : > { %v2214_v6 = vpop.f32.mrb[41].mxu1  ;;  %v2251_v32 = vsel %vm1374_vm1, %v3882_v18, -inf }
 0x998   : > { %v3883_v12 = vpop.f32.mrb[42].mxu1  ;;  %v2245_v28 = vsel %vm1374_vm1, %v2214_v6, -inf }
 0x999   : > { %2246 = vmax.xlane.f32.xlu0 %v2245_v28  ;;  %v2217_v57 = vpop.f32.mrb[43].mxu1  ;;  %v2254_v16 = vsel %vm1374_vm1, %v3883_v12, -inf }
 0x99a   : > { %v2248_v45 = vsel %vm1374_vm1, %v2217_v57, -inf }
 0x99b   : > { %2249 = vmax.xlane.f32.xlu1 %v2248_v45 }
 0x99d   : > { %2252 = vmax.xlane.f32.xlu0 %v2251_v32 }
 0x99e   : > { %v3886_v10 = vpop.f32.mrb[44].mxu1 }
 0x99f   : > { %v2230_v19 = vpop.f32.mrb[45].mxu1  ;;  %v2263_v5 = vsel %vm1374_vm1, %v3886_v10, -inf }
 0x9a0   : > { %v3887_v21 = vpop.f32.mrb[46].mxu1  ;;  %v2257_v55 = vsel %vm1374_vm1, %v2230_v19, -inf }
 0x9a1   : > { %2255 = vmax.xlane.f32.xlu0 %v2254_v16  ;;  %v2233_v2 = vpop.f32.mrb[47].mxu1  ;;  %v2266_v3 = vsel %vm1374_vm1, %v3887_v21, -inf }
 0x9a2   : > { %v2260_v54 = vsel %vm1374_vm1, %v2233_v2, -inf }
 0x9a3   : > { %2261 = vmax.xlane.f32.xlu1 %v2260_v54 }
 0x9a5   : > { %2258 = vmax.xlane.f32.xlu0 %v2257_v55 }
 0x9a7   : > { %2267 = vmax.xlane.f32.xlu1 %v2266_v3 }
 0x9a9   : > { %2264 = vmax.xlane.f32.xlu0 %v2263_v5 }
 0x9bf   : > { %2337 = vrot.lane.b32.xlu0 %v5294_v20, %s4682_s10 }
 0xa26   : > { %v2247_v17 = vpop.xlane.xlu0 %2246 }
 0xa27   : > { %v2269_v31 = vsub.f32 %v2214_v6, %v2247_v17 }
 0xa28   : > { %v2250_v39 = vpop.xlane.xlu1 %2249 }
 0xa29   : > { %v2277_v28 = vmul.f32 1.442695, %v2269_v31  ;;  %v2270_v45 = vsub.f32 %v2217_v57, %v2250_v39 }
 0xa2a   : > { %v2253_v26 = vpop.xlane.xlu0 %2252 }
 0xa2b   : > { %v2271_v40 = vsub.f32 %v3882_v18, %v2253_v26  ;;  %v2279_v3 = vmul.f32 1.442695, %v2270_v45 }
 0xa2d   : > { %v2281_v32 = vmul.f32 1.442695, %v2271_v40 }
 0xa2e   : > { %v2256_v16 = vpop.xlane.xlu0 %2255 }
 0xa2f   : > { %4280 = vpow2.f32 %v2281_v32  ;;  %v2272_v54 = vsub.f32 %v3883_v12, %v2256_v16 }
 0xa30   : > { %v2262_v55 = vpop.xlane.xlu1 %2261  ;;  %4282 = vpow2.f32 %v2277_v28 }
 0xa31   : > { %v2283_v0 = vmul.f32 1.442695, %v2272_v54 }
 0xa32   : > { %v2259_v42 = vpop.xlane.xlu0 %2258 }
 0xa33   : > { %4284 = vpow2.f32 %v2283_v0  ;;  %v2273_v5 = vsub.f32 %v2230_v19, %v2259_v42  ;;  %v2274_v42 = vsub.f32 %v2233_v2, %v2262_v55 }
 0xa34   : > { %4286 = vpow2.f32 %v2279_v3  ;;  %v2268_v20 = vpop.xlane.xlu1 %2267 }
 0xa35   : > { %v2285_v18 = vmul.f32 1.442695, %v2273_v5  ;;  %v2276_v31 = vsub.f32 %v3887_v21, %v2268_v20  ;;  %v2287_v40 = vmul.f32 1.442695, %v2274_v42 }
 0xa36   : > { %v2265_v38 = vpop.xlane.xlu0 %2264 }
 0xa37   : > { %v2275_v6 = vsub.f32 %v3886_v10, %v2265_v38  ;;  %v2291_v19 = vmul.f32 1.442695, %v2276_v31 }
 0xa39   : > { %v5792_v17 = vpop.eup %4280  ;;  %v2289_v57 = vmul.f32 1.442695, %v2275_v6 }
 0xa3a   : > { %v2338_v39 = vpop.permute.xlu0 %2337  ;;  %v2299_v12 = vsel %vm1374_vm1, %v5792_v17, 0.0  ;;  %v4283_v26 = vpop.eup %4282 }
 0xa3b   : > { %4288 = vpow2.f32 %v2289_v57  ;;  %2300 = vadd.xlane.f32.xlu0 %v2299_v12  ;;  %3888 = vmatprep.subr.bf16.mxu0 %v2338_v39  ;;  %v2293_v38 = vsel %vm1374_vm1, %v4283_v26, 0.0 }
 0xa3c   : > { %3889 = vmatpush3.bf16.msra.mxu0 %v2338_v39  ;;  %4290 = vpow2.f32 %v2285_v18 }
 0xa3d   : > { %v5796_v0 = vpop.eup %4284  ;;  %4292 = vpow2.f32 %v2291_v19 }
 0xa3e   : > { %v2302_v10 = vsel %vm1374_vm1, %v5796_v0, 0.0  ;;  %v4287_v21 = vpop.eup %4286  ;;  %4294 = vpow2.f32 %v2287_v40 }
 0xa3f   : > { %2294 = vadd.xlane.f32.xlu0 %v2293_v38  ;;  %2303 = vadd.xlane.f32.xlu1 %v2302_v10  ;;  %v2296_v28 = vsel %vm1374_vm1, %v4287_v21, 0.0 }
 0xa43   : > { %2297 = vadd.xlane.f32.xlu1 %v2296_v28 }
 0xa45   : > { %v5802_v45 = vpop.eup %4288 }
 0xa46   : > { %v2311_v2 = vsel %vm1374_vm1, %v5802_v45, 0.0  ;;  %v4291_v32 = vpop.eup %4290 }
 0xa47   : > { %2312 = vadd.xlane.f32.xlu1 %v2311_v2  ;;  %v2305_v16 = vsel %vm1374_vm1, %v4291_v32, 0.0  ;;  %v4293_v54 = vpop.eup %4292 }
 0xa48   : > { %v2314_v55 = vsel %vm1374_vm1, %v4293_v54, 0.0  ;;  %v4295_v3 = vpop.eup %4294 }
 0xa49   : > { %v2308_v5 = vsel %vm1374_vm1, %v4295_v3, 0.0 }
 0xa4b   : > { %2306 = vadd.xlane.f32.xlu1 %v2305_v16  ;;  %v4105_v16 = vld [vmem:[#allocation12 + $0x8] sm:$0xff]  }
 0xa4f   : > { %2315 = vadd.xlane.f32.xlu1 %v2314_v55  ;;  %v4108_v55 = vld [vmem:[#allocation12 + $0x20] sm:$0xff]  }
 0xa53   : > { %2309 = vadd.xlane.f32.xlu1 %v2308_v5 }
 0xa55   : > { %2341 = vrot.lane.b32.xlu0 %v5325_v47, %s4682_s10 }
 0xa59   : > { %2343 = vrot.lane.b32.xlu0 %v5345_v62, %s4682_s10 }
 0xa5d   : > { %2434 = vrot.lane.b32.xlu0 %v1846_v50, %s4682_s10 }
 0xa61   : > { %2446 = vrot.lane.b32.xlu0 %v2136_v44, %s4681_s4 }
 0xa64   : > { %2339 = vrot.lane.b32.xlu1 %v5308_v30, %s4682_s10 }
 0xa68   : > { %2436 = vrot.lane.b32.xlu1 %v1847_v53, %s4682_s10 }
 0xa6c   : > { %2448 = vrot.lane.b32.xlu1 %v2137_v7, %s4681_s4 }
 0xac8   : > { %v2301_v47 = vpop.xlane.xlu0 %2300 }
 0xacc   : > { %v2304_v62 = vpop.xlane.xlu1 %2303  ;;  %v2295_v25 = vpop.xlane.xlu0 %2294 }
 0xacd   : > { %4296 = vrcp.f32 %v2295_v25 }
 0xad0   : > { %v2298_v9 = vpop.xlane.xlu1 %2297  ;;  %v2342_v53 = vpop.permute.xlu0 %2341 }
 0xad1   : > { %4298 = vrcp.f32 %v2298_v9 }
 0xad2   : > { %4300 = vrcp.f32 %v2304_v62 }
 0xad3   : > { %4302 = vrcp.f32 %v2301_v47 }
 0xad4   : > { %v2313_v50 = vpop.xlane.xlu1 %2312  ;;  %v2344_v31 = vpop.permute.xlu0 %2343 }
 0xad7   : > { %v4297_v8 = vpop.eup %4296 }
 0xad8   : > { %v2307_v51 = vpop.xlane.xlu1 %2306  ;;  %v2325_v20 = vmul.f32 %v4297_v8, %v4283_v26  ;;  %v2435_v11 = vpop.permute.xlu0 %2434 }
 0xad9   : > { %4304 = vrcp.f32 %v2307_v51  ;;  %v2468_v22 = vsel %vm1284_vm0, %v1544_v35, %v2435_v11 }
 0xadb   : > { %v4299_v30 = vpop.eup %4298 }
 0xadc   : > { %v2316_v44 = vpop.xlane.xlu1 %2315  ;;  %v2326_v6 = vmul.f32 %v4299_v30, %v4287_v21  ;;  %v4301_v27 = vpop.eup %4300 }
 0xadd   : > { %v4303_v7 = vpop.eup %4302  ;;  %v2328_v39 = vmul.f32 %v4301_v27, %v5796_v0  ;;  %v4104_v0 = vld [vmem:[#allocation12] sm:$0xff]  }
 0xade   : > { %v2333_v49 = vpack.c.bf16 %v2326_v6, %v2325_v20  ;;  %v2327_v26 = vmul.f32 %v4303_v7, %v5792_v17  ;;  %v4106_v17 = vld [vmem:[#allocation12 + $0x10] sm:$0xff]  }
 0xae0   : > { %v2310_v52 = vpop.xlane.xlu1 %2309  ;;  %3896 = vmatprep.mubr.msk.bf16.mxu0 %vm1374_vm1, %v2333_v49  ;;  %v2334_v19 = vpack.c.bf16 %v2328_v39, %v2327_v26  ;;  %v4360_v39 = vld [vmem:[%s5089_s20] sm:$0xff] }
 0xae1   : > { %4306 = vrcp.f32 %v2310_v52 }
 0xae2   : > { %4308 = vrcp.f32 %v2316_v44 }
 0xae3   : > { %4310 = vrcp.f32 %v2313_v50  ;;  %v4305_v18 = vpop.eup %4304 }
 0xae4   : > { %v2340_v61 = vpop.permute.xlu1 %2339  ;;  %v2329_v42 = vmul.f32 %v4305_v18, %v4291_v32  ;;  %v4107_v32 = vld [vmem:[#allocation12 + $0x18] sm:$0xff]  }
 0xae5   : > { %3890 = vmatprep.subr.bf16.mxu0 %v2340_v61 }
 0xae6   : > { %3891 = vmatpush3.bf16.msra.mxu0 %v2340_v61 }
 0xae7   : > { %3892 = vmatprep.subr.bf16.mxu0 %v2342_v53 }
 0xae8   : > { %v2437_v46 = vpop.permute.xlu1 %2436 }
 0xae9   : > { %v2471_v60 = vsel %vm1284_vm0, %v1545_v56, %v2437_v46  ;;  %v6248_v56 = vpack.c.bf16 %v5487_v37, %v5483_v1  ;;  %v3572_v1 = vld [vmem:[%s6249_s12] ss:$0 sm:$0xff] }
 0xaea   : > { %3893 = vmatpush3.bf16.msra.mxu0 %v2342_v53 }
 0xaeb   : > { %v4307_v57 = vpop.eup %4306  ;;  %3894 = vmatprep.subr.bf16.mxu0 %v2344_v31 }
 0xaec   : > { %v2330_v12 = vmul.f32 %v4307_v57, %v4295_v3  ;;  %v4309_v38 = vpop.eup %4308  ;;  %v4111_v3 = vld [vmem:[#allocation12 + $0x38] sm:$0xff]   ;;  %v2449_v13 = vpop.permute.xlu1 %2448 }
 0xaed   : > { %v4311_v21 = vpop.eup %4310  ;;  %v2332_v40 = vmul.f32 %v4309_v38, %v4293_v54  ;;  %v4109_v54 = vld [vmem:[#allocation12 + $0x28] sm:$0xff]   ;;  %v4362_v38 = vld [vmem:[%s5089_s20 + $0x10] sm:$0xff] }
 0xaee   : > { %3895 = vmatpush3.bf16.msra.mxu0 %v2344_v31  ;;  %v2335_v10 = vpack.c.bf16 %v2330_v12, %v2329_v42  ;;  %v2331_v28 = vmul.f32 %v4311_v21, %v5802_v45  ;;  %v4110_v45 = vld [vmem:[#allocation12 + $0x30] sm:$0xff]   ;;  %v4361_v42 = vld [vmem:[%s5089_s20 + $0x8] sm:$0xff] }
 0xaef   : > { %3904 = vmatprep.subr.bf16.mxu0 %v4104_v0 }
 0xaf0   : > { %v2336_v2 = vpack.c.bf16 %v2332_v40, %v2331_v28  ;;  %v4363_v40 = vld [vmem:[%s5089_s20 + $0x18] sm:$0xff] }
 0xaf1   : > { %3897 = vmatmul.mubr.msk.bf16.vlgmr.msra.gmra.mrb[32].mxu0 %vm1374_vm1, %v2334_v19 }
 0xaf2   : > { %3900 = vmatprep.mubr.msk.bf16.mxu0 %vm1374_vm1, %v2335_v10  ;;  %3905 = vmatpush3.bf16.msra.mxu0 %v4104_v0 }
 0xaf3   : > { %3906 = vmatprep.subr.bf16.mxu0 %v4105_v16 }
 0xaf6   : > { %3907 = vmatpush3.bf16.msra.mxu0 %v4105_v16 }
 0xaf7   : > { %3908 = vmatprep.subr.bf16.mxu0 %v4106_v17 }
 0xaf9   : > { %3901 = vmatmul.mubr.msk.bf16.gmra.mrb[36].mxu0 %vm1374_vm1, %v2336_v2 }
 0xafa   : > { %3909 = vmatpush3.bf16.msra.mxu0 %v4106_v17 }
 0xafb   : > { %3910 = vmatprep.subr.bf16.mxu0 %v4107_v32 }
 0xafe   : > { %3911 = vmatpush3.bf16.msra.mxu0 %v4107_v32 }
 0xaff   : > { %3912 = vmatprep.subr.bf16.mxu0 %v4108_v55 }
 0xb02   : > { %3913 = vmatpush3.bf16.msra.mxu0 %v4108_v55 }
 0xb03   : > { %3914 = vmatprep.subr.bf16.mxu0 %v4109_v54 }
 0xb06   : > { %3915 = vmatpush3.bf16.msra.mxu0 %v4109_v54  ;;  %v4364_v54 = vld [vmem:[%s5089_s20 + $0x20] sm:$0xff] }
 0xb07   : > { %3916 = vmatprep.subr.bf16.mxu0 %v4110_v45 }
 0xb0a   : > { %3917 = vmatpush3.bf16.msra.mxu0 %v4110_v45 }
 0xb0b   : > { %3918 = vmatprep.subr.bf16.mxu0 %v4111_v3 }
 0xb0e   : > { %3919 = vmatpush3.bf16.msra.mxu0 %v4111_v3 }
 0xbc4   : > { %v3898_v5 = vpop.f32.mrb[32].mxu0 }
 0xbc5   : > { %v2395_v47 = vpop.f32.mrb[33].mxu0 }
 0xbc6   : > { %v3899_v62 = vpop.f32.mrb[34].mxu0 }
 0xbc7   : > { %v2427_v25 = vpack.c.bf16 %v3899_v62, %v3898_v5  ;;  %v2398_v9 = vpop.f32.mrb[35].mxu0 }
 0xbc8   : > { %v2426_v50 = vpack.c.bf16 %v2398_v9, %v2395_v47  ;;  %v4365_v47 = vld [vmem:[%s5089_s20 + $0x28] sm:$0xff] }
 0xbc9   : > { %2460 = vrot.lane.b32.xlu1 %v2427_v25, %s4680_s5  ;;  %v4366_v25 = vld [vmem:[%s5089_s20 + $0x30] sm:$0xff] }
 0xbca   : > { %2458 = vrot.lane.b32.xlu0 %v2426_v50, %s4680_s5  ;;  %v4367_v50 = vld [vmem:[%s5089_s20 + $0x38] sm:$0xff] }
 0xbcc   : > { %v3902_v51 = vpop.f32.mrb[36].mxu0 }
 0xbcd   : > { %2440 = vrot.lane.b32.xlu1 %v1849_v29, %s4682_s10  ;;  %v2411_v8 = vpop.f32.mrb[37].mxu0  ;;  %v2447_v29 = vpop.permute.xlu0 %2446 }
 0xbce   : > { %2438 = vrot.lane.b32.xlu0 %v1848_v41, %s4682_s10  ;;  %v3903_v30 = vpop.f32.mrb[38].mxu0  ;;  %v2479_v58 = vsel %vm1374_vm1, %v2468_v22, %v2447_v29 }
 0xbcf   : > { %v2429_v44 = vpack.c.bf16 %v3903_v30, %v3902_v51  ;;  %v2414_v20 = vpop.f32.mrb[39].mxu0  ;;  %v4114_v30 = vld [vmem:[#allocation13 + $0x4] ss:$8 sps:$4 sm:$0xff]  }
 0xbd0   : > { %v2428_v6 = vpack.c.bf16 %v2414_v20, %v2411_v8  ;;  %v4112_v8 = vld [vmem:[#allocation13] ss:$8 sps:$4 sm:$0xff]   ;;  %2873 = vmatprep.subr.bf16.mxu1 %v4114_v30  ;;  %v4115_v20 = vld [vmem:[#allocation13 + $0x10] ss:$8 sps:$4 sm:$0xff]  }
 0xbd1   : > { %2452 = vrot.lane.b32.xlu1 %v2139_v24, %s4681_s4  ;;  %v2481_v24 = vsel %vm1374_vm1, %v2471_v60, %v2449_v13  ;;  %2874 = vmatpush1.bf16.msra.mxu1 %v4112_v8 }
 0xbd2   : > { %2450 = vrot.lane.b32.xlu0 %v2138_v33, %s4681_s4  ;;  %s6097_s4 = scalar_lea.vmem [#allocation16], %s5079_s18  ;;  %s6257_s18 = sld [smem:[#allocation23_spill]] }
 0xbd3   : > { %s3330_s19 = sshll.u32 %s6097_s4, 4  ;;  %s6118_s19 = int_to_ptr.vmem [resolvable:$true] %s3330_s19 }
 0xbd4   : > { %s4568_s11 = scalar_lea.vmem %s6118_s19, 1024 }
 0xbd5   : > { %2464 = vrot.lane.b32.xlu1 %v2429_v44, %s4680_s5  ;;  %v4117_v44 = vld [vmem:[#allocation13 + $0x14] ss:$8 sps:$4 sm:$0xff]   ;;  %p4569_p6 = scmp.ne.s32.totalorder %s6118_s19, %s4568_s11 }
 0xbd6   : > { %2462 = vrot.lane.b32.xlu0 %v2428_v6, %s4680_s5  ;;  %2875 = vmatprep.subr.bf16.mxu1 %v4117_v44  ;;  %s6256_s5 = sld [smem:[#allocation36_spill]] }
 0xbd7   : > { %2876 = vmatpush1.bf16.msra.mxu1 %v4115_v20  ;;  %p4570_p7 = pnand %p4569_p6, %p6259_p0 }
 0xbd8   : > { %s3623_s10 = sshll.u32 %s6257_s18, 10 }
 0xbd9   : > { %s6116_s20 = scalar_lea.hbm %s6258_s28, %s3623_s10  ;;  %p4571_p5 = pneg %p4570_p7 }
 0xc3b   : > { %v2461_v41 = vpop.permute.xlu1 %2460 }
 0xc3c   : > { %v2459_v59 = vpop.permute.xlu0 %2458  ;;  %v2491_v33 = vsel %vm2486_vm2, %v2481_v24, %v2461_v41 }
 0xc3d   : > { %v2488_v4 = vsel %vm2486_vm2, %v2479_v58, %v2459_v59 }
 0xc3e   : > { %3920 = vmatprep.mubr.bf16.mxu0 %v2488_v4 }
 0xc3f   : > { %v2441_v49 = vpop.permute.xlu1 %2440  ;;  %3921 = vmatmul.mubr.bf16.vlgmr.msra.gmra.mrb[40].mxu0 %v2491_v33 }
 0xc40   : > { %v2439_v23 = vpop.permute.xlu0 %2438  ;;  %v2477_v52 = vsel %vm1284_vm0, %v6248_v56, %v2441_v49 }
 0xc41   : > { %v2474_v34 = vsel %vm1284_vm0, %v1546_v43, %v2439_v23 }
 0xc43   : > { %v2453_v15 = vpop.permute.xlu1 %2452 }
 0xc44   : > { %v2451_v35 = vpop.permute.xlu0 %2450  ;;  %v2485_v27 = vsel %vm1374_vm1, %v2477_v52, %v2453_v15 }
 0xc45   : > { %v2483_v53 = vsel %vm1374_vm1, %v2474_v34, %v2451_v35 }
 0xc47   : > { %v2465_v14 = vpop.permute.xlu1 %2464 }
 0xc48   : > { %v2463_v61 = vpop.permute.xlu0 %2462  ;;  %v2497_v36 = vsel %vm2486_vm2, %v2485_v27, %v2465_v14 }
 0xc49   : > { %v2494_v7 = vsel %vm2486_vm2, %v2483_v53, %v2463_v61 }
 0xc4a   : > { %3924 = vmatprep.mubr.bf16.mxu0 %v2494_v7 }
 0xc4b   : > { %3925 = vmatmul.mubr.bf16.gmra.mrb[44].mxu0 %v2497_v36 }
 0xd12   : > { %v3922_v37 = vpop.f32.mrb[40].mxu0 }
 0xd13   : > { %v2604_v48 = vpop.f32.mrb[41].mxu0  ;;  %v2613_v57 = vadd.f32 %v3922_v37, %v3572_v1 }
 0xd14   : > { %v2605_v43 = vadd.f32 %v3572_v1, %v2604_v48  ;;  %v3923_v18 = vpop.f32.mrb[42].mxu0 }
 0xd15   : > { %v2607_v31 = vpop.f32.mrb[43].mxu0  ;;  %v5893_v10 = vadd.f32 %v4362_v38, %v2613_v57  ;;  %v2616_v21 = vadd.f32 %v3923_v18, %v3572_v1  ;;  %v4126_v38 = vld [vmem:[#allocation13 + $0x44] ss:$8 sps:$4 sm:$0xff]  }
 0xd16   : > { %v5886_v12 = vadd.f32 %v4360_v39, %v2605_v43  ;;  %v2608_v26 = vadd.f32 %v3572_v1, %v2607_v31  ;;  %v4120_v31 = vld [vmem:[#allocation13 + $0x24] ss:$8 sps:$4 sm:$0xff]   ;;  %v4118_v39 = vld [vmem:[#allocation13 + $0x20] ss:$8 sps:$4 sm:$0xff]  }
 0xd17   : > { %v5898_v28 = vadd.f32 %v4363_v40, %v2616_v21  ;;  %2877 = vmatprep.subr.bf16.mxu1 %v4120_v31  ;;  %v4124_v21 = vld [vmem:[#allocation13 + $0x40] ss:$8 sps:$4 sm:$0xff]   ;;  %v4129_v40 = vld [vmem:[#allocation13 + $0x54] ss:$8 sps:$4 sm:$0xff]  }
 0xd18   : > { %v5889_v19 = vadd.f32 %v4361_v42, %v2608_v26  ;;  %2645 = vadd.xlane.f32.xlu0 %v5886_v12  ;;  %2878 = vmatpush1.bf16.msra.mxu1 %v4118_v39  ;;  %v4123_v26 = vld [vmem:[#allocation13 + $0x34] ss:$8 sps:$4 sm:$0xff]   ;;  %v4121_v42 = vld [vmem:[#allocation13 + $0x30] ss:$8 sps:$4 sm:$0xff]  }
 0xd19   : > { %2879 = vmatprep.subr.bf16.mxu1 %v4123_v26 }
 0xd1a   : > { %2647 = vadd.xlane.f32.xlu1 %v5889_v19 }
 0xd1c   : > { %2649 = vadd.xlane.f32.xlu0 %v5893_v10  ;;  %2880 = vmatpush1.bf16.msra.mxu1 %v4121_v42 }
 0xd1d   : > { %2881 = vmatprep.subr.bf16.mxu1 %v4126_v38 }
 0xd1e   : > { %v3926_v2 = vpop.f32.mrb[44].mxu0 }
 0xd1f   : > { %v2620_v0 = vpop.f32.mrb[45].mxu0  ;;  %v2629_v55 = vadd.f32 %v3926_v2, %v3572_v1  ;;  %v4127_v2 = vld [vmem:[#allocation13 + $0x50] ss:$8 sps:$4 sm:$0xff]  }
 0xd20   : > { %v2621_v16 = vadd.f32 %v3572_v1, %v2620_v0  ;;  %2651 = vadd.xlane.f32.xlu0 %v5898_v28  ;;  %v3927_v17 = vpop.f32.mrb[46].mxu0  ;;  %2882 = vmatpush1.bf16.msra.mxu1 %v4124_v21  ;;  %v4132_v0 = vld [vmem:[#allocation13 + $0x64] ss:$8 sps:$4 sm:$0xff]   ;;  %v6252_v21 = vmov 0  }
 0xd21   : > { %v2623_v32 = vpop.f32.mrb[47].mxu0  ;;  %v2632_v5 = vadd.f32 %v3927_v17, %v3572_v1  ;;  %v5909_v9 = vadd.f32 %v4366_v25, %v2629_v55  ;;  %2883 = vmatprep.subr.bf16.mxu1 %v4129_v40  ;;  %v4135_v17 = vld [vmem:[#allocation13 + $0x74] ss:$8 sps:$4 sm:$0xff]  }
 0xd22   : > { %v5902_v45 = vadd.f32 %v4364_v54, %v2621_v16  ;;  %v2624_v3 = vadd.f32 %v3572_v1, %v2623_v32  ;;  %v4130_v16 = vld [vmem:[#allocation13 + $0x60] ss:$8 sps:$4 sm:$0xff]   ;;  %v4133_v32 = vld [vmem:[#allocation13 + $0x70] ss:$8 sps:$4 sm:$0xff]  }
 0xd23   : > { %v5913_v51 = vadd.f32 %v4367_v50, %v2632_v5 }
 0xd24   : > { %v5905_v62 = vadd.f32 %v4365_v47, %v2624_v3  ;;  %2653 = vadd.xlane.f32.xlu0 %v5902_v45  ;;  %2884 = vmatpush1.bf16.msra.mxu1 %v4127_v2 }
 0xd25   : > { %2885 = vmatprep.subr.bf16.mxu1 %v4132_v0 }
 0xd26   : > { %2655 = vadd.xlane.f32.xlu1 %v5905_v62 }
 0xd28   : > { %2657 = vadd.xlane.f32.xlu0 %v5909_v9  ;;  %2886 = vmatpush1.bf16.msra.mxu1 %v4130_v16 }
 0xd29   : > { %2887 = vmatprep.subr.bf16.mxu1 %v4135_v17 }
 0xd2a   : > { %2659 = vadd.xlane.f32.xlu1 %v5913_v51 }
 0xd2c   : > { %2888 = vmatpush1.bf16.msra.mxu1 %v4133_v32 }
 0xda5   : > { %v2646_v6 = vpop.xlane.xlu0 %2645 }
 0xda6   : > { %v2661_v46 = vmul.f32 0.0078125, %v2646_v6 }
 0xda7   : > { %v2648_v11 = vpop.xlane.xlu1 %2647 }
 0xda8   : > { %v5918_v13 = vsub.f32 %v5886_v12, %v2661_v46  ;;  %v2662_v29 = vmul.f32 0.0078125, %v2648_v11 }
 0xda9   : > { %v2650_v22 = vpop.xlane.xlu0 %2649 }
 0xdaa   : > { %v5921_v41 = vsub.f32 %v5889_v19, %v2662_v29  ;;  %v2663_v58 = vmul.f32 0.0078125, %v2650_v22  ;;  %v2677_v60 = vmul.f32 %v5918_v13, %v5918_v13 }
 0xdac   : > { %v5926_v59 = vsub.f32 %v5893_v10, %v2663_v58  ;;  %2685 = vadd.xlane.f32.xlu0 %v2677_v60  ;;  %v2678_v24 = vmul.f32 %v5921_v41, %v5921_v41  ;;  %v3581_v58 = vld [vmem:[%s6250_s27] ss:$0 sm:$0xff]  ;;  %s3315_s27 = scalar_lea.sflag [#allocation6], %s5076_s6 }
 0xdad   : > { %v2652_v4 = vpop.xlane.xlu0 %2651 }
 0xdae   : > { %v2664_v33 = vmul.f32 0.0078125, %v2652_v4  ;;  %2687 = vadd.xlane.f32.xlu1 %v2678_v24  ;;  %v2679_v49 = vmul.f32 %v5926_v59, %v5926_v59 }
 0xdb0   : > { %v5933_v23 = vsub.f32 %v5898_v28, %v2664_v33  ;;  %2689 = vadd.xlane.f32.xlu0 %v2679_v49 }
 0xdb1   : > { %v2654_v15 = vpop.xlane.xlu0 %2653 }
 0xdb2   : > { %v2665_v35 = vmul.f32 0.0078125, %v2654_v15  ;;  %v2680_v34 = vmul.f32 %v5933_v23, %v5933_v23 }
 0xdb3   : > { %v2656_v14 = vpop.xlane.xlu1 %2655 }
 0xdb4   : > { %v5938_v56 = vsub.f32 %v5902_v45, %v2665_v35  ;;  %v2666_v52 = vmul.f32 0.0078125, %v2656_v14  ;;  %2691 = vadd.xlane.f32.xlu1 %v2680_v34 }
 0xdb5   : > { %v2658_v53 = vpop.xlane.xlu0 %2657 }
 0xdb6   : > { %v5941_v61 = vsub.f32 %v5905_v62, %v2666_v52  ;;  %v2667_v27 = vmul.f32 0.0078125, %v2658_v53  ;;  %v2681_v7 = vmul.f32 %v5938_v56, %v5938_v56 }
 0xdb7   : > { %v2660_v36 = vpop.xlane.xlu1 %2659 }
 0xdb8   : > { %v5946_v1 = vsub.f32 %v5909_v9, %v2667_v27  ;;  %v2668_v37 = vmul.f32 0.0078125, %v2660_v36  ;;  %2693 = vadd.xlane.f32.xlu0 %v2681_v7  ;;  %v2682_v48 = vmul.f32 %v5941_v61, %v5941_v61  ;;  %v3582_v7 = vld [vmem:[%s6251_s13] ss:$0 sm:$0xff]  ;;  %s4572_s13 = sshll.u32 %s4683_s15, 4  ;;  %s4573_s13 = int_to_ptr.vmem [resolvable:$false] %s4572_s13 }
 0xdb9   : > { %s4574_s8 = scalar_lea.vmem %s4573_s13, 2048  ;;  %p4575_p2 = scmp.lt.s32.totalorder %s6118_s19, %s4573_s13 }
 0xdba   : > { %v5951_v43 = vsub.f32 %v5913_v51, %v2668_v37  ;;  %2695 = vadd.xlane.f32.xlu1 %v2682_v48  ;;  %v2683_v18 = vmul.f32 %v5946_v1, %v5946_v1  ;;  %p4576_p4 = scmp.lt.s32.totalorder %s4574_s8, %s4568_s11 }
 0xdbc   : > { %2697 = vadd.xlane.f32.xlu0 %v2683_v18  ;;  %v2684_v57 = vmul.f32 %v5951_v43, %v5951_v43  ;;  %p4577_p9 = por %p4576_p4, %p4575_p2 }
 0xdbe   : > { %2699 = vadd.xlane.f32.xlu1 %v2684_v57  ;;  %p4578_p11 = pnand %p4577_p9, %p4571_p5 }
 0xe39   : > { %v2686_v55 = vpop.xlane.xlu0 %2685 }
 0xe3a   : > { %v2701_v54 = vmul.f32 0.0078125, %v2686_v55 }
 0xe3b   : > { %v2688_v3 = vpop.xlane.xlu1 %2687 }
 0xe3c   : > { %v2709_v5 = vadd.f32 1e-06, %v2701_v54  ;;  %v2702_v47 = vmul.f32 0.0078125, %v2688_v3 }
 0xe3d   : > { %v2690_v25 = vpop.xlane.xlu0 %2689 }
 0xe3e   : > { %4312 = vrsqrt.f32 %v2709_v5  ;;  %v2710_v50 = vadd.f32 1e-06, %v2702_v47  ;;  %v2703_v8 = vmul.f32 0.0078125, %v2690_v25 }
 0xe40   : > { %4314 = vrsqrt.f32 %v2710_v50  ;;  %v2711_v30 = vadd.f32 1e-06, %v2703_v8 }
 0xe41   : > { %v2692_v44 = vpop.xlane.xlu1 %2691 }
 0xe42   : > { %4316 = vrsqrt.f32 %v2711_v30  ;;  %v2704_v20 = vmul.f32 0.0078125, %v2692_v44 }
 0xe44   : > { %v2712_v6 = vadd.f32 1e-06, %v2704_v20  ;;  %v4136_v20 = vld [vmem:[#allocation15 + $0x40] sm:$0xff]  }
 0xe45   : > { %v2694_v46 = vpop.xlane.xlu0 %2693  ;;  %3712 = vmatprep.subr.bf16.mxu0 %v4136_v20 }
 0xe46   : > { %4318 = vrsqrt.f32 %v2712_v6  ;;  %v2705_v11 = vmul.f32 0.0078125, %v2694_v46  ;;  %v4137_v6 = vld [vmem:[#allocation15] sm:$0xff]   ;;  %v4138_v46 = vld [vmem:[#allocation15 + $0x48] sm:$0xff]  }
 0xe47   : > { %v2696_v29 = vpop.xlane.xlu1 %2695  ;;  %3713 = vmatpush3.bf16.msra.mxu0 %v4137_v6 }
 0xe48   : > { %v4313_v22 = vpop.eup %4312  ;;  %v2713_v60 = vadd.f32 1e-06, %v2705_v11  ;;  %v2706_v24 = vmul.f32 0.0078125, %v2696_v29  ;;  %v4139_v11 = vld [vmem:[#allocation15 + $0x8] sm:$0xff]   ;;  %3714 = vmatprep.subr.bf16.mxu0 %v4138_v46  ;;  %v4142_v29 = vld [vmem:[#allocation15 + $0x58] sm:$0xff]  }
 0xe49   : > { %v2725_v4 = vmul.f32 %v4313_v22, %v5918_v13  ;;  %v2698_v33 = vpop.xlane.xlu0 %2697  ;;  %v4143_v22 = vld [vmem:[#allocation15 + $0x18] sm:$0xff]  }
 0xe4a   : > { %v4315_v49 = vpop.eup %4314  ;;  %4320 = vrsqrt.f32 %v2713_v60  ;;  %v2714_v15 = vadd.f32 1e-06, %v2706_v24  ;;  %v2707_v35 = vmul.f32 0.0078125, %v2698_v33  ;;  %v4145_v60 = vld [vmem:[#allocation15 + $0x20] sm:$0xff]   ;;  %v4146_v24 = vld [vmem:[#allocation15 + $0x68] sm:$0xff]   ;;  %v4148_v33 = vld [vmem:[#allocation15 + $0x70] sm:$0xff]  }
 0xe4b   : > { %v2739_v34 = vmul.f32 %v3581_v58, %v2725_v4  ;;  %v2726_v14 = vmul.f32 %v4315_v49, %v5921_v41  ;;  %v2700_v52 = vpop.xlane.xlu1 %2699  ;;  %3715 = vmatpush3.bf16.msra.mxu0 %v4139_v11  ;;  %v4147_v4 = vld [vmem:[#allocation15 + $0x28] sm:$0xff]   ;;  %v4149_v49 = vld [vmem:[#allocation15 + $0x30] sm:$0xff]  }
 0xe4c   : > { %v4317_v53 = vpop.eup %4316  ;;  %4322 = vrsqrt.f32 %v2714_v15  ;;  %v2708_v27 = vmul.f32 0.0078125, %v2700_v52  ;;  %v2715_v37 = vadd.f32 1e-06, %v2707_v35  ;;  %v4150_v15 = vld [vmem:[#allocation15 + $0x78] sm:$0xff]  }
 0xe4d   : > { %v2740_v36 = vmul.f32 %v3581_v58, %v2726_v14  ;;  %v2753_v13 = vadd.f32 %v3582_v7, %v2739_v34  ;;  %v2727_v31 = vmul.f32 %v4317_v53, %v5926_v59  ;;  %v4151_v35 = vld [vmem:[#allocation15 + $0x38] sm:$0xff]   ;;  %v2781_v34 = vld [vmem:[%s6253_s9] sm:$0x3]  ;;  %v6254_v14 = vsub.s32 0, %v5273_v63 }
 0xe4e   : > { %v2716_v48 = vadd.f32 1e-06, %v2708_v27  ;;  %v6255_v53 = vsub.s32 1, %v5273_v63 }
 0xe4f   : > { %v2754_v18 = vadd.f32 %v3582_v7, %v2740_v36  ;;  %v2741_v26 = vmul.f32 %v3581_v58, %v2727_v31  ;;  %v5979_v52 = vrot.slane %v2781_v34, %v6254_v14 }
 0xe50   : > { %v4319_v57 = vpop.eup %4318  ;;  %4324 = vrsqrt.f32 %v2716_v48  ;;  %v5983_v27 = vrot.slane %v2781_v34, %v6255_v53 }
 0xe51   : > { %v2761_v39 = vpack.c.bf16 %v2754_v18, %v2753_v13  ;;  %v2728_v41 = vmul.f32 %v4319_v57, %v5933_v23  ;;  %4326 = vrsqrt.f32 %v2715_v37  ;;  %v2755_v0 = vadd.f32 %v3582_v7, %v2741_v26 }
 0xe53   : > { %2906 = vmatmul.mubr.bf16.vlgmr.msra.gmra.mrb[48].mxu1 %v2761_v39  ;;  %v2742_v42 = vmul.f32 %v3581_v58, %v2728_v41 }
 0xe54   : > { %v4321_v38 = vpop.eup %4320  ;;  %2915 = vmatprep.mubr.bf16.mxu1 %v6252_v21 }
 0xe55   : > { %v2756_v40 = vadd.f32 %v3582_v7, %v2742_v42  ;;  %v2729_v16 = vmul.f32 %v4321_v38, %v5938_v56 }
 0xe56   : > { %v4323_v2 = vpop.eup %4322 }
 0xe57   : > { %v2730_v17 = vmul.f32 %v4323_v2, %v5941_v61  ;;  %v2762_v59 = vpack.c.bf16 %v2756_v40, %v2755_v0  ;;  %v2743_v54 = vmul.f32 %v3581_v58, %v2729_v16 }
 0xe59   : > { %v2744_v32 = vmul.f32 %v3581_v58, %v2730_v17  ;;  %v2757_v47 = vadd.f32 %v3582_v7, %v2743_v54 }
 0xe5a   : > { %v4325_v55 = vpop.eup %4324 }
 0xe5b   : > { %2916 = vmatmul.mubr.bf16.gmra.mrb[52].mxu1 %v2762_v59  ;;  %v4327_v23 = vpop.eup %4326  ;;  %v2758_v3 = vadd.f32 %v3582_v7, %v2744_v32  ;;  %v2732_v5 = vmul.f32 %v4325_v55, %v5951_v43  ;;  %v4140_v43 = vld [vmem:[#allocation15 + $0x50] sm:$0xff]  }
 0xe5c   : > { %2925 = vmatprep.mubr.bf16.mxu1 %v6252_v21  ;;  %v2731_v25 = vmul.f32 %v4327_v23, %v5946_v1  ;;  %v4141_v1 = vld [vmem:[#allocation15 + $0x10] sm:$0xff]   ;;  %3716 = vmatprep.subr.bf16.mxu0 %v4140_v43 }
 0xe5d   : > { %v2763_v50 = vpack.c.bf16 %v2758_v3, %v2757_v47  ;;  %v2746_v8 = vmul.f32 %v3581_v58, %v2732_v5  ;;  %3717 = vmatpush3.bf16.msra.mxu0 %v4141_v1 }
 0xe5e   : > { %v2745_v56 = vmul.f32 %v3581_v58, %v2731_v25  ;;  %3718 = vmatprep.subr.bf16.mxu0 %v4142_v29  ;;  %v4144_v58 = vld [vmem:[#allocation15 + $0x60] sm:$0xff]  }
 0xe5f   : > { %v2760_v61 = vadd.f32 %v3582_v7, %v2746_v8 }
 0xe60   : > { %v2759_v30 = vadd.f32 %v3582_v7, %v2745_v56 }
 0xe61   : > { %3719 = vmatpush3.bf16.msra.mxu0 %v4143_v22 }
 0xe62   : > { %v2764_v44 = vpack.c.bf16 %v2760_v61, %v2759_v30  ;;  %3720 = vmatprep.subr.bf16.mxu0 %v4144_v58 }
 0xe63   : > { %2926 = vmatmul.mubr.bf16.gmra.mrb[56].mxu1 %v2763_v50 }
 0xe64   : > { %2935 = vmatprep.mubr.bf16.mxu1 %v6252_v21 }
 0xe65   : > { %3721 = vmatpush3.bf16.msra.mxu0 %v4145_v60 }
 0xe66   : > { %3722 = vmatprep.subr.bf16.mxu0 %v4146_v24 }
 0xe69   : > { %3723 = vmatpush3.bf16.msra.mxu0 %v4147_v4 }
 0xe6a   : > { %3724 = vmatprep.subr.bf16.mxu0 %v4148_v33 }
 0xe6b   : > { %2936 = vmatmul.mubr.bf16.gmra.mrb[60].mxu1 %v2764_v44 }
 0xe6d   : > { %3725 = vmatpush3.bf16.msra.mxu0 %v4149_v49 }
 0xe6e   : > { %3726 = vmatprep.subr.bf16.mxu0 %v4150_v15 }
 0xe71   : > { %3727 = vmatpush3.bf16.msra.mxu0 %v4151_v35 }
 0xf26   : > { %v2907_v7 = vpop.f32.mrb[48].mxu1 }
 0xf27   : > { %v2908_v36 = vadd.f32 %v2907_v7, %v5979_v52  ;;  %v2909_v37 = vpop.f32.mrb[49].mxu1 }
 0xf28   : > { %v2910_v48 = vadd.f32 %v2909_v37, %v5983_v27  ;;  %v2911_v13 = vpop.f32.mrb[50].mxu1 }
 0xf29   : > { %v2962_v18 = vmul.f32 0.044715, %v2908_v36  ;;  %v5988_v31 = vadd.f32 %v2911_v13, %v5979_v52  ;;  %v2913_v57 = vpop.f32.mrb[51].mxu1  ;;  %v2946_v33 = vmul.f32 0.5, %v2908_v36 }
 0xf2a   : > { %v2963_v39 = vmul.f32 0.044715, %v2910_v48  ;;  %v5991_v41 = vadd.f32 %v2913_v57, %v5983_v27  ;;  %v2947_v57 = vmul.f32 0.5, %v2910_v48 }
 0xf2b   : > { %v2978_v26 = vmul.f32 %v2962_v18, %v2908_v36  ;;  %v2964_v63 = vmul.f32 0.044715, %v5988_v31 }
 0xf2c   : > { %v2979_v42 = vmul.f32 %v2963_v39, %v2910_v48  ;;  %v2965_v38 = vmul.f32 0.044715, %v5991_v41 }
 0xf2d   : > { %v2994_v21 = vmul.f32 %v2978_v26, %v2908_v36  ;;  %v2980_v40 = vmul.f32 %v2964_v63, %v5988_v31 }
 0xf2e   : > { %v2995_v2 = vmul.f32 %v2979_v42, %v2910_v48  ;;  %v2981_v0 = vmul.f32 %v2965_v38, %v5991_v41  ;;  %v2917_v16 = vpop.f32.mrb[52].mxu1 }
 0xf2f   : > { %v3010_v17 = vadd.f32 %v2994_v21, %v2908_v36  ;;  %v2996_v59 = vmul.f32 %v2980_v40, %v5988_v31  ;;  %v5999_v32 = vadd.f32 %v2917_v16, %v5979_v52  ;;  %v2919_v55 = vpop.f32.mrb[53].mxu1 }
 0xf30   : > { %v2997_v54 = vmul.f32 %v2981_v0, %v5991_v41  ;;  %v2920_v23 = vadd.f32 %v2919_v55, %v5983_v27  ;;  %v2921_v3 = vpop.f32.mrb[54].mxu1  ;;  %v3011_v5 = vadd.f32 %v2995_v2, %v2910_v48  ;;  %v2948_v55 = vmul.f32 0.5, %v5988_v31 }
 0xf31   : > { %v3026_v47 = vmul.f32 0.7978846, %v3010_v17  ;;  %v3012_v25 = vadd.f32 %v2996_v59, %v5988_v31  ;;  %v2966_v50 = vmul.f32 0.044715, %v5999_v32  ;;  %v6006_v8 = vadd.f32 %v2921_v3, %v5979_v52  ;;  %v2923_v56 = vpop.f32.mrb[55].mxu1 }
 0xf32   : > { %v2967_v61 = vmul.f32 0.044715, %v2920_v23  ;;  %v6009_v30 = vadd.f32 %v2923_v56, %v5983_v27  ;;  %v3013_v44 = vadd.f32 %v2997_v54, %v5991_v41  ;;  %v3027_v20 = vmul.f32 0.7978846, %v3011_v5 }
 0xf33   : > { %4328 = vtanh.f32 %v3026_v47  ;;  %v3028_v6 = vmul.f32 0.7978846, %v3012_v25  ;;  %v2982_v46 = vmul.f32 %v2966_v50, %v5999_v32  ;;  %v2968_v11 = vmul.f32 0.044715, %v6006_v8 }
 0xf34   : > { %v2983_v43 = vmul.f32 %v2967_v61, %v2920_v23  ;;  %v2969_v1 = vmul.f32 0.044715, %v6009_v30  ;;  %v3029_v29 = vmul.f32 0.7978846, %v3013_v44  ;;  %4330 = vtanh.f32 %v3027_v20 }
 0xf35   : > { %4332 = vtanh.f32 %v3028_v6  ;;  %v2998_v22 = vmul.f32 %v2982_v46, %v5999_v32  ;;  %v2984_v58 = vmul.f32 %v2968_v11, %v6006_v8  ;;  %v2949_v3 = vmul.f32 0.5, %v5991_v41 }
 0xf36   : > { %v2999_v60 = vmul.f32 %v2983_v43, %v2920_v23  ;;  %v2985_v24 = vmul.f32 %v2969_v1, %v6009_v30  ;;  %v2927_v4 = vpop.f32.mrb[56].mxu1  ;;  %4334 = vtanh.f32 %v3029_v29  ;;  %v2951_v56 = vmul.f32 0.5, %v2920_v23 }
 0xf37   : > { %v3000_v49 = vmul.f32 %v2984_v58, %v6006_v8  ;;  %v6020_v15 = vadd.f32 %v2927_v4, %v5979_v52  ;;  %v2929_v35 = vpop.f32.mrb[57].mxu1  ;;  %v3014_v37 = vadd.f32 %v2998_v22, %v5999_v32 }
 0xf38   : > { %v3001_v34 = vmul.f32 %v2985_v24, %v6009_v30  ;;  %v6024_v14 = vadd.f32 %v2929_v35, %v5983_v27  ;;  %v2931_v53 = vpop.f32.mrb[58].mxu1  ;;  %v3015_v7 = vadd.f32 %v2999_v60, %v2920_v23 }
 0xf39   : > { %v2970_v13 = vmul.f32 0.044715, %v6020_v15  ;;  %v6029_v18 = vadd.f32 %v2931_v53, %v5979_v52  ;;  %v2933_v36 = vpop.f32.mrb[59].mxu1  ;;  %v3016_v39 = vadd.f32 %v3000_v49, %v6006_v8  ;;  %v3030_v2 = vmul.f32 0.7978846, %v3014_v37 }
 0xf3a   : > { %v2971_v26 = vmul.f32 0.044715, %v6024_v14  ;;  %v6034_v63 = vadd.f32 %v2933_v36, %v5983_v27  ;;  %v3017_v42 = vadd.f32 %v3001_v34, %v6009_v30  ;;  %v3031_v38 = vmul.f32 0.7978846, %v3015_v7 }
 0xf3b   : > { %v2986_v21 = vmul.f32 %v2970_v13, %v6020_v15  ;;  %v2972_v40 = vmul.f32 0.044715, %v6029_v18  ;;  %v3032_v0 = vmul.f32 0.7978846, %v3016_v39 }
 0xf3c   : > { %v2987_v16 = vmul.f32 %v2971_v26, %v6024_v14  ;;  %v2973_v48 = vmul.f32 0.044715, %v6034_v63  ;;  %v3033_v17 = vmul.f32 0.7978846, %v3017_v42  ;;  %4336 = vtanh.f32 %v3031_v38 }
 0xf3d   : > { %v4329_v59 = vpop.eup %4328  ;;  %v2988_v54 = vmul.f32 %v2972_v40, %v6029_v18  ;;  %4338 = vtanh.f32 %v3030_v2  ;;  %v3002_v41 = vmul.f32 %v2986_v21, %v6020_v15  ;;  %v2950_v2 = vmul.f32 0.5, %v5999_v32 }
 0xf3e   : > { %v4331_v5 = vpop.eup %4330  ;;  %v2989_v47 = vmul.f32 %v2973_v48, %v6034_v63  ;;  %v2937_v25 = vpop.f32.mrb[60].mxu1  ;;  %v3058_v50 = vadd.f32 1.0, %v4329_v59  ;;  %4340 = vtanh.f32 %v3033_v17  ;;  %v3003_v44 = vmul.f32 %v2987_v16, %v6024_v14 }
 0xf3f   : > { %v4333_v61 = vpop.eup %4332  ;;  %v6047_v20 = vadd.f32 %v2937_v25, %v5979_v52  ;;  %v2939_v6 = vpop.f32.mrb[61].mxu1  ;;  %v3059_v31 = vadd.f32 1.0, %v4331_v5  ;;  %4342 = vtanh.f32 %v3032_v0  ;;  %v3004_v29 = vmul.f32 %v2988_v54, %v6029_v18 }
 0xf40   : > { %v4335_v46 = vpop.eup %4334  ;;  %v3005_v11 = vmul.f32 %v2989_v47, %v6034_v63  ;;  %v6052_v43 = vadd.f32 %v2939_v6, %v5983_v27  ;;  %v2941_v1 = vpop.f32.mrb[62].mxu1  ;;  %v3060_v23 = vadd.f32 1.0, %v4333_v61  ;;  %v3074_v35 = vmul.f32 %v3058_v50, %v2946_v33 }
 0xf41   : > { %v2974_v22 = vmul.f32 0.044715, %v6047_v20  ;;  %v6057_v58 = vadd.f32 %v2941_v1, %v5979_v52  ;;  %v2943_v60 = vpop.f32.mrb[63].mxu1  ;;  %v3061_v24 = vadd.f32 1.0, %v4335_v46  ;;  %v3075_v7 = vmul.f32 %v3059_v31, %v2947_v57 }
 0xf42   : > { %v2975_v4 = vmul.f32 0.044715, %v6052_v43  ;;  %v6061_v49 = vadd.f32 %v2943_v60, %v5983_v27  ;;  %v3076_v34 = vmul.f32 %v3060_v23, %v2948_v55  ;;  %v3019_v13 = vadd.f32 %v3003_v44, %v6024_v14 }
 0xf43   : > { %v2976_v53 = vmul.f32 0.044715, %v6057_v58  ;;  %v3077_v37 = vmul.f32 %v3061_v24, %v2949_v3  ;;  %v3021_v26 = vadd.f32 %v3005_v11, %v6034_v63  ;;  %v2990_v42 = vmul.f32 %v2974_v22, %v6047_v20 }
 0xf44   : > { %v2991_v36 = vmul.f32 %v2975_v4, %v6052_v43  ;;  %v2977_v52 = vmul.f32 0.044715, %v6061_v49  ;;  %v3090_v39 = vpack.c.bf16 %v3076_v34, %v3074_v35  ;;  %v2953_v27 = vmul.f32 0.5, %v6009_v30 }
 0xf45   : > { %v3091_v38 = vpack.c.bf16 %v3077_v37, %v3075_v7  ;;  %v3035_v33 = vmul.f32 0.7978846, %v3019_v13  ;;  %v2992_v40 = vmul.f32 %v2976_v53, %v6057_v58  ;;  %v3037_v0 = vmul.f32 0.7978846, %v3021_v26 }
 0xf46   : > { %v4337_v21 = vpop.eup %4336  ;;  %v2993_v57 = vmul.f32 %v2977_v52, %v6061_v49  ;;  %v3007_v48 = vmul.f32 %v2991_v36, %v6052_v43  ;;  %v3018_v59 = vadd.f32 %v3002_v41, %v6020_v15  ;;  %v3020_v3 = vadd.f32 %v3004_v29, %v6029_v18 }
 0xf47   : > { %v4339_v16 = vpop.eup %4338  ;;  %3265 = vmatprep.mubr.bf16.mxu0 %v3091_v38  ;;  %v3063_v17 = vadd.f32 1.0, %v4337_v21  ;;  %4344 = vtanh.f32 %v3035_v33  ;;  %v3006_v32 = vmul.f32 %v2990_v42, %v6047_v20  ;;  %v2952_v25 = vmul.f32 0.5, %v6006_v8 }
 0xf48   : > { %v4341_v55 = vpop.eup %4340  ;;  %v3009_v30 = vmul.f32 %v2993_v57, %v6061_v49  ;;  %3266 = vmatmul.mubr.bf16.vlgmr.msra.gmra.mrb[48].mxu0 %v3090_v39  ;;  %v3062_v54 = vadd.f32 1.0, %v4339_v16  ;;  %4346 = vtanh.f32 %v3037_v0  ;;  %v3034_v50 = vmul.f32 0.7978846, %v3018_v59 }
 0xf49   : > { %v4343_v5 = vpop.eup %4342  ;;  %v3065_v47 = vadd.f32 1.0, %v4341_v55  ;;  %v3008_v61 = vmul.f32 %v2992_v40, %v6057_v58  ;;  %v3079_v44 = vmul.f32 %v3063_v17, %v2951_v56  ;;  %v3036_v31 = vmul.f32 0.7978846, %v3020_v3 }
 0xf4a   : > { %v3064_v6 = vadd.f32 1.0, %v4343_v5  ;;  %4348 = vtanh.f32 %v3034_v50  ;;  %v3023_v41 = vadd.f32 %v3007_v48, %v6052_v43  ;;  %v3025_v11 = vadd.f32 %v3009_v30, %v6061_v49 }
 0xf4b   : > { %v3081_v46 = vmul.f32 %v3065_v47, %v2953_v27  ;;  %v3078_v1 = vmul.f32 %v3062_v54, %v2950_v2  ;;  %4350 = vtanh.f32 %v3036_v31  ;;  %v3022_v8 = vadd.f32 %v3006_v32, %v6047_v20 }
 0xf4c   : > { %v3080_v23 = vmul.f32 %v3064_v6, %v2952_v25  ;;  %v3039_v22 = vmul.f32 0.7978846, %v3023_v41  ;;  %v3041_v60 = vmul.f32 0.7978846, %v3025_v11  ;;  %v3024_v4 = vadd.f32 %v3008_v61, %v6057_v58 }
 0xf4d   : > { %v3093_v29 = vpack.c.bf16 %v3081_v46, %v3079_v44  ;;  %v3038_v56 = vmul.f32 0.7978846, %v3022_v8  ;;  %v2955_v37 = vmul.f32 0.5, %v6024_v14  ;;  %v2957_v13 = vmul.f32 0.5, %v6034_v63 }
 0xf4e   : > { %v3092_v24 = vpack.c.bf16 %v3080_v23, %v3078_v1  ;;  %4352 = vtanh.f32 %v3039_v22  ;;  %v3040_v35 = vmul.f32 0.7978846, %v3024_v4  ;;  %v2954_v33 = vmul.f32 0.5, %v6020_v15 }
 0xf4f   : > { %3273 = vmatprep.mubr.bf16.mxu0 %v3093_v29  ;;  %4354 = vtanh.f32 %v3041_v60  ;;  %v2956_v21 = vmul.f32 0.5, %v6029_v18  ;;  %v2959_v17 = vmul.f32 0.5, %v6052_v43  ;;  %v2961_v59 = vmul.f32 0.5, %v6061_v49  ;;  %v3599_v49 = vld [vmem:[%s6256_s5] ss:$0 sm:$0xff] }
 0xf50   : > { %3274 = vmatmul.mubr.bf16.gmra.mrb[52].mxu0 %v3092_v24  ;;  %4356 = vtanh.f32 %v3038_v56  ;;  %v2958_v54 = vmul.f32 0.5, %v6047_v20  ;;  %v2960_v5 = vmul.f32 0.5, %v6057_v58 }
 0xf51   : > { %v4345_v34 = vpop.eup %4344  ;;  %4358 = vtanh.f32 %v3040_v35 }
 0xf52   : > { %v4347_v53 = vpop.eup %4346  ;;  %v3067_v7 = vadd.f32 1.0, %v4345_v34 }
 0xf53   : > { %v3069_v36 = vadd.f32 1.0, %v4347_v53 }
 0xf54   : > { %v4349_v52 = vpop.eup %4348  ;;  %v3083_v39 = vmul.f32 %v3067_v7, %v2955_v37 }
 0xf55   : > { %v3085_v26 = vmul.f32 %v3069_v36, %v2957_v13  ;;  %v4351_v42 = vpop.eup %4350  ;;  %v3066_v38 = vadd.f32 1.0, %v4349_v52 }
 0xf56   : > { %v3068_v40 = vadd.f32 1.0, %v4351_v42 }
 0xf57   : > { %v3095_v27 = vpack.c.bf16 %v3085_v26, %v3083_v39  ;;  %v3082_v2 = vmul.f32 %v3066_v38, %v2954_v33 }
 0xf58   : > { %v4353_v57 = vpop.eup %4352  ;;  %v3084_v0 = vmul.f32 %v3068_v40, %v2956_v21 }
 0xf59   : > { %3281 = vmatprep.mubr.bf16.mxu0 %v3095_v27  ;;  %v4355_v16 = vpop.eup %4354  ;;  %v3071_v14 = vadd.f32 1.0, %v4353_v57 }
 0xf5a   : > { %v4357_v48 = vpop.eup %4356  ;;  %v3094_v63 = vpack.c.bf16 %v3084_v0, %v3082_v2  ;;  %v3073_v55 = vadd.f32 1.0, %v4355_v16 }
 0xf5b   : > { %v4359_v30 = vpop.eup %4358  ;;  %v3070_v15 = vadd.f32 1.0, %v4357_v48  ;;  %v3087_v18 = vmul.f32 %v3071_v14, %v2959_v17 }
 0xf5c   : > { %3282 = vmatmul.mubr.bf16.gmra.mrb[56].mxu0 %v3094_v63  ;;  %v3089_v3 = vmul.f32 %v3073_v55, %v2961_v59  ;;  %v3072_v32 = vadd.f32 1.0, %v4359_v30 }
 0xf5d   : > { %v3086_v25 = vmul.f32 %v3070_v15, %v2958_v54 }
 0xf5e   : > { %v3097_v47 = vpack.c.bf16 %v3089_v3, %v3087_v18  ;;  %v3088_v50 = vmul.f32 %v3072_v32, %v2960_v5 }
 0xf60   : > { %3289 = vmatprep.mubr.bf16.mxu0 %v3097_v47  ;;  %v3096_v61 = vpack.c.bf16 %v3088_v50, %v3086_v25 }
 0xf64   : > { %3290 = vmatmul.mubr.bf16.gmra.mrb[60].mxu0 %v3096_v61 }
0x101b   : > { %v3728_v43 = vpop.f32.mrb[48].mxu0 }
0x101c   : > { %v3729_v20 = vpop.f32.mrb[49].mxu0 }
0x101d   : > { %v3730_v44 = vadd.f32 %v3729_v20, %v3728_v43  ;;  %v3731_v6 = vpop.f32.mrb[50].mxu0 }
0x101e   : > { %v3732_v31 = vpop.f32.mrb[51].mxu0 }
0x101f   : > { %v3268_v46 = vadd.f32 %v3730_v44, %v3599_v49  ;;  %v3733_v41 = vadd.f32 %v3732_v31, %v3731_v6 }
0x1021   : > { %v3298_v58 = vadd.f32 %v3268_v46, %v5886_v12  ;;  %v3271_v11 = vadd.f32 %v3733_v41, %v3599_v49 }
0x1023   : > { %3306 = vst [vmem:[%s6097_s4] sm:$0xff] %v3298_v58  ;;  %v3299_v1 = vadd.f32 %v3271_v11, %v5889_v19  ;;  %v3734_v23 = vpop.f32.mrb[52].mxu0 }
0x1024   : > { %v3735_v29 = vpop.f32.mrb[53].mxu0 }
0x1025   : > { %3307 = vst [vmem:[%s6097_s4 + $0x8] sm:$0xff] %v3299_v1  ;;  %v3736_v22 = vadd.f32 %v3735_v29, %v3734_v23  ;;  %v3737_v60 = vpop.f32.mrb[54].mxu0 }
0x1026   : > { %v3738_v8 = vpop.f32.mrb[55].mxu0 }
0x1027   : > { %v3276_v24 = vadd.f32 %v3736_v22, %v3599_v49  ;;  %v3739_v4 = vadd.f32 %v3738_v8, %v3737_v60 }
0x1029   : > { %v3300_v12 = vadd.f32 %v3276_v24, %v5893_v10  ;;  %v3279_v56 = vadd.f32 %v3739_v4, %v3599_v49 }
0x102b   : > { %3308 = vst [vmem:[%s6097_s4 + $0x10] sm:$0xff] %v3300_v12  ;;  %v3301_v35 = vadd.f32 %v3279_v56, %v5898_v28 }
0x102d   : > { %3309 = vst [vmem:[%s6097_s4 + $0x18] sm:$0xff] %v3301_v35 }
0x102f   : > { %v3740_v34 = vpop.f32.mrb[56].mxu0 }
0x1030   : > { %v3741_v53 = vpop.f32.mrb[57].mxu0 }
0x1031   : > { %v3742_v19 = vadd.f32 %v3741_v53, %v3740_v34  ;;  %v3743_v7 = vpop.f32.mrb[58].mxu0 }
0x1032   : > { %v3744_v37 = vpop.f32.mrb[59].mxu0 }
0x1033   : > { %v3284_v13 = vadd.f32 %v3742_v19, %v3599_v49  ;;  %v3745_v36 = vadd.f32 %v3744_v37, %v3743_v7 }
0x1035   : > { %v3302_v52 = vadd.f32 %v3284_v13, %v5902_v45  ;;  %v3287_v39 = vadd.f32 %v3745_v36, %v3599_v49 }
0x1037   : > { %3310 = vst [vmem:[%s6097_s4 + $0x20] sm:$0xff] %v3302_v52  ;;  %v3303_v10 = vadd.f32 %v3287_v39, %v5905_v62  ;;  %v3746_v26 = vpop.f32.mrb[60].mxu0 }
0x1038   : > { %v3747_v28 = vpop.f32.mrb[61].mxu0 }
0x1039   : > { %3311 = vst [vmem:[%s6097_s4 + $0x28] sm:$0xff] %v3303_v10  ;;  %v3748_v42 = vadd.f32 %v3747_v28, %v3746_v26  ;;  %v3749_v38 = vpop.f32.mrb[62].mxu0 }
0x103a   : > { %v3750_v27 = vpop.f32.mrb[63].mxu0 }
0x103b   : > { %v3292_v33 = vadd.f32 %v3748_v42, %v3599_v49  ;;  %v3751_v21 = vadd.f32 %v3750_v27, %v3749_v38 }
0x103d   : > { %v3304_v45 = vadd.f32 %v3292_v33, %v5909_v9  ;;  %v3295_v40 = vadd.f32 %v3751_v21, %v3599_v49 }
0x103f   : > { %3312 = vst [vmem:[%s6097_s4 + $0x30] sm:$0xff] %v3304_v45  ;;  %v3305_v62 = vadd.f32 %v3295_v40, %v5913_v51 }
0x1041   : > { %3313 = vst [vmem:[%s6097_s4 + $0x38] sm:$0xff] %v3305_v62 }
0x1042   : > { %4581 = shalt.err (!%p4578_p11)
}
0x1043   : > { %s4582_s0 = scalar_lea.hbm %s6116_s20, 1024  ;;  %s4586_s14 = scalar_lea.hbm %s6258_s28, 2048 }
0x1044   : > { %p4583_p10 = scmp.ne.s32.totalorder %s6116_s20, %s4582_s0  ;;  %p4587_p1 = scmp.lt.u32.totalorder %s6116_s20, %s6258_s28 }
0x1045   : > { %p4588_p12 = scmp.lt.u32.totalorder %s4586_s14, %s4582_s0  ;;  %p4590_p6 = scmp.lt.u32.totalorder %s4582_s0, %s6116_s20 }
0x1046   : > { %p4584_p3 = pnand %p4583_p10, %p6259_p0 }
0x1047   : > { %p4589_p13 = por %p4588_p12, %p4587_p1 }
0x1048   : > { %p4585_p8 = pneg %p4584_p3 }
0x1049   : > { %p4591_p7 = por %p4590_p6, %p4589_p13 }
0x104b   : > { %p4592_p5 = pnand %p4591_p7, %p4585_p8 }
0x104d   : > { %4595 = shalt.err (!%p4592_p5)
}
0x104e   : > { %s4684_s18 = smov 128   ;;  %s4685_s10 = smov 8  }
0x104f   : > { %3968 = dma.vmem_to_hbm [thread:$0]  (%p6259_p0), %s6118_s19, 1024, %s6116_s20, %s3315_s27, %s4684_s18, %s4684_s18, %s4685_s10  }
0x1050 PF: > { %s3345_s30 = sand.u32 1, %s4646_s21   ;;  %p6260_p2 = scmp.ne.s32.totalorder %s6235_s24, 0 }
0x1051   : > { %p6261_p4 = scmp.ge.s32.totalorder %s4666_s26, 2  ;;  %s3346_s12 = scalar_lea.sflag [#allocation6], %s3345_s30 }
0x1053   : > { %p3994_p9 = pnand %p6261_p4, %p6260_p2 }
0x1055   : > { %4641 = dma.done.wait (!%p3994_p9), %s3346_s12, 1024  }
0x1056   : > { %4643 = vsyncadd (!%p3994_p9), %s3346_s12, 4294966272  ;;  %s37_s26 = sadd.s32 1, %s4666_s26   ;;  %s6262_s16 = sld [smem:[#allocation24_spill]] }
0x1057   : > { %p34_p11 = scmp.ge.s32.totalorder %s37_s26, 4   ;;  %s6263_s21 = smov %s4650_s22 }
0x1058   : > { %s6264_s22 = smov %s4654_s23  ;;  %s6265_s23 = smov %s4981_s29 }
0x1059   : > { %s6266_s24 = smov %s4662_s25  ;;  %36 = sbr.rel (!%p34_p11) target bundleno = 24 (0x18), region = 166 }
0x105c   : > { %s6267_s25 = smov %s6262_s16 }
0x1060   :  { %3351 = vsyncpa [#allocation5], 1 }
0x1061   :  { %3353 = vsyncpa [#allocation5 + $0x1], 1 }
0x1062   :  { %3354 = vsyncpa [#allocation8], 1 }
0x1063   :  { %3356 = vsyncpa [#allocation8 + $0x1], 1 }
0x1064   :  { %3357 = vsyncpa [#allocation11], 1 }
0x1065   :  { %3358 = vsyncpa [#allocation14], 1 }
0x1066   :  { %3359 = vsyncpa [#allocation6], 1 }
0x1067   :  { %3361 = vsyncpa [#allocation6 + $0x1], 1 }

</bundles_post_ra>
